<compile_context>
chip_gen: v5e
topology: v5e:2x2
jax: 0.10.0
libtpu: 0.0.40
codegen_flags: <defaults>
</compile_context>

<pallas_src>
import functools

import jax
import jax.numpy as jnp
from jax import lax
from jax.experimental import pallas as pl
from jax.experimental.pallas import tpu as pltpu


# ----------------------------------------------------------------------------
# Fused forward kernel
# ----------------------------------------------------------------------------
def _fused_forward_kernel(Tc, B,
                          x_ref,
                          w1_ref, b1_ref, w2_ref, b2_ref,
                          wih1_ref, bfull_ref, wcat_ref,
                          wd1_ref, bd1_ref, md2_ref, bd2_ref,
                          out_ref,
                          c1_ref, s80_ref, gx_ref, d96_ref, ap2_ref):
    f32 = jnp.float32
    TB = Tc * B
    L = 4 * Tc

    # ------------------------------------------------------------------ conv1
    # Regroup the raw signal in-kernel (no wrapper im2col glue): row block u of
    # c1_ref holds the 12 raw samples x[4u-4 .. 4u+7] that cover BOTH stride-2
    # phases of conv1's length-5 window.  rows = u*B + b (time-major).
    for u in range(Tc):
        lo = max(4 * u - 4, 0)
        hi = min(4 * u + 8, L)
        dlo = lo - (4 * u - 4)
        c1_ref[u * B:(u + 1) * B, dlo:dlo + (hi - lo)] = x_ref[:, lo:hi]
    zpad4 = jnp.zeros((B, 4), f32)
    c1_ref[0:B, 0:4] = zpad4                       # x[-4:0]  = 0 (left pad)
    c1_ref[(Tc - 1) * B:Tc * B, 8:12] = zpad4      # x[L:L+4] = 0 (right pad)

    # conv1 + ReLU: one (TB,12)@(12,32) matmul yields both stride-2 phases:
    # lanes 0:16 = E[u] (conv1-out time 2u), lanes 16:32 = O[u] (time 2u+1).
    h1cat = jnp.maximum(
        jnp.dot(c1_ref[...], w1_ref[...], preferred_element_type=f32)
        + b1_ref[...], 0.0)                                          # (TB, 32)

    # Scatter into conv2's lane-concatenated im2col slab: row block t of
    # s80_ref = [E[t-1] | O[t-1] | E[t] | O[t] | E[t+1]]  (5 taps x 16 ch).
    s80_ref[2 * B:2 * B + TB, 0:32] = h1cat
    s80_ref[B:B + TB, 32:64] = h1cat
    s80_ref[0:TB, 64:80] = h1cat[:, 0:16]
    zpad32 = jnp.zeros((B, 32), f32)
    zpad16 = jnp.zeros((B, 16), f32)
    s80_ref[B:2 * B, 0:32] = zpad32                       # E[-1], O[-1] = 0
    s80_ref[Tc * B:(Tc + 1) * B, 64:80] = zpad16          # E[Tc]        = 0

    # conv2 + ReLU: ONE (TB,80)@(80,32) matmul (was 5 separate K=16 dots).
    x2 = jnp.maximum(
        jnp.dot(s80_ref[B:B + TB, :], w2_ref[...], preferred_element_type=f32)
        + b2_ref[...], 0.0)                                          # (TB, 32)

    # ------------------------------------------------------------------ LSTMs
    # Both LSTM layers software-pipelined into one serial loop (iteration s runs
    # encoder step s and decoder step s-1; the decoder only needs h1[s-1]).
    # Joint state hcat/ccat (B,96) = [layer1(64) | layer2(32)]; joint gate block
    # (384 lanes) = [i1|i2 | f1|f2 | g1|g2 | o1|o2] (each slot 64+32 lanes), so a
    # single (B,96)@(96,384) matmul per step supplies layer1's recurrent term and
    # layer2's full pre-activation, and one tanh covers all 8 gates.
    gx_ref[...] = (jnp.dot(x2, wih1_ref[...], preferred_element_type=f32)
                   + bfull_ref[...])                                 # (TB, 384)

    def joint_gates(z, c):
        t = jnp.tanh(z)                      # one EUP pass for every gate
        i_g = 0.5 * t[:, 0:96] + 0.5         # i/f/o pre-scaled by 0.5 in weights
        f_g = 0.5 * t[:, 96:192] + 0.5
        g_g = t[:, 192:288]
        o_g = 0.5 * t[:, 288:384] + 0.5
        c_n = f_g * c + i_g * g_g
        return o_g * jnp.tanh(c_n), c_n

    def store_h2(j, h):
        # Scatter decoder hidden h2[j] into deconv1's im2col slab: row block u
        # of d96_ref = [h2[u-1] | h2[u] | h2[u+1]].
        d96_ref[pl.ds((j + 2) * B, B), 0:32] = h
        d96_ref[pl.ds((j + 1) * B, B), 32:64] = h
        d96_ref[pl.ds(j * B, B), 64:96] = h

    # Zero only the boundary sub-blocks the scatter never writes.
    d96_ref[B:2 * B, 0:32] = zpad32                        # h2[-1] = 0
    d96_ref[Tc * B:(Tc + 1) * B, 64:96] = zpad32           # h2[Tc] = 0

    # Prologue (s = 0): only the encoder LSTM is live; zero-mask layer 2.
    live1 = (lax.broadcasted_iota(jnp.int32, (B, 96), 1) < 64).astype(f32)
    hcat, ccat = joint_gates(gx_ref[0:B, :], jnp.zeros((B, 96), f32))
    hcat = hcat * live1
    ccat = ccat * live1

    def body(s, carry):
        hcat, ccat = carry
        rec = jnp.dot(hcat, wcat_ref[...], preferred_element_type=f32)  # (B,384)
        hcat, ccat = joint_gates(gx_ref[pl.ds(s * B, B), :] + rec, ccat)
        store_h2(s - 1, hcat[:, 64:96])
        return hcat, ccat

    hcat, ccat = lax.fori_loop(1, Tc, body, (hcat, ccat), unroll=True)

    # Epilogue (s = Tc): only decoder step Tc-1 is live.
    rec = jnp.dot(hcat, wcat_ref[...], preferred_element_type=f32)
    hcat, _ = joint_gates(bfull_ref[...] + rec, ccat)
    store_h2(Tc - 1, hcat[:, 64:96])

    # ---------------------------------------------------------------- deconv1
    # ONE (TB,96)@(96,32) matmul + ReLU produces both transposed-conv phases:
    # lanes 0:16 = A[2u], 16:32 = A[2u+1].
    a_cat = jnp.maximum(
        jnp.dot(d96_ref[B:B + TB, :], wd1_ref[...], preferred_element_type=f32)
        + bd1_ref[...], 0.0)                                         # (TB, 32)

    # Scatter into deconv2's im2col slab: row block s of ap2_ref =
    # [A[2s] | A[2s+1] | A[2s+2] | A[2s-1]]  (16 lanes each).
    ap2_ref[B:B + TB, 0:32] = a_cat
    ap2_ref[0:TB, 32:48] = a_cat[:, 0:16]
    ap2_ref[2 * B:2 * B + TB, 48:64] = a_cat[:, 16:32]
    ap2_ref[Tc * B:(Tc + 1) * B, 32:48] = zpad16           # A[2*Tc] = 0
    ap2_ref[B:2 * B, 48:64] = zpad16                       # A[-1]   = 0

    # ---------------------------------------------------------------- deconv2
    # ONE (TB,64)@(64,4) matmul emits all 4 interleaved output phases; Tanh.
    y4 = jnp.tanh(
        jnp.dot(ap2_ref[B:B + TB, :], md2_ref[...], preferred_element_type=f32)
        + bd2_ref[...])                                              # (TB, 4)

    # In-kernel interleave straight into the lane-dense (B, L) output layout:
    # out[b, 4t + p] = y4[t*B + b, p]   (no wrapper transpose afterwards).
    for t in range(Tc):
        out_ref[:, 4 * t:4 * (t + 1)] = y4[t * B:(t + 1) * B, :]


def _fused_forward(x2d, kp, Tc, B):
    TB = Tc * B
    L = 4 * Tc
    vmem = lambda: pl.BlockSpec(memory_space=pltpu.MemorySpace.VMEM)
    kernel = functools.partial(_fused_forward_kernel, Tc, B)
    return pl.pallas_call(
        kernel,
        out_shape=jax.ShapeDtypeStruct((B, L), jnp.float32),
        in_specs=[vmem() for _ in range(12)],
        out_specs=vmem(),
        scratch_shapes=[
            pltpu.VMEM((TB, 12), jnp.float32),             # conv1 im2col
            pltpu.VMEM(((Tc + 2) * B, 80), jnp.float32),   # conv2 im2col
            pltpu.VMEM((TB, 384), jnp.float32),            # hoisted LSTM input projection (+biases)
            pltpu.VMEM(((Tc + 2) * B, 96), jnp.float32),   # deconv1 im2col (decoder hidden)
            pltpu.VMEM(((Tc + 2) * B, 64), jnp.float32),   # deconv2 im2col
        ],
        compiler_params=pltpu.CompilerParams(vmem_limit_bytes=32 * 1024 * 1024),
    )(x2d, kp["w1cat"], kp["b1cat"], kp["w2cat"], kp["b2"],
      kp["wih1full"], kp["bfull"], kp["wcat"],
      kp["wd1cat"], kp["bd1cat"], kp["md2"], kp["bd2"])


# ----------------------------------------------------------------------------
# Parameters (deterministic, PyTorch-native shapes) and kernel-layout prep
# ----------------------------------------------------------------------------
def init_params(key):
    ks = jax.random.split(key, 16)

    def u(k, shape, fan):
        s = 1.0 / jnp.sqrt(jnp.float32(fan))
        return jax.random.uniform(k, shape, jnp.float32, -s, s)

    p = {}
    p["conv1_w"] = u(ks[0], (16, 1, 5), 1 * 5)       # Conv1d(1, 16, 5)
    p["conv1_b"] = u(ks[1], (16,), 1 * 5)
    p["conv2_w"] = u(ks[2], (32, 16, 5), 16 * 5)     # Conv1d(16, 32, 5)
    p["conv2_b"] = u(ks[3], (32,), 16 * 5)
    p["l1_wih"] = u(ks[4], (256, 32), 64)            # LSTM(32, 64)
    p["l1_whh"] = u(ks[5], (256, 64), 64)
    p["l1_bih"] = u(ks[6], (256,), 64)
    p["l1_bhh"] = u(ks[7], (256,), 64)
    p["l2_wih"] = u(ks[8], (128, 64), 32)            # LSTM(64, 32)
    p["l2_whh"] = u(ks[9], (128, 32), 32)
    p["l2_bih"] = u(ks[10], (128,), 32)
    p["l2_bhh"] = u(ks[11], (128,), 32)
    p["deconv1_w"] = u(ks[12], (32, 16, 5), 32 * 5)  # ConvTranspose1d(32, 16, 5)
    p["deconv1_b"] = u(ks[13], (16,), 32 * 5)
    p["deconv2_w"] = u(ks[14], (16, 1, 5), 16 * 5)   # ConvTranspose1d(16, 1, 5)
    p["deconv2_b"] = u(ks[15], (1,), 16 * 5)
    return p


def to_kernel_params(p):
    f32 = jnp.float32
    kp = {}

    # conv1: one (12, 32) matrix producing [even | odd] stride-2 phases.
    # c1 lane l of output group u is raw sample 4u-4+l:
    #   even output (center 4u):   tap k uses lane k+2
    #   odd  output (center 4u+2): tap k uses lane k+4
    w1 = p["conv1_w"][:, 0, :].T                                # (5, 16)
    w1cat = jnp.zeros((12, 32), f32)
    w1cat = w1cat.at[2:7, 0:16].set(w1)
    w1cat = w1cat.at[4:9, 16:32].set(w1)
    kp["w1cat"] = w1cat
    kp["b1cat"] = jnp.tile(p["conv1_b"], 2).reshape(1, 32)

    # conv2: one (80, 32) matrix over [E[t-1]|O[t-1]|E[t]|O[t]|E[t+1]] (taps 0..4).
    kp["w2cat"] = p["conv2_w"].transpose(2, 1, 0).reshape(80, 32)   # rows = k*16 + ci
    kp["b2"] = p["conv2_b"].reshape(1, 32)

    # LSTMs: joint interleaved gate layout.  Gate slot q in {i,f,g,o} occupies
    # lanes [q*96, q*96+96): first 64 lanes = layer-1 gate, last 32 = layer-2
    # gate, matching the (B,96) = [h1|h2]/[c1|c2] state layout.  i/f/o columns
    # are pre-scaled by 0.5 (sigmoid via tanh), the g columns stay unscaled.
    H1, H2 = 64, 32
    scales = (0.5, 0.5, 1.0, 0.5)                # PyTorch gate order [i, f, g, o]
    wih1full = jnp.zeros((32, 384), f32)         # encoder input projection
    wcat = jnp.zeros((96, 384), f32)             # fused per-step weight
    bfull = jnp.zeros((1, 384), f32)             # both layers' (bih + bhh)
    for q in range(4):
        sc, c0 = scales[q], q * 96
        wih1full = wih1full.at[:, c0:c0 + H1].set(sc * p["l1_wih"][q * H1:(q + 1) * H1, :].T)
        wcat = wcat.at[0:64, c0:c0 + H1].set(sc * p["l1_whh"][q * H1:(q + 1) * H1, :].T)
        bfull = bfull.at[0, c0:c0 + H1].set(
            sc * (p["l1_bih"][q * H1:(q + 1) * H1] + p["l1_bhh"][q * H1:(q + 1) * H1]))
        wcat = wcat.at[0:64, c0 + H1:c0 + 96].set(sc * p["l2_wih"][q * H2:(q + 1) * H2, :].T)
        wcat = wcat.at[64:96, c0 + H1:c0 + 96].set(sc * p["l2_whh"][q * H2:(q + 1) * H2, :].T)
        bfull = bfull.at[0, c0 + H1:c0 + 96].set(
            sc * (p["l2_bih"][q * H2:(q + 1) * H2] + p["l2_bhh"][q * H2:(q + 1) * H2]))
    kp["wih1full"] = wih1full
    kp["wcat"] = wcat
    kp["bfull"] = bfull

    # deconv1: one (96, 32) matrix producing [A_even | A_odd] from [in[u-1]|in[u]|in[u+1]]
    #   A[2u]   = in[u-1]@W4 + in[u]@W2 + in[u+1]@W0
    #   A[2u+1] =              in[u]@W3 + in[u+1]@W1
    dw = p["deconv1_w"]                                          # (32, 16, 5) = [ci, co, k]
    z3216 = jnp.zeros((32, 16), f32)
    wd1_even = jnp.concatenate([dw[:, :, 4], dw[:, :, 2], dw[:, :, 0]], axis=0)
    wd1_odd = jnp.concatenate([z3216, dw[:, :, 3], dw[:, :, 1]], axis=0)
    kp["wd1cat"] = jnp.concatenate([wd1_even, wd1_odd], axis=1)  # (96, 32)
    kp["bd1cat"] = jnp.tile(p["deconv1_b"], 2).reshape(1, 32)

    # deconv2: one (64, 4) phase-mix matrix over [A[2s]|A[2s+1]|A[2s+2]|A[2s-1]]
    #   y[4s]   = A[2s+1]V0 + A[2s]V2 + A[2s-1]V4
    #   y[4s+1] = A[2s+1]V1 + A[2s]V3
    #   y[4s+2] = A[2s+2]V0 + A[2s+1]V2 + A[2s]V4
    #   y[4s+3] = A[2s+2]V1 + A[2s+1]V3
    V = p["deconv2_w"][:, 0, :]                                  # (16, 5)
    z16 = jnp.zeros((16,), f32)
    m_cur_e = jnp.stack([V[:, 2], V[:, 3], V[:, 4], z16], axis=1)
    m_cur_o = jnp.stack([V[:, 0], V[:, 1], V[:, 2], V[:, 3]], axis=1)
    m_next = jnp.stack([z16, z16, V[:, 0], V[:, 1]], axis=1)
    m_prev = jnp.stack([V[:, 4], z16, z16, z16], axis=1)
    kp["md2"] = jnp.concatenate([m_cur_e, m_cur_o, m_next, m_prev], axis=0)  # (64, 4)
    kp["bd2"] = jnp.full((1, 4), p["deconv2_b"][0], f32)
    return kp


# ----------------------------------------------------------------------------
# Forward pass (the wrapper is just free reshapes on either side of the kernel)
# ----------------------------------------------------------------------------
def forward(x, kp):
    """x: (B, 1, L) with L % 4 == 0 (here L = 64). Returns (B, 1, L)."""
    B, C, L = x.shape
    assert C == 1 and L % 4 == 0
    Tc = L // 4
    y = _fused_forward(x[:, 0, :], kp, Tc, B)                    # (B, L)
    return y[:, None, :]

# TODO(synk): fit()/Adam/MSELoss training loop is training, not forward(), and
# is intentionally not implemented here.


if __name__ == "__main__":
    key = jax.random.PRNGKey(0)
    x = jax.random.normal(key, (2, 1, 64), jnp.float32)          # (B, C=1, L=64)
    params = init_params(jax.random.PRNGKey(1))
    kp = to_kernel_params(params)
    y = jax.jit(forward)(x, kp)
    jax.block_until_ready(y)
    assert y.shape == (2, 1, 64) and y.dtype == jnp.float32
    assert bool(jnp.all(jnp.isfinite(y)))
    print("KERNEL_OK")
</pallas_src>

<mosaic_0001>
module attributes {stable_mosaic.version = 11 : i64} {
  func.func @_fused_forward_kernel(%arg0: memref<2x64xf32, #tpu.memory_space<vmem>>, %arg1: memref<12x32xf32, #tpu.memory_space<vmem>>, %arg2: memref<1x32xf32, #tpu.memory_space<vmem>>, %arg3: memref<80x32xf32, #tpu.memory_space<vmem>>, %arg4: memref<1x32xf32, #tpu.memory_space<vmem>>, %arg5: memref<32x384xf32, #tpu.memory_space<vmem>>, %arg6: memref<1x384xf32, #tpu.memory_space<vmem>>, %arg7: memref<96x384xf32, #tpu.memory_space<vmem>>, %arg8: memref<96x32xf32, #tpu.memory_space<vmem>>, %arg9: memref<1x32xf32, #tpu.memory_space<vmem>>, %arg10: memref<64x4xf32, #tpu.memory_space<vmem>>, %arg11: memref<1x4xf32, #tpu.memory_space<vmem>>, %arg12: memref<2x64xf32, #tpu.memory_space<vmem>>, %arg13: memref<32x12xf32, #tpu.memory_space<vmem>>, %arg14: memref<36x80xf32, #tpu.memory_space<vmem>>, %arg15: memref<32x384xf32, #tpu.memory_space<vmem>>, %arg16: memref<36x96xf32, #tpu.memory_space<vmem>>, %arg17: memref<36x64xf32, #tpu.memory_space<vmem>>) attributes {dimension_semantics = [], scalar_prefetch = 0 : i64, scratch_operands = 5 : i64, tpu.core_type = #tpu.core_type<tc>} {
    %c0 = arith.constant 0 : index
    %c0_0 = arith.constant 0 : index
    %0 = vector.load %arg0[%c0, %c0_0] : memref<2x64xf32, #tpu.memory_space<vmem>>, vector<2x8xf32>
    %c0_1 = arith.constant 0 : index
    %c4 = arith.constant 4 : index
    %1 = vector.load %arg13[%c0_1, %c4] : memref<32x12xf32, #tpu.memory_space<vmem>>, vector<2x8xf32>
    tpu.vector_store %arg13[%c0_1, %c4], %0 {strides = array<i32>} : memref<32x12xf32, #tpu.memory_space<vmem>>, vector<2x8xf32>,
    %c0_2 = arith.constant 0 : index
    %c0_3 = arith.constant 0 : index
    %2 = vector.load %arg0[%c0_2, %c0_3] : memref<2x64xf32, #tpu.memory_space<vmem>>, vector<2x12xf32>
    %c2 = arith.constant 2 : index
    %c0_4 = arith.constant 0 : index
    %3 = vector.load %arg13[%c2, %c0_4] : memref<32x12xf32, #tpu.memory_space<vmem>>, vector<2x12xf32>
    tpu.vector_store %arg13[%c2, %c0_4], %2 {strides = array<i32>} : memref<32x12xf32, #tpu.memory_space<vmem>>, vector<2x12xf32>,
    %c0_5 = arith.constant 0 : index
    %c4_6 = arith.constant 4 : index
    %4 = vector.load %arg0[%c0_5, %c4_6] : memref<2x64xf32, #tpu.memory_space<vmem>>, vector<2x12xf32>
    %c4_7 = arith.constant 4 : index
    %c0_8 = arith.constant 0 : index
    %5 = vector.load %arg13[%c4_7, %c0_8] : memref<32x12xf32, #tpu.memory_space<vmem>>, vector<2x12xf32>
    tpu.vector_store %arg13[%c4_7, %c0_8], %4 {strides = array<i32>} : memref<32x12xf32, #tpu.memory_space<vmem>>, vector<2x12xf32>,
    %c0_9 = arith.constant 0 : index
    %c8 = arith.constant 8 : index
    %6 = vector.load %arg0[%c0_9, %c8] : memref<2x64xf32, #tpu.memory_space<vmem>>, vector<2x12xf32>
    %c6 = arith.constant 6 : index
    %c0_10 = arith.constant 0 : index
    %7 = vector.load %arg13[%c6, %c0_10] : memref<32x12xf32, #tpu.memory_space<vmem>>, vector<2x12xf32>
    tpu.vector_store %arg13[%c6, %c0_10], %6 {strides = array<i32>} : memref<32x12xf32, #tpu.memory_space<vmem>>, vector<2x12xf32>,
    %c0_11 = arith.constant 0 : index
    %c12 = arith.constant 12 : index
    %8 = vector.load %arg0[%c0_11, %c12] : memref<2x64xf32, #tpu.memory_space<vmem>>, vector<2x12xf32>
    %c8_12 = arith.constant 8 : index
    %c0_13 = arith.constant 0 : index
    %9 = vector.load %arg13[%c8_12, %c0_13] : memref<32x12xf32, #tpu.memory_space<vmem>>, vector<2x12xf32>
    tpu.vector_store %arg13[%c8_12, %c0_13], %8 {strides = array<i32>} : memref<32x12xf32, #tpu.memory_space<vmem>>, vector<2x12xf32>,
    %c0_14 = arith.constant 0 : index
    %c16 = arith.constant 16 : index
    %10 = vector.load %arg0[%c0_14, %c16] : memref<2x64xf32, #tpu.memory_space<vmem>>, vector<2x12xf32>
    %c10 = arith.constant 10 : index
    %c0_15 = arith.constant 0 : index
    %11 = vector.load %arg13[%c10, %c0_15] : memref<32x12xf32, #tpu.memory_space<vmem>>, vector<2x12xf32>
    tpu.vector_store %arg13[%c10, %c0_15], %10 {strides = array<i32>} : memref<32x12xf32, #tpu.memory_space<vmem>>, vector<2x12xf32>,
    %c0_16 = arith.constant 0 : index
    %c20 = arith.constant 20 : index
    %12 = vector.load %arg0[%c0_16, %c20] : memref<2x64xf32, #tpu.memory_space<vmem>>, vector<2x12xf32>
    %c12_17 = arith.constant 12 : index
    %c0_18 = arith.constant 0 : index
    %13 = vector.load %arg13[%c12_17, %c0_18] : memref<32x12xf32, #tpu.memory_space<vmem>>, vector<2x12xf32>
    tpu.vector_store %arg13[%c12_17, %c0_18], %12 {strides = array<i32>} : memref<32x12xf32, #tpu.memory_space<vmem>>, vector<2x12xf32>,
    %c0_19 = arith.constant 0 : index
    %c24 = arith.constant 24 : index
    %14 = vector.load %arg0[%c0_19, %c24] : memref<2x64xf32, #tpu.memory_space<vmem>>, vector<2x12xf32>
    %c14 = arith.constant 14 : index
    %c0_20 = arith.constant 0 : index
    %15 = vector.load %arg13[%c14, %c0_20] : memref<32x12xf32, #tpu.memory_space<vmem>>, vector<2x12xf32>
    tpu.vector_store %arg13[%c14, %c0_20], %14 {strides = array<i32>} : memref<32x12xf32, #tpu.memory_space<vmem>>, vector<2x12xf32>,
    %c0_21 = arith.constant 0 : index
    %c28 = arith.constant 28 : index
    %16 = vector.load %arg0[%c0_21, %c28] : memref<2x64xf32, #tpu.memory_space<vmem>>, vector<2x12xf32>
    %c16_22 = arith.constant 16 : index
    %c0_23 = arith.constant 0 : index
    %17 = vector.load %arg13[%c16_22, %c0_23] : memref<32x12xf32, #tpu.memory_space<vmem>>, vector<2x12xf32>
    tpu.vector_store %arg13[%c16_22, %c0_23], %16 {strides = array<i32>} : memref<32x12xf32, #tpu.memory_space<vmem>>, vector<2x12xf32>,
    %c0_24 = arith.constant 0 : index
    %c32 = arith.constant 32 : index
    %18 = vector.load %arg0[%c0_24, %c32] : memref<2x64xf32, #tpu.memory_space<vmem>>, vector<2x12xf32>
    %c18 = arith.constant 18 : index
    %c0_25 = arith.constant 0 : index
    %19 = vector.load %arg13[%c18, %c0_25] : memref<32x12xf32, #tpu.memory_space<vmem>>, vector<2x12xf32>
    tpu.vector_store %arg13[%c18, %c0_25], %18 {strides = array<i32>} : memref<32x12xf32, #tpu.memory_space<vmem>>, vector<2x12xf32>,
    %c0_26 = arith.constant 0 : index
    %c36 = arith.constant 36 : index
    %20 = vector.load %arg0[%c0_26, %c36] : memref<2x64xf32, #tpu.memory_space<vmem>>, vector<2x12xf32>
    %c20_27 = arith.constant 20 : index
    %c0_28 = arith.constant 0 : index
    %21 = vector.load %arg13[%c20_27, %c0_28] : memref<32x12xf32, #tpu.memory_space<vmem>>, vector<2x12xf32>
    tpu.vector_store %arg13[%c20_27, %c0_28], %20 {strides = array<i32>} : memref<32x12xf32, #tpu.memory_space<vmem>>, vector<2x12xf32>,
    %c0_29 = arith.constant 0 : index
    %c40 = arith.constant 40 : index
    %22 = vector.load %arg0[%c0_29, %c40] : memref<2x64xf32, #tpu.memory_space<vmem>>, vector<2x12xf32>
    %c22 = arith.constant 22 : index
    %c0_30 = arith.constant 0 : index
    %23 = vector.load %arg13[%c22, %c0_30] : memref<32x12xf32, #tpu.memory_space<vmem>>, vector<2x12xf32>
    tpu.vector_store %arg13[%c22, %c0_30], %22 {strides = array<i32>} : memref<32x12xf32, #tpu.memory_space<vmem>>, vector<2x12xf32>,
    %c0_31 = arith.constant 0 : index
    %c44 = arith.constant 44 : index
    %24 = vector.load %arg0[%c0_31, %c44] : memref<2x64xf32, #tpu.memory_space<vmem>>, vector<2x12xf32>
    %c24_32 = arith.constant 24 : index
    %c0_33 = arith.constant 0 : index
    %25 = vector.load %arg13[%c24_32, %c0_33] : memref<32x12xf32, #tpu.memory_space<vmem>>, vector<2x12xf32>
    tpu.vector_store %arg13[%c24_32, %c0_33], %24 {strides = array<i32>} : memref<32x12xf32, #tpu.memory_space<vmem>>, vector<2x12xf32>,
    %c0_34 = arith.constant 0 : index
    %c48 = arith.constant 48 : index
    %26 = vector.load %arg0[%c0_34, %c48] : memref<2x64xf32, #tpu.memory_space<vmem>>, vector<2x12xf32>
    %c26 = arith.constant 26 : index
    %c0_35 = arith.constant 0 : index
    %27 = vector.load %arg13[%c26, %c0_35] : memref<32x12xf32, #tpu.memory_space<vmem>>, vector<2x12xf32>
    tpu.vector_store %arg13[%c26, %c0_35], %26 {strides = array<i32>} : memref<32x12xf32, #tpu.memory_space<vmem>>, vector<2x12xf32>,
    %c0_36 = arith.constant 0 : index
    %c52 = arith.constant 52 : index
    %28 = vector.load %arg0[%c0_36, %c52] : memref<2x64xf32, #tpu.memory_space<vmem>>, vector<2x12xf32>
    %c28_37 = arith.constant 28 : index
    %c0_38 = arith.constant 0 : index
    %29 = vector.load %arg13[%c28_37, %c0_38] : memref<32x12xf32, #tpu.memory_space<vmem>>, vector<2x12xf32>
    tpu.vector_store %arg13[%c28_37, %c0_38], %28 {strides = array<i32>} : memref<32x12xf32, #tpu.memory_space<vmem>>, vector<2x12xf32>,
    %c0_39 = arith.constant 0 : index
    %c56 = arith.constant 56 : index
    %30 = vector.load %arg0[%c0_39, %c56] : memref<2x64xf32, #tpu.memory_space<vmem>>, vector<2x8xf32>
    %c30 = arith.constant 30 : index
    %c0_40 = arith.constant 0 : index
    %31 = vector.load %arg13[%c30, %c0_40] : memref<32x12xf32, #tpu.memory_space<vmem>>, vector<2x8xf32>
    tpu.vector_store %arg13[%c30, %c0_40], %30 {strides = array<i32>} : memref<32x12xf32, #tpu.memory_space<vmem>>, vector<2x8xf32>,
    %cst = arith.constant 0.000000e+00 : f32
    %32 = vector.broadcast %cst : f32 to vector<2x4xf32>
    %c0_41 = arith.constant 0 : index
    %c0_42 = arith.constant 0 : index
    %33 = vector.load %arg13[%c0_41, %c0_42] : memref<32x12xf32, #tpu.memory_space<vmem>>, vector<2x4xf32>
    tpu.vector_store %arg13[%c0_41, %c0_42], %32 {strides = array<i32>} : memref<32x12xf32, #tpu.memory_space<vmem>>, vector<2x4xf32>,
    %c30_43 = arith.constant 30 : index
    %c8_44 = arith.constant 8 : index
    %34 = vector.load %arg13[%c30_43, %c8_44] : memref<32x12xf32, #tpu.memory_space<vmem>>, vector<2x4xf32>
    tpu.vector_store %arg13[%c30_43, %c8_44], %32 {strides = array<i32>} : memref<32x12xf32, #tpu.memory_space<vmem>>, vector<2x4xf32>,
    %c0_45 = arith.constant 0 : index
    %c0_46 = arith.constant 0 : index
    %35 = vector.load %arg13[%c0_45, %c0_46] : memref<32x12xf32, #tpu.memory_space<vmem>>, vector<32x12xf32>
    %c0_47 = arith.constant 0 : index
    %c0_48 = arith.constant 0 : index
    %36 = vector.load %arg1[%c0_47, %c0_48] : memref<12x32xf32, #tpu.memory_space<vmem>>, vector<12x32xf32>
    %cst_49 = arith.constant dense<0.000000e+00> : vector<32x32xf32>
    %37 = tpu.matmul %35, %36, %cst_49 {dimension_numbers = #tpu.dot_dimension_numbers<[1], [0], [0], [1], [0, 0, 1, 1], [], []>} : vector<32x12xf32>, vector<12x32xf32>, vector<32x32xf32> -> vector<32x32xf32>
    %c0_50 = arith.constant 0 : index
    %c0_51 = arith.constant 0 : index
    %38 = vector.load %arg2[%c0_50, %c0_51] : memref<1x32xf32, #tpu.memory_space<vmem>>, vector<1x32xf32>
    %39 = vector.broadcast %38 : vector<1x32xf32> to vector<32x32xf32>
    %40 = arith.addf %37, %39 : vector<32x32xf32>
    %cst_52 = arith.constant 0.000000e+00 : f32
    %41 = vector.broadcast %cst_52 : f32 to vector<32x32xf32>
    %42 = arith.maximumf %40, %41 : vector<32x32xf32>
    %c4_53 = arith.constant 4 : index
    %c0_54 = arith.constant 0 : index
    %43 = vector.load %arg14[%c4_53, %c0_54] : memref<36x80xf32, #tpu.memory_space<vmem>>, vector<32x32xf32>
    tpu.vector_store %arg14[%c4_53, %c0_54], %42 {strides = array<i32>} : memref<36x80xf32, #tpu.memory_space<vmem>>, vector<32x32xf32>,
    %c2_55 = arith.constant 2 : index
    %c32_56 = arith.constant 32 : index
    %44 = vector.load %arg14[%c2_55, %c32_56] : memref<36x80xf32, #tpu.memory_space<vmem>>, vector<32x32xf32>
    tpu.vector_store %arg14[%c2_55, %c32_56], %42 {strides = array<i32>} : memref<36x80xf32, #tpu.memory_space<vmem>>, vector<32x32xf32>,
    %45 = vector.extract_strided_slice %42 {offsets = [0, 0], sizes = [32, 16], strides = [1, 1]} : vector<32x32xf32> to vector<32x16xf32>
    %c0_57 = arith.constant 0 : index
    %c64 = arith.constant 64 : index
    %46 = vector.load %arg14[%c0_57, %c64] : memref<36x80xf32, #tpu.memory_space<vmem>>, vector<32x16xf32>
    tpu.vector_store %arg14[%c0_57, %c64], %45 {strides = array<i32>} : memref<36x80xf32, #tpu.memory_space<vmem>>, vector<32x16xf32>,
    %cst_58 = arith.constant 0.000000e+00 : f32
    %47 = vector.broadcast %cst_58 : f32 to vector<2x32xf32>
    %cst_59 = arith.constant 0.000000e+00 : f32
    %48 = vector.broadcast %cst_59 : f32 to vector<2x16xf32>
    %c2_60 = arith.constant 2 : index
    %c0_61 = arith.constant 0 : index
    %49 = vector.load %arg14[%c2_60, %c0_61] : memref<36x80xf32, #tpu.memory_space<vmem>>, vector<2x32xf32>
    tpu.vector_store %arg14[%c2_60, %c0_61], %47 {strides = array<i32>} : memref<36x80xf32, #tpu.memory_space<vmem>>, vector<2x32xf32>,
    %c32_62 = arith.constant 32 : index
    %c64_63 = arith.constant 64 : index
    %50 = vector.load %arg14[%c32_62, %c64_63] : memref<36x80xf32, #tpu.memory_space<vmem>>, vector<2x16xf32>
    tpu.vector_store %arg14[%c32_62, %c64_63], %48 {strides = array<i32>} : memref<36x80xf32, #tpu.memory_space<vmem>>, vector<2x16xf32>,
    %c2_64 = arith.constant 2 : index
    %c0_65 = arith.constant 0 : index
    %51 = vector.load %arg14[%c2_64, %c0_65] : memref<36x80xf32, #tpu.memory_space<vmem>>, vector<32x80xf32>
    %c0_66 = arith.constant 0 : index
    %c0_67 = arith.constant 0 : index
    %52 = vector.load %arg3[%c0_66, %c0_67] : memref<80x32xf32, #tpu.memory_space<vmem>>, vector<80x32xf32>
    %cst_68 = arith.constant dense<0.000000e+00> : vector<32x32xf32>
    %53 = tpu.matmul %51, %52, %cst_68 {dimension_numbers = #tpu.dot_dimension_numbers<[1], [0], [0], [1], [0, 0, 1, 1], [], []>} : vector<32x80xf32>, vector<80x32xf32>, vector<32x32xf32> -> vector<32x32xf32>
    %c0_69 = arith.constant 0 : index
    %c0_70 = arith.constant 0 : index
    %54 = vector.load %arg4[%c0_69, %c0_70] : memref<1x32xf32, #tpu.memory_space<vmem>>, vector<1x32xf32>
    %55 = vector.broadcast %54 : vector<1x32xf32> to vector<32x32xf32>
    %56 = arith.addf %53, %55 : vector<32x32xf32>
    %cst_71 = arith.constant 0.000000e+00 : f32
    %57 = vector.broadcast %cst_71 : f32 to vector<32x32xf32>
    %58 = arith.maximumf %56, %57 : vector<32x32xf32>
    %c0_72 = arith.constant 0 : index
    %c0_73 = arith.constant 0 : index
    %59 = vector.load %arg5[%c0_72, %c0_73] : memref<32x384xf32, #tpu.memory_space<vmem>>, vector<32x384xf32>
    %cst_74 = arith.constant dense<0.000000e+00> : vector<32x384xf32>
    %60 = tpu.matmul %58, %59, %cst_74 {dimension_numbers = #tpu.dot_dimension_numbers<[1], [0], [0], [1], [0, 0, 1, 1], [], []>} : vector<32x32xf32>, vector<32x384xf32>, vector<32x384xf32> -> vector<32x384xf32>
    %c0_75 = arith.constant 0 : index
    %c0_76 = arith.constant 0 : index
    %61 = vector.load %arg6[%c0_75, %c0_76] : memref<1x384xf32, #tpu.memory_space<vmem>>, vector<1x384xf32>
    %62 = vector.broadcast %61 : vector<1x384xf32> to vector<32x384xf32>
    %63 = arith.addf %60, %62 : vector<32x384xf32>
    %c0_77 = arith.constant 0 : index
    %c0_78 = arith.constant 0 : index
    %64 = vector.load %arg15[%c0_77, %c0_78] : memref<32x384xf32, #tpu.memory_space<vmem>>, vector<32x384xf32>
    tpu.vector_store %arg15[%c0_77, %c0_78], %63 {strides = array<i32>} : memref<32x384xf32, #tpu.memory_space<vmem>>, vector<32x384xf32>,
    %c2_79 = arith.constant 2 : index
    %c0_80 = arith.constant 0 : index
    %65 = vector.load %arg16[%c2_79, %c0_80] : memref<36x96xf32, #tpu.memory_space<vmem>>, vector<2x32xf32>
    tpu.vector_store %arg16[%c2_79, %c0_80], %47 {strides = array<i32>} : memref<36x96xf32, #tpu.memory_space<vmem>>, vector<2x32xf32>,
    %c32_81 = arith.constant 32 : index
    %c64_82 = arith.constant 64 : index
    %66 = vector.load %arg16[%c32_81, %c64_82] : memref<36x96xf32, #tpu.memory_space<vmem>>, vector<2x32xf32>
    tpu.vector_store %arg16[%c32_81, %c64_82], %47 {strides = array<i32>} : memref<36x96xf32, #tpu.memory_space<vmem>>, vector<2x32xf32>,
    %67 = tpu.iota {dimensions = array<i32: 1>} : vector<2x96xi32>
    %c64_i32 = arith.constant 64 : i32
    %68 = vector.broadcast %c64_i32 : i32 to vector<2x96xi32>
    %69 = arith.cmpi slt, %67, %68 : vector<2x96xi32>
    %70 = arith.extui %69 : vector<2x96xi1> to vector<2x96xi32>
    %71 = arith.sitofp %70 : vector<2x96xi32> to vector<2x96xf32>
    %c0_83 = arith.constant 0 : index
    %c0_84 = arith.constant 0 : index
    %72 = vector.load %arg15[%c0_83, %c0_84] : memref<32x384xf32, #tpu.memory_space<vmem>>, vector<2x384xf32>
    %cst_85 = arith.constant 0.000000e+00 : f32
    %73 = vector.broadcast %cst_85 : f32 to vector<2x96xf32>
    %74 = math.tanh %72 : vector<2x384xf32>
    %75 = vector.extract_strided_slice %74 {offsets = [0, 0], sizes = [2, 96], strides = [1, 1]} : vector<2x384xf32> to vector<2x96xf32>
    %cst_86 = arith.constant 5.000000e-01 : f32
    %76 = vector.broadcast %cst_86 : f32 to vector<2x96xf32>
    %77 = arith.mulf %76, %75 : vector<2x96xf32>
    %cst_87 = arith.constant 5.000000e-01 : f32
    %78 = vector.broadcast %cst_87 : f32 to vector<2x96xf32>
    %79 = arith.addf %77, %78 : vector<2x96xf32>
    %80 = vector.extract_strided_slice %74 {offsets = [0, 96], sizes = [2, 96], strides = [1, 1]} : vector<2x384xf32> to vector<2x96xf32>
    %cst_88 = arith.constant 5.000000e-01 : f32
    %81 = vector.broadcast %cst_88 : f32 to vector<2x96xf32>
    %82 = arith.mulf %81, %80 : vector<2x96xf32>
    %cst_89 = arith.constant 5.000000e-01 : f32
    %83 = vector.broadcast %cst_89 : f32 to vector<2x96xf32>
    %84 = arith.addf %82, %83 : vector<2x96xf32>
    %85 = vector.extract_strided_slice %74 {offsets = [0, 192], sizes = [2, 96], strides = [1, 1]} : vector<2x384xf32> to vector<2x96xf32>
    %86 = vector.extract_strided_slice %74 {offsets = [0, 288], sizes = [2, 96], strides = [1, 1]} : vector<2x384xf32> to vector<2x96xf32>
    %cst_90 = arith.constant 5.000000e-01 : f32
    %87 = vector.broadcast %cst_90 : f32 to vector<2x96xf32>
    %88 = arith.mulf %87, %86 : vector<2x96xf32>
    %cst_91 = arith.constant 5.000000e-01 : f32
    %89 = vector.broadcast %cst_91 : f32 to vector<2x96xf32>
    %90 = arith.addf %88, %89 : vector<2x96xf32>
    %91 = arith.mulf %84, %73 : vector<2x96xf32>
    %92 = arith.mulf %79, %85 : vector<2x96xf32>
    %93 = arith.addf %91, %92 : vector<2x96xf32>
    %94 = math.tanh %93 : vector<2x96xf32>
    %95 = arith.mulf %90, %94 : vector<2x96xf32>
    %96 = arith.mulf %95, %71 : vector<2x96xf32>
    %97 = arith.mulf %93, %71 : vector<2x96xf32>
    %c1_i32 = arith.constant 1 : i32
    %c0_92 = arith.constant 0 : index
    %c0_93 = arith.constant 0 : index
    %98 = vector.load %arg7[%c0_92, %c0_93] : memref<96x384xf32, #tpu.memory_space<vmem>>, vector<96x384xf32>
    %cst_94 = arith.constant dense<0.000000e+00> : vector<2x384xf32>
    %99 = tpu.matmul %96, %98, %cst_94 {dimension_numbers = #tpu.dot_dimension_numbers<[1], [0], [0], [1], [0, 0, 1, 1], [], []>} : vector<2x96xf32>, vector<96x384xf32>, vector<2x384xf32> -> vector<2x384xf32>
    %c2_i32 = arith.constant 2 : i32
    %100 = arith.muli %c1_i32, %c2_i32 : i32
    %101 = arith.index_cast %100 : i32 to index
    %c0_95 = arith.constant 0 : index
    %102 = vector.load %arg15[%101, %c0_95] : memref<32x384xf32, #tpu.memory_space<vmem>>, vector<2x384xf32>
    %103 = arith.addf %102, %99 : vector<2x384xf32>
    %104 = math.tanh %103 : vector<2x384xf32>
    %105 = vector.extract_strided_slice %104 {offsets = [0, 0], sizes = [2, 96], strides = [1, 1]} : vector<2x384xf32> to vector<2x96xf32>
    %cst_96 = arith.constant 5.000000e-01 : f32
    %106 = vector.broadcast %cst_96 : f32 to vector<2x96xf32>
    %107 = arith.mulf %106, %105 : vector<2x96xf32>
    %cst_97 = arith.constant 5.000000e-01 : f32
    %108 = vector.broadcast %cst_97 : f32 to vector<2x96xf32>
    %109 = arith.addf %107, %108 : vector<2x96xf32>
    %110 = vector.extract_strided_slice %104 {offsets = [0, 96], sizes = [2, 96], strides = [1, 1]} : vector<2x384xf32> to vector<2x96xf32>
    %cst_98 = arith.constant 5.000000e-01 : f32
    %111 = vector.broadcast %cst_98 : f32 to vector<2x96xf32>
    %112 = arith.mulf %111, %110 : vector<2x96xf32>
    %cst_99 = arith.constant 5.000000e-01 : f32
    %113 = vector.broadcast %cst_99 : f32 to vector<2x96xf32>
    %114 = arith.addf %112, %113 : vector<2x96xf32>
    %115 = vector.extract_strided_slice %104 {offsets = [0, 192], sizes = [2, 96], strides = [1, 1]} : vector<2x384xf32> to vector<2x96xf32>
    %116 = vector.extract_strided_slice %104 {offsets = [0, 288], sizes = [2, 96], strides = [1, 1]} : vector<2x384xf32> to vector<2x96xf32>
    %cst_100 = arith.constant 5.000000e-01 : f32
    %117 = vector.broadcast %cst_100 : f32 to vector<2x96xf32>
    %118 = arith.mulf %117, %116 : vector<2x96xf32>
    %cst_101 = arith.constant 5.000000e-01 : f32
    %119 = vector.broadcast %cst_101 : f32 to vector<2x96xf32>
    %120 = arith.addf %118, %119 : vector<2x96xf32>
    %121 = arith.mulf %114, %97 : vector<2x96xf32>
    %122 = arith.mulf %109, %115 : vector<2x96xf32>
    %123 = arith.addf %121, %122 : vector<2x96xf32>
    %124 = math.tanh %123 : vector<2x96xf32>
    %125 = arith.mulf %120, %124 : vector<2x96xf32>
    %c1_i32_102 = arith.constant 1 : i32
    %126 = arith.subi %c1_i32, %c1_i32_102 : i32
    %127 = vector.extract_strided_slice %125 {offsets = [0, 64], sizes = [2, 32], strides = [1, 1]} : vector<2x96xf32> to vector<2x32xf32>
    %c2_i32_103 = arith.constant 2 : i32
    %128 = arith.addi %126, %c2_i32_103 : i32
    %c2_i32_104 = arith.constant 2 : i32
    %129 = arith.muli %128, %c2_i32_104 : i32
    %130 = arith.index_cast %129 : i32 to index
    %c0_105 = arith.constant 0 : index
    %131 = vector.load %arg16[%130, %c0_105] : memref<36x96xf32, #tpu.memory_space<vmem>>, vector<2x32xf32>
    tpu.vector_store %arg16[%130, %c0_105], %127 {strides = array<i32>} : memref<36x96xf32, #tpu.memory_space<vmem>>, vector<2x32xf32>,
    %c1_i32_106 = arith.constant 1 : i32
    %132 = arith.addi %126, %c1_i32_106 : i32
    %c2_i32_107 = arith.constant 2 : i32
    %133 = arith.muli %132, %c2_i32_107 : i32
    %134 = arith.index_cast %133 : i32 to index
    %c32_108 = arith.constant 32 : index
    %135 = vector.load %arg16[%134, %c32_108] : memref<36x96xf32, #tpu.memory_space<vmem>>, vector<2x32xf32>
    tpu.vector_store %arg16[%134, %c32_108], %127 {strides = array<i32>} : memref<36x96xf32, #tpu.memory_space<vmem>>, vector<2x32xf32>,
    %c2_i32_109 = arith.constant 2 : i32
    %136 = arith.muli %126, %c2_i32_109 : i32
    %137 = arith.index_cast %136 : i32 to index
    %c64_110 = arith.constant 64 : index
    %138 = vector.load %arg16[%137, %c64_110] : memref<36x96xf32, #tpu.memory_space<vmem>>, vector<2x32xf32>
    tpu.vector_store %arg16[%137, %c64_110], %127 {strides = array<i32>} : memref<36x96xf32, #tpu.memory_space<vmem>>, vector<2x32xf32>,
    %c2_i32_111 = arith.constant 2 : i32
    %c0_112 = arith.constant 0 : index
    %c0_113 = arith.constant 0 : index
    %139 = vector.load %arg7[%c0_112, %c0_113] : memref<96x384xf32, #tpu.memory_space<vmem>>, vector<96x384xf32>
    %cst_114 = arith.constant dense<0.000000e+00> : vector<2x384xf32>
    %140 = tpu.matmul %125, %139, %cst_114 {dimension_numbers = #tpu.dot_dimension_numbers<[1], [0], [0], [1], [0, 0, 1, 1], [], []>} : vector<2x96xf32>, vector<96x384xf32>, vector<2x384xf32> -> vector<2x384xf32>
    %c2_i32_115 = arith.constant 2 : i32
    %141 = arith.muli %c2_i32_111, %c2_i32_115 : i32
    %142 = arith.index_cast %141 : i32 to index
    %c0_116 = arith.constant 0 : index
    %143 = vector.load %arg15[%142, %c0_116] : memref<32x384xf32, #tpu.memory_space<vmem>>, vector<2x384xf32>
    %144 = arith.addf %143, %140 : vector<2x384xf32>
    %145 = math.tanh %144 : vector<2x384xf32>
    %146 = vector.extract_strided_slice %145 {offsets = [0, 0], sizes = [2, 96], strides = [1, 1]} : vector<2x384xf32> to vector<2x96xf32>
    %cst_117 = arith.constant 5.000000e-01 : f32
    %147 = vector.broadcast %cst_117 : f32 to vector<2x96xf32>
    %148 = arith.mulf %147, %146 : vector<2x96xf32>
    %cst_118 = arith.constant 5.000000e-01 : f32
    %149 = vector.broadcast %cst_118 : f32 to vector<2x96xf32>
    %150 = arith.addf %148, %149 : vector<2x96xf32>
    %151 = vector.extract_strided_slice %145 {offsets = [0, 96], sizes = [2, 96], strides = [1, 1]} : vector<2x384xf32> to vector<2x96xf32>
    %cst_119 = arith.constant 5.000000e-01 : f32
    %152 = vector.broadcast %cst_119 : f32 to vector<2x96xf32>
    %153 = arith.mulf %152, %151 : vector<2x96xf32>
    %cst_120 = arith.constant 5.000000e-01 : f32
    %154 = vector.broadcast %cst_120 : f32 to vector<2x96xf32>
    %155 = arith.addf %153, %154 : vector<2x96xf32>
    %156 = vector.extract_strided_slice %145 {offsets = [0, 192], sizes = [2, 96], strides = [1, 1]} : vector<2x384xf32> to vector<2x96xf32>
    %157 = vector.extract_strided_slice %145 {offsets = [0, 288], sizes = [2, 96], strides = [1, 1]} : vector<2x384xf32> to vector<2x96xf32>
    %cst_121 = arith.constant 5.000000e-01 : f32
    %158 = vector.broadcast %cst_121 : f32 to vector<2x96xf32>
    %159 = arith.mulf %158, %157 : vector<2x96xf32>
    %cst_122 = arith.constant 5.000000e-01 : f32
    %160 = vector.broadcast %cst_122 : f32 to vector<2x96xf32>
    %161 = arith.addf %159, %160 : vector<2x96xf32>
    %162 = arith.mulf %155, %123 : vector<2x96xf32>
    %163 = arith.mulf %150, %156 : vector<2x96xf32>
    %164 = arith.addf %162, %163 : vector<2x96xf32>
    %165 = math.tanh %164 : vector<2x96xf32>
    %166 = arith.mulf %161, %165 : vector<2x96xf32>
    %c1_i32_123 = arith.constant 1 : i32
    %167 = arith.subi %c2_i32_111, %c1_i32_123 : i32
    %168 = vector.extract_strided_slice %166 {offsets = [0, 64], sizes = [2, 32], strides = [1, 1]} : vector<2x96xf32> to vector<2x32xf32>
    %c2_i32_124 = arith.constant 2 : i32
    %169 = arith.addi %167, %c2_i32_124 : i32
    %c2_i32_125 = arith.constant 2 : i32
    %170 = arith.muli %169, %c2_i32_125 : i32
    %171 = arith.index_cast %170 : i32 to index
    %c0_126 = arith.constant 0 : index
    %172 = vector.load %arg16[%171, %c0_126] : memref<36x96xf32, #tpu.memory_space<vmem>>, vector<2x32xf32>
    tpu.vector_store %arg16[%171, %c0_126], %168 {strides = array<i32>} : memref<36x96xf32, #tpu.memory_space<vmem>>, vector<2x32xf32>,
    %c1_i32_127 = arith.constant 1 : i32
    %173 = arith.addi %167, %c1_i32_127 : i32
    %c2_i32_128 = arith.constant 2 : i32
    %174 = arith.muli %173, %c2_i32_128 : i32
    %175 = arith.index_cast %174 : i32 to index
    %c32_129 = arith.constant 32 : index
    %176 = vector.load %arg16[%175, %c32_129] : memref<36x96xf32, #tpu.memory_space<vmem>>, vector<2x32xf32>
    tpu.vector_store %arg16[%175, %c32_129], %168 {strides = array<i32>} : memref<36x96xf32, #tpu.memory_space<vmem>>, vector<2x32xf32>,
    %c2_i32_130 = arith.constant 2 : i32
    %177 = arith.muli %167, %c2_i32_130 : i32
    %178 = arith.index_cast %177 : i32 to index
    %c64_131 = arith.constant 64 : index
    %179 = vector.load %arg16[%178, %c64_131] : memref<36x96xf32, #tpu.memory_space<vmem>>, vector<2x32xf32>
    tpu.vector_store %arg16[%178, %c64_131], %168 {strides = array<i32>} : memref<36x96xf32, #tpu.memory_space<vmem>>, vector<2x32xf32>,
    %c3_i32 = arith.constant 3 : i32
    %c0_132 = arith.constant 0 : index
    %c0_133 = arith.constant 0 : index
    %180 = vector.load %arg7[%c0_132, %c0_133] : memref<96x384xf32, #tpu.memory_space<vmem>>, vector<96x384xf32>
    %cst_134 = arith.constant dense<0.000000e+00> : vector<2x384xf32>
    %181 = tpu.matmul %166, %180, %cst_134 {dimension_numbers = #tpu.dot_dimension_numbers<[1], [0], [0], [1], [0, 0, 1, 1], [], []>} : vector<2x96xf32>, vector<96x384xf32>, vector<2x384xf32> -> vector<2x384xf32>
    %c2_i32_135 = arith.constant 2 : i32
    %182 = arith.muli %c3_i32, %c2_i32_135 : i32
    %183 = arith.index_cast %182 : i32 to index
    %c0_136 = arith.constant 0 : index
    %184 = vector.load %arg15[%183, %c0_136] : memref<32x384xf32, #tpu.memory_space<vmem>>, vector<2x384xf32>
    %185 = arith.addf %184, %181 : vector<2x384xf32>
    %186 = math.tanh %185 : vector<2x384xf32>
    %187 = vector.extract_strided_slice %186 {offsets = [0, 0], sizes = [2, 96], strides = [1, 1]} : vector<2x384xf32> to vector<2x96xf32>
    %cst_137 = arith.constant 5.000000e-01 : f32
    %188 = vector.broadcast %cst_137 : f32 to vector<2x96xf32>
    %189 = arith.mulf %188, %187 : vector<2x96xf32>
    %cst_138 = arith.constant 5.000000e-01 : f32
    %190 = vector.broadcast %cst_138 : f32 to vector<2x96xf32>
    %191 = arith.addf %189, %190 : vector<2x96xf32>
    %192 = vector.extract_strided_slice %186 {offsets = [0, 96], sizes = [2, 96], strides = [1, 1]} : vector<2x384xf32> to vector<2x96xf32>
    %cst_139 = arith.constant 5.000000e-01 : f32
    %193 = vector.broadcast %cst_139 : f32 to vector<2x96xf32>
    %194 = arith.mulf %193, %192 : vector<2x96xf32>
    %cst_140 = arith.constant 5.000000e-01 : f32
    %195 = vector.broadcast %cst_140 : f32 to vector<2x96xf32>
    %196 = arith.addf %194, %195 : vector<2x96xf32>
    %197 = vector.extract_strided_slice %186 {offsets = [0, 192], sizes = [2, 96], strides = [1, 1]} : vector<2x384xf32> to vector<2x96xf32>
    %198 = vector.extract_strided_slice %186 {offsets = [0, 288], sizes = [2, 96], strides = [1, 1]} : vector<2x384xf32> to vector<2x96xf32>
    %cst_141 = arith.constant 5.000000e-01 : f32
    %199 = vector.broadcast %cst_141 : f32 to vector<2x96xf32>
    %200 = arith.mulf %199, %198 : vector<2x96xf32>
    %cst_142 = arith.constant 5.000000e-01 : f32
    %201 = vector.broadcast %cst_142 : f32 to vector<2x96xf32>
    %202 = arith.addf %200, %201 : vector<2x96xf32>
    %203 = arith.mulf %196, %164 : vector<2x96xf32>
    %204 = arith.mulf %191, %197 : vector<2x96xf32>
    %205 = arith.addf %203, %204 : vector<2x96xf32>
    %206 = math.tanh %205 : vector<2x96xf32>
    %207 = arith.mulf %202, %206 : vector<2x96xf32>
    %c1_i32_143 = arith.constant 1 : i32
    %208 = arith.subi %c3_i32, %c1_i32_143 : i32
    %209 = vector.extract_strided_slice %207 {offsets = [0, 64], sizes = [2, 32], strides = [1, 1]} : vector<2x96xf32> to vector<2x32xf32>
    %c2_i32_144 = arith.constant 2 : i32
    %210 = arith.addi %208, %c2_i32_144 : i32
    %c2_i32_145 = arith.constant 2 : i32
    %211 = arith.muli %210, %c2_i32_145 : i32
    %212 = arith.index_cast %211 : i32 to index
    %c0_146 = arith.constant 0 : index
    %213 = vector.load %arg16[%212, %c0_146] : memref<36x96xf32, #tpu.memory_space<vmem>>, vector<2x32xf32>
    tpu.vector_store %arg16[%212, %c0_146], %209 {strides = array<i32>} : memref<36x96xf32, #tpu.memory_space<vmem>>, vector<2x32xf32>,
    %c1_i32_147 = arith.constant 1 : i32
    %214 = arith.addi %208, %c1_i32_147 : i32
    %c2_i32_148 = arith.constant 2 : i32
    %215 = arith.muli %214, %c2_i32_148 : i32
    %216 = arith.index_cast %215 : i32 to index
    %c32_149 = arith.constant 32 : index
    %217 = vector.load %arg16[%216, %c32_149] : memref<36x96xf32, #tpu.memory_space<vmem>>, vector<2x32xf32>
    tpu.vector_store %arg16[%216, %c32_149], %209 {strides = array<i32>} : memref<36x96xf32, #tpu.memory_space<vmem>>, vector<2x32xf32>,
    %c2_i32_150 = arith.constant 2 : i32
    %218 = arith.muli %208, %c2_i32_150 : i32
    %219 = arith.index_cast %218 : i32 to index
    %c64_151 = arith.constant 64 : index
    %220 = vector.load %arg16[%219, %c64_151] : memref<36x96xf32, #tpu.memory_space<vmem>>, vector<2x32xf32>
    tpu.vector_store %arg16[%219, %c64_151], %209 {strides = array<i32>} : memref<36x96xf32, #tpu.memory_space<vmem>>, vector<2x32xf32>,
    %c4_i32 = arith.constant 4 : i32
    %c0_152 = arith.constant 0 : index
    %c0_153 = arith.constant 0 : index
    %221 = vector.load %arg7[%c0_152, %c0_153] : memref<96x384xf32, #tpu.memory_space<vmem>>, vector<96x384xf32>
    %cst_154 = arith.constant dense<0.000000e+00> : vector<2x384xf32>
    %222 = tpu.matmul %207, %221, %cst_154 {dimension_numbers = #tpu.dot_dimension_numbers<[1], [0], [0], [1], [0, 0, 1, 1], [], []>} : vector<2x96xf32>, vector<96x384xf32>, vector<2x384xf32> -> vector<2x384xf32>
    %c2_i32_155 = arith.constant 2 : i32
    %223 = arith.muli %c4_i32, %c2_i32_155 : i32
    %224 = arith.index_cast %223 : i32 to index
    %c0_156 = arith.constant 0 : index
    %225 = vector.load %arg15[%224, %c0_156] : memref<32x384xf32, #tpu.memory_space<vmem>>, vector<2x384xf32>
    %226 = arith.addf %225, %222 : vector<2x384xf32>
    %227 = math.tanh %226 : vector<2x384xf32>
    %228 = vector.extract_strided_slice %227 {offsets = [0, 0], sizes = [2, 96], strides = [1, 1]} : vector<2x384xf32> to vector<2x96xf32>
    %cst_157 = arith.constant 5.000000e-01 : f32
    %229 = vector.broadcast %cst_157 : f32 to vector<2x96xf32>
    %230 = arith.mulf %229, %228 : vector<2x96xf32>
    %cst_158 = arith.constant 5.000000e-01 : f32
    %231 = vector.broadcast %cst_158 : f32 to vector<2x96xf32>
    %232 = arith.addf %230, %231 : vector<2x96xf32>
    %233 = vector.extract_strided_slice %227 {offsets = [0, 96], sizes = [2, 96], strides = [1, 1]} : vector<2x384xf32> to vector<2x96xf32>
    %cst_159 = arith.constant 5.000000e-01 : f32
    %234 = vector.broadcast %cst_159 : f32 to vector<2x96xf32>
    %235 = arith.mulf %234, %233 : vector<2x96xf32>
    %cst_160 = arith.constant 5.000000e-01 : f32
    %236 = vector.broadcast %cst_160 : f32 to vector<2x96xf32>
    %237 = arith.addf %235, %236 : vector<2x96xf32>
    %238 = vector.extract_strided_slice %227 {offsets = [0, 192], sizes = [2, 96], strides = [1, 1]} : vector<2x384xf32> to vector<2x96xf32>
    %239 = vector.extract_strided_slice %227 {offsets = [0, 288], sizes = [2, 96], strides = [1, 1]} : vector<2x384xf32> to vector<2x96xf32>
    %cst_161 = arith.constant 5.000000e-01 : f32
    %240 = vector.broadcast %cst_161 : f32 to vector<2x96xf32>
    %241 = arith.mulf %240, %239 : vector<2x96xf32>
    %cst_162 = arith.constant 5.000000e-01 : f32
    %242 = vector.broadcast %cst_162 : f32 to vector<2x96xf32>
    %243 = arith.addf %241, %242 : vector<2x96xf32>
    %244 = arith.mulf %237, %205 : vector<2x96xf32>
    %245 = arith.mulf %232, %238 : vector<2x96xf32>
    %246 = arith.addf %244, %245 : vector<2x96xf32>
    %247 = math.tanh %246 : vector<2x96xf32>
    %248 = arith.mulf %243, %247 : vector<2x96xf32>
    %c1_i32_163 = arith.constant 1 : i32
    %249 = arith.subi %c4_i32, %c1_i32_163 : i32
    %250 = vector.extract_strided_slice %248 {offsets = [0, 64], sizes = [2, 32], strides = [1, 1]} : vector<2x96xf32> to vector<2x32xf32>
    %c2_i32_164 = arith.constant 2 : i32
    %251 = arith.addi %249, %c2_i32_164 : i32
    %c2_i32_165 = arith.constant 2 : i32
    %252 = arith.muli %251, %c2_i32_165 : i32
    %253 = arith.index_cast %252 : i32 to index
    %c0_166 = arith.constant 0 : index
    %254 = vector.load %arg16[%253, %c0_166] : memref<36x96xf32, #tpu.memory_space<vmem>>, vector<2x32xf32>
    tpu.vector_store %arg16[%253, %c0_166], %250 {strides = array<i32>} : memref<36x96xf32, #tpu.memory_space<vmem>>, vector<2x32xf32>,
    %c1_i32_167 = arith.constant 1 : i32
    %255 = arith.addi %249, %c1_i32_167 : i32
    %c2_i32_168 = arith.constant 2 : i32
    %256 = arith.muli %255, %c2_i32_168 : i32
    %257 = arith.index_cast %256 : i32 to index
    %c32_169 = arith.constant 32 : index
    %258 = vector.load %arg16[%257, %c32_169] : memref<36x96xf32, #tpu.memory_space<vmem>>, vector<2x32xf32>
    tpu.vector_store %arg16[%257, %c32_169], %250 {strides = array<i32>} : memref<36x96xf32, #tpu.memory_space<vmem>>, vector<2x32xf32>,
    %c2_i32_170 = arith.constant 2 : i32
    %259 = arith.muli %249, %c2_i32_170 : i32
    %260 = arith.index_cast %259 : i32 to index
    %c64_171 = arith.constant 64 : index
    %261 = vector.load %arg16[%260, %c64_171] : memref<36x96xf32, #tpu.memory_space<vmem>>, vector<2x32xf32>
    tpu.vector_store %arg16[%260, %c64_171], %250 {strides = array<i32>} : memref<36x96xf32, #tpu.memory_space<vmem>>, vector<2x32xf32>,
    %c5_i32 = arith.constant 5 : i32
    %c0_172 = arith.constant 0 : index
    %c0_173 = arith.constant 0 : index
    %262 = vector.load %arg7[%c0_172, %c0_173] : memref<96x384xf32, #tpu.memory_space<vmem>>, vector<96x384xf32>
    %cst_174 = arith.constant dense<0.000000e+00> : vector<2x384xf32>
    %263 = tpu.matmul %248, %262, %cst_174 {dimension_numbers = #tpu.dot_dimension_numbers<[1], [0], [0], [1], [0, 0, 1, 1], [], []>} : vector<2x96xf32>, vector<96x384xf32>, vector<2x384xf32> -> vector<2x384xf32>
    %c2_i32_175 = arith.constant 2 : i32
    %264 = arith.muli %c5_i32, %c2_i32_175 : i32
    %265 = arith.index_cast %264 : i32 to index
    %c0_176 = arith.constant 0 : index
    %266 = vector.load %arg15[%265, %c0_176] : memref<32x384xf32, #tpu.memory_space<vmem>>, vector<2x384xf32>
    %267 = arith.addf %266, %263 : vector<2x384xf32>
    %268 = math.tanh %267 : vector<2x384xf32>
    %269 = vector.extract_strided_slice %268 {offsets = [0, 0], sizes = [2, 96], strides = [1, 1]} : vector<2x384xf32> to vector<2x96xf32>
    %cst_177 = arith.constant 5.000000e-01 : f32
    %270 = vector.broadcast %cst_177 : f32 to vector<2x96xf32>
    %271 = arith.mulf %270, %269 : vector<2x96xf32>
    %cst_178 = arith.constant 5.000000e-01 : f32
    %272 = vector.broadcast %cst_178 : f32 to vector<2x96xf32>
    %273 = arith.addf %271, %272 : vector<2x96xf32>
    %274 = vector.extract_strided_slice %268 {offsets = [0, 96], sizes = [2, 96], strides = [1, 1]} : vector<2x384xf32> to vector<2x96xf32>
    %cst_179 = arith.constant 5.000000e-01 : f32
    %275 = vector.broadcast %cst_179 : f32 to vector<2x96xf32>
    %276 = arith.mulf %275, %274 : vector<2x96xf32>
    %cst_180 = arith.constant 5.000000e-01 : f32
    %277 = vector.broadcast %cst_180 : f32 to vector<2x96xf32>
    %278 = arith.addf %276, %277 : vector<2x96xf32>
    %279 = vector.extract_strided_slice %268 {offsets = [0, 192], sizes = [2, 96], strides = [1, 1]} : vector<2x384xf32> to vector<2x96xf32>
    %280 = vector.extract_strided_slice %268 {offsets = [0, 288], sizes = [2, 96], strides = [1, 1]} : vector<2x384xf32> to vector<2x96xf32>
    %cst_181 = arith.constant 5.000000e-01 : f32
    %281 = vector.broadcast %cst_181 : f32 to vector<2x96xf32>
    %282 = arith.mulf %281, %280 : vector<2x96xf32>
    %cst_182 = arith.constant 5.000000e-01 : f32
    %283 = vector.broadcast %cst_182 : f32 to vector<2x96xf32>
    %284 = arith.addf %282, %283 : vector<2x96xf32>
    %285 = arith.mulf %278, %246 : vector<2x96xf32>
    %286 = arith.mulf %273, %279 : vector<2x96xf32>
    %287 = arith.addf %285, %286 : vector<2x96xf32>
    %288 = math.tanh %287 : vector<2x96xf32>
    %289 = arith.mulf %284, %288 : vector<2x96xf32>
    %c1_i32_183 = arith.constant 1 : i32
    %290 = arith.subi %c5_i32, %c1_i32_183 : i32
    %291 = vector.extract_strided_slice %289 {offsets = [0, 64], sizes = [2, 32], strides = [1, 1]} : vector<2x96xf32> to vector<2x32xf32>
    %c2_i32_184 = arith.constant 2 : i32
    %292 = arith.addi %290, %c2_i32_184 : i32
    %c2_i32_185 = arith.constant 2 : i32
    %293 = arith.muli %292, %c2_i32_185 : i32
    %294 = arith.index_cast %293 : i32 to index
    %c0_186 = arith.constant 0 : index
    %295 = vector.load %arg16[%294, %c0_186] : memref<36x96xf32, #tpu.memory_space<vmem>>, vector<2x32xf32>
    tpu.vector_store %arg16[%294, %c0_186], %291 {strides = array<i32>} : memref<36x96xf32, #tpu.memory_space<vmem>>, vector<2x32xf32>,
    %c1_i32_187 = arith.constant 1 : i32
    %296 = arith.addi %290, %c1_i32_187 : i32
    %c2_i32_188 = arith.constant 2 : i32
    %297 = arith.muli %296, %c2_i32_188 : i32
    %298 = arith.index_cast %297 : i32 to index
    %c32_189 = arith.constant 32 : index
    %299 = vector.load %arg16[%298, %c32_189] : memref<36x96xf32, #tpu.memory_space<vmem>>, vector<2x32xf32>
    tpu.vector_store %arg16[%298, %c32_189], %291 {strides = array<i32>} : memref<36x96xf32, #tpu.memory_space<vmem>>, vector<2x32xf32>,
    %c2_i32_190 = arith.constant 2 : i32
    %300 = arith.muli %290, %c2_i32_190 : i32
    %301 = arith.index_cast %300 : i32 to index
    %c64_191 = arith.constant 64 : index
    %302 = vector.load %arg16[%301, %c64_191] : memref<36x96xf32, #tpu.memory_space<vmem>>, vector<2x32xf32>
    tpu.vector_store %arg16[%301, %c64_191], %291 {strides = array<i32>} : memref<36x96xf32, #tpu.memory_space<vmem>>, vector<2x32xf32>,
    %c6_i32 = arith.constant 6 : i32
    %c0_192 = arith.constant 0 : index
    %c0_193 = arith.constant 0 : index
    %303 = vector.load %arg7[%c0_192, %c0_193] : memref<96x384xf32, #tpu.memory_space<vmem>>, vector<96x384xf32>
    %cst_194 = arith.constant dense<0.000000e+00> : vector<2x384xf32>
    %304 = tpu.matmul %289, %303, %cst_194 {dimension_numbers = #tpu.dot_dimension_numbers<[1], [0], [0], [1], [0, 0, 1, 1], [], []>} : vector<2x96xf32>, vector<96x384xf32>, vector<2x384xf32> -> vector<2x384xf32>
    %c2_i32_195 = arith.constant 2 : i32
    %305 = arith.muli %c6_i32, %c2_i32_195 : i32
    %306 = arith.index_cast %305 : i32 to index
    %c0_196 = arith.constant 0 : index
    %307 = vector.load %arg15[%306, %c0_196] : memref<32x384xf32, #tpu.memory_space<vmem>>, vector<2x384xf32>
    %308 = arith.addf %307, %304 : vector<2x384xf32>
    %309 = math.tanh %308 : vector<2x384xf32>
    %310 = vector.extract_strided_slice %309 {offsets = [0, 0], sizes = [2, 96], strides = [1, 1]} : vector<2x384xf32> to vector<2x96xf32>
    %cst_197 = arith.constant 5.000000e-01 : f32
    %311 = vector.broadcast %cst_197 : f32 to vector<2x96xf32>
    %312 = arith.mulf %311, %310 : vector<2x96xf32>
    %cst_198 = arith.constant 5.000000e-01 : f32
    %313 = vector.broadcast %cst_198 : f32 to vector<2x96xf32>
    %314 = arith.addf %312, %313 : vector<2x96xf32>
    %315 = vector.extract_strided_slice %309 {offsets = [0, 96], sizes = [2, 96], strides = [1, 1]} : vector<2x384xf32> to vector<2x96xf32>
    %cst_199 = arith.constant 5.000000e-01 : f32
    %316 = vector.broadcast %cst_199 : f32 to vector<2x96xf32>
    %317 = arith.mulf %316, %315 : vector<2x96xf32>
    %cst_200 = arith.constant 5.000000e-01 : f32
    %318 = vector.broadcast %cst_200 : f32 to vector<2x96xf32>
    %319 = arith.addf %317, %318 : vector<2x96xf32>
    %320 = vector.extract_strided_slice %309 {offsets = [0, 192], sizes = [2, 96], strides = [1, 1]} : vector<2x384xf32> to vector<2x96xf32>
    %321 = vector.extract_strided_slice %309 {offsets = [0, 288], sizes = [2, 96], strides = [1, 1]} : vector<2x384xf32> to vector<2x96xf32>
    %cst_201 = arith.constant 5.000000e-01 : f32
    %322 = vector.broadcast %cst_201 : f32 to vector<2x96xf32>
    %323 = arith.mulf %322, %321 : vector<2x96xf32>
    %cst_202 = arith.constant 5.000000e-01 : f32
    %324 = vector.broadcast %cst_202 : f32 to vector<2x96xf32>
    %325 = arith.addf %323, %324 : vector<2x96xf32>
    %326 = arith.mulf %319, %287 : vector<2x96xf32>
    %327 = arith.mulf %314, %320 : vector<2x96xf32>
    %328 = arith.addf %326, %327 : vector<2x96xf32>
    %329 = math.tanh %328 : vector<2x96xf32>
    %330 = arith.mulf %325, %329 : vector<2x96xf32>
    %c1_i32_203 = arith.constant 1 : i32
    %331 = arith.subi %c6_i32, %c1_i32_203 : i32
    %332 = vector.extract_strided_slice %330 {offsets = [0, 64], sizes = [2, 32], strides = [1, 1]} : vector<2x96xf32> to vector<2x32xf32>
    %c2_i32_204 = arith.constant 2 : i32
    %333 = arith.addi %331, %c2_i32_204 : i32
    %c2_i32_205 = arith.constant 2 : i32
    %334 = arith.muli %333, %c2_i32_205 : i32
    %335 = arith.index_cast %334 : i32 to index
    %c0_206 = arith.constant 0 : index
    %336 = vector.load %arg16[%335, %c0_206] : memref<36x96xf32, #tpu.memory_space<vmem>>, vector<2x32xf32>
    tpu.vector_store %arg16[%335, %c0_206], %332 {strides = array<i32>} : memref<36x96xf32, #tpu.memory_space<vmem>>, vector<2x32xf32>,
    %c1_i32_207 = arith.constant 1 : i32
    %337 = arith.addi %331, %c1_i32_207 : i32
    %c2_i32_208 = arith.constant 2 : i32
    %338 = arith.muli %337, %c2_i32_208 : i32
    %339 = arith.index_cast %338 : i32 to index
    %c32_209 = arith.constant 32 : index
    %340 = vector.load %arg16[%339, %c32_209] : memref<36x96xf32, #tpu.memory_space<vmem>>, vector<2x32xf32>
    tpu.vector_store %arg16[%339, %c32_209], %332 {strides = array<i32>} : memref<36x96xf32, #tpu.memory_space<vmem>>, vector<2x32xf32>,
    %c2_i32_210 = arith.constant 2 : i32
    %341 = arith.muli %331, %c2_i32_210 : i32
    %342 = arith.index_cast %341 : i32 to index
    %c64_211 = arith.constant 64 : index
    %343 = vector.load %arg16[%342, %c64_211] : memref<36x96xf32, #tpu.memory_space<vmem>>, vector<2x32xf32>
    tpu.vector_store %arg16[%342, %c64_211], %332 {strides = array<i32>} : memref<36x96xf32, #tpu.memory_space<vmem>>, vector<2x32xf32>,
    %c7_i32 = arith.constant 7 : i32
    %c0_212 = arith.constant 0 : index
    %c0_213 = arith.constant 0 : index
    %344 = vector.load %arg7[%c0_212, %c0_213] : memref<96x384xf32, #tpu.memory_space<vmem>>, vector<96x384xf32>
    %cst_214 = arith.constant dense<0.000000e+00> : vector<2x384xf32>
    %345 = tpu.matmul %330, %344, %cst_214 {dimension_numbers = #tpu.dot_dimension_numbers<[1], [0], [0], [1], [0, 0, 1, 1], [], []>} : vector<2x96xf32>, vector<96x384xf32>, vector<2x384xf32> -> vector<2x384xf32>
    %c2_i32_215 = arith.constant 2 : i32
    %346 = arith.muli %c7_i32, %c2_i32_215 : i32
    %347 = arith.index_cast %346 : i32 to index
    %c0_216 = arith.constant 0 : index
    %348 = vector.load %arg15[%347, %c0_216] : memref<32x384xf32, #tpu.memory_space<vmem>>, vector<2x384xf32>
    %349 = arith.addf %348, %345 : vector<2x384xf32>
    %350 = math.tanh %349 : vector<2x384xf32>
    %351 = vector.extract_strided_slice %350 {offsets = [0, 0], sizes = [2, 96], strides = [1, 1]} : vector<2x384xf32> to vector<2x96xf32>
    %cst_217 = arith.constant 5.000000e-01 : f32
    %352 = vector.broadcast %cst_217 : f32 to vector<2x96xf32>
    %353 = arith.mulf %352, %351 : vector<2x96xf32>
    %cst_218 = arith.constant 5.000000e-01 : f32
    %354 = vector.broadcast %cst_218 : f32 to vector<2x96xf32>
    %355 = arith.addf %353, %354 : vector<2x96xf32>
    %356 = vector.extract_strided_slice %350 {offsets = [0, 96], sizes = [2, 96], strides = [1, 1]} : vector<2x384xf32> to vector<2x96xf32>
    %cst_219 = arith.constant 5.000000e-01 : f32
    %357 = vector.broadcast %cst_219 : f32 to vector<2x96xf32>
    %358 = arith.mulf %357, %356 : vector<2x96xf32>
    %cst_220 = arith.constant 5.000000e-01 : f32
    %359 = vector.broadcast %cst_220 : f32 to vector<2x96xf32>
    %360 = arith.addf %358, %359 : vector<2x96xf32>
    %361 = vector.extract_strided_slice %350 {offsets = [0, 192], sizes = [2, 96], strides = [1, 1]} : vector<2x384xf32> to vector<2x96xf32>
    %362 = vector.extract_strided_slice %350 {offsets = [0, 288], sizes = [2, 96], strides = [1, 1]} : vector<2x384xf32> to vector<2x96xf32>
    %cst_221 = arith.constant 5.000000e-01 : f32
    %363 = vector.broadcast %cst_221 : f32 to vector<2x96xf32>
    %364 = arith.mulf %363, %362 : vector<2x96xf32>
    %cst_222 = arith.constant 5.000000e-01 : f32
    %365 = vector.broadcast %cst_222 : f32 to vector<2x96xf32>
    %366 = arith.addf %364, %365 : vector<2x96xf32>
    %367 = arith.mulf %360, %328 : vector<2x96xf32>
    %368 = arith.mulf %355, %361 : vector<2x96xf32>
    %369 = arith.addf %367, %368 : vector<2x96xf32>
    %370 = math.tanh %369 : vector<2x96xf32>
    %371 = arith.mulf %366, %370 : vector<2x96xf32>
    %c1_i32_223 = arith.constant 1 : i32
    %372 = arith.subi %c7_i32, %c1_i32_223 : i32
    %373 = vector.extract_strided_slice %371 {offsets = [0, 64], sizes = [2, 32], strides = [1, 1]} : vector<2x96xf32> to vector<2x32xf32>
    %c2_i32_224 = arith.constant 2 : i32
    %374 = arith.addi %372, %c2_i32_224 : i32
    %c2_i32_225 = arith.constant 2 : i32
    %375 = arith.muli %374, %c2_i32_225 : i32
    %376 = arith.index_cast %375 : i32 to index
    %c0_226 = arith.constant 0 : index
    %377 = vector.load %arg16[%376, %c0_226] : memref<36x96xf32, #tpu.memory_space<vmem>>, vector<2x32xf32>
    tpu.vector_store %arg16[%376, %c0_226], %373 {strides = array<i32>} : memref<36x96xf32, #tpu.memory_space<vmem>>, vector<2x32xf32>,
    %c1_i32_227 = arith.constant 1 : i32
    %378 = arith.addi %372, %c1_i32_227 : i32
    %c2_i32_228 = arith.constant 2 : i32
    %379 = arith.muli %378, %c2_i32_228 : i32
    %380 = arith.index_cast %379 : i32 to index
    %c32_229 = arith.constant 32 : index
    %381 = vector.load %arg16[%380, %c32_229] : memref<36x96xf32, #tpu.memory_space<vmem>>, vector<2x32xf32>
    tpu.vector_store %arg16[%380, %c32_229], %373 {strides = array<i32>} : memref<36x96xf32, #tpu.memory_space<vmem>>, vector<2x32xf32>,
    %c2_i32_230 = arith.constant 2 : i32
    %382 = arith.muli %372, %c2_i32_230 : i32
    %383 = arith.index_cast %382 : i32 to index
    %c64_231 = arith.constant 64 : index
    %384 = vector.load %arg16[%383, %c64_231] : memref<36x96xf32, #tpu.memory_space<vmem>>, vector<2x32xf32>
    tpu.vector_store %arg16[%383, %c64_231], %373 {strides = array<i32>} : memref<36x96xf32, #tpu.memory_space<vmem>>, vector<2x32xf32>,
    %c8_i32 = arith.constant 8 : i32
    %c0_232 = arith.constant 0 : index
    %c0_233 = arith.constant 0 : index
    %385 = vector.load %arg7[%c0_232, %c0_233] : memref<96x384xf32, #tpu.memory_space<vmem>>, vector<96x384xf32>
    %cst_234 = arith.constant dense<0.000000e+00> : vector<2x384xf32>
    %386 = tpu.matmul %371, %385, %cst_234 {dimension_numbers = #tpu.dot_dimension_numbers<[1], [0], [0], [1], [0, 0, 1, 1], [], []>} : vector<2x96xf32>, vector<96x384xf32>, vector<2x384xf32> -> vector<2x384xf32>
    %c2_i32_235 = arith.constant 2 : i32
    %387 = arith.muli %c8_i32, %c2_i32_235 : i32
    %388 = arith.index_cast %387 : i32 to index
    %c0_236 = arith.constant 0 : index
    %389 = vector.load %arg15[%388, %c0_236] : memref<32x384xf32, #tpu.memory_space<vmem>>, vector<2x384xf32>
    %390 = arith.addf %389, %386 : vector<2x384xf32>
    %391 = math.tanh %390 : vector<2x384xf32>
    %392 = vector.extract_strided_slice %391 {offsets = [0, 0], sizes = [2, 96], strides = [1, 1]} : vector<2x384xf32> to vector<2x96xf32>
    %cst_237 = arith.constant 5.000000e-01 : f32
    %393 = vector.broadcast %cst_237 : f32 to vector<2x96xf32>
    %394 = arith.mulf %393, %392 : vector<2x96xf32>
    %cst_238 = arith.constant 5.000000e-01 : f32
    %395 = vector.broadcast %cst_238 : f32 to vector<2x96xf32>
    %396 = arith.addf %394, %395 : vector<2x96xf32>
    %397 = vector.extract_strided_slice %391 {offsets = [0, 96], sizes = [2, 96], strides = [1, 1]} : vector<2x384xf32> to vector<2x96xf32>
    %cst_239 = arith.constant 5.000000e-01 : f32
    %398 = vector.broadcast %cst_239 : f32 to vector<2x96xf32>
    %399 = arith.mulf %398, %397 : vector<2x96xf32>
    %cst_240 = arith.constant 5.000000e-01 : f32
    %400 = vector.broadcast %cst_240 : f32 to vector<2x96xf32>
    %401 = arith.addf %399, %400 : vector<2x96xf32>
    %402 = vector.extract_strided_slice %391 {offsets = [0, 192], sizes = [2, 96], strides = [1, 1]} : vector<2x384xf32> to vector<2x96xf32>
    %403 = vector.extract_strided_slice %391 {offsets = [0, 288], sizes = [2, 96], strides = [1, 1]} : vector<2x384xf32> to vector<2x96xf32>
    %cst_241 = arith.constant 5.000000e-01 : f32
    %404 = vector.broadcast %cst_241 : f32 to vector<2x96xf32>
    %405 = arith.mulf %404, %403 : vector<2x96xf32>
    %cst_242 = arith.constant 5.000000e-01 : f32
    %406 = vector.broadcast %cst_242 : f32 to vector<2x96xf32>
    %407 = arith.addf %405, %406 : vector<2x96xf32>
    %408 = arith.mulf %401, %369 : vector<2x96xf32>
    %409 = arith.mulf %396, %402 : vector<2x96xf32>
    %410 = arith.addf %408, %409 : vector<2x96xf32>
    %411 = math.tanh %410 : vector<2x96xf32>
    %412 = arith.mulf %407, %411 : vector<2x96xf32>
    %c1_i32_243 = arith.constant 1 : i32
    %413 = arith.subi %c8_i32, %c1_i32_243 : i32
    %414 = vector.extract_strided_slice %412 {offsets = [0, 64], sizes = [2, 32], strides = [1, 1]} : vector<2x96xf32> to vector<2x32xf32>
    %c2_i32_244 = arith.constant 2 : i32
    %415 = arith.addi %413, %c2_i32_244 : i32
    %c2_i32_245 = arith.constant 2 : i32
    %416 = arith.muli %415, %c2_i32_245 : i32
    %417 = arith.index_cast %416 : i32 to index
    %c0_246 = arith.constant 0 : index
    %418 = vector.load %arg16[%417, %c0_246] : memref<36x96xf32, #tpu.memory_space<vmem>>, vector<2x32xf32>
    tpu.vector_store %arg16[%417, %c0_246], %414 {strides = array<i32>} : memref<36x96xf32, #tpu.memory_space<vmem>>, vector<2x32xf32>,
    %c1_i32_247 = arith.constant 1 : i32
    %419 = arith.addi %413, %c1_i32_247 : i32
    %c2_i32_248 = arith.constant 2 : i32
    %420 = arith.muli %419, %c2_i32_248 : i32
    %421 = arith.index_cast %420 : i32 to index
    %c32_249 = arith.constant 32 : index
    %422 = vector.load %arg16[%421, %c32_249] : memref<36x96xf32, #tpu.memory_space<vmem>>, vector<2x32xf32>
    tpu.vector_store %arg16[%421, %c32_249], %414 {strides = array<i32>} : memref<36x96xf32, #tpu.memory_space<vmem>>, vector<2x32xf32>,
    %c2_i32_250 = arith.constant 2 : i32
    %423 = arith.muli %413, %c2_i32_250 : i32
    %424 = arith.index_cast %423 : i32 to index
    %c64_251 = arith.constant 64 : index
    %425 = vector.load %arg16[%424, %c64_251] : memref<36x96xf32, #tpu.memory_space<vmem>>, vector<2x32xf32>
    tpu.vector_store %arg16[%424, %c64_251], %414 {strides = array<i32>} : memref<36x96xf32, #tpu.memory_space<vmem>>, vector<2x32xf32>,
    %c9_i32 = arith.constant 9 : i32
    %c0_252 = arith.constant 0 : index
    %c0_253 = arith.constant 0 : index
    %426 = vector.load %arg7[%c0_252, %c0_253] : memref<96x384xf32, #tpu.memory_space<vmem>>, vector<96x384xf32>
    %cst_254 = arith.constant dense<0.000000e+00> : vector<2x384xf32>
    %427 = tpu.matmul %412, %426, %cst_254 {dimension_numbers = #tpu.dot_dimension_numbers<[1], [0], [0], [1], [0, 0, 1, 1], [], []>} : vector<2x96xf32>, vector<96x384xf32>, vector<2x384xf32> -> vector<2x384xf32>
    %c2_i32_255 = arith.constant 2 : i32
    %428 = arith.muli %c9_i32, %c2_i32_255 : i32
    %429 = arith.index_cast %428 : i32 to index
    %c0_256 = arith.constant 0 : index
    %430 = vector.load %arg15[%429, %c0_256] : memref<32x384xf32, #tpu.memory_space<vmem>>, vector<2x384xf32>
    %431 = arith.addf %430, %427 : vector<2x384xf32>
    %432 = math.tanh %431 : vector<2x384xf32>
    %433 = vector.extract_strided_slice %432 {offsets = [0, 0], sizes = [2, 96], strides = [1, 1]} : vector<2x384xf32> to vector<2x96xf32>
    %cst_257 = arith.constant 5.000000e-01 : f32
    %434 = vector.broadcast %cst_257 : f32 to vector<2x96xf32>
    %435 = arith.mulf %434, %433 : vector<2x96xf32>
    %cst_258 = arith.constant 5.000000e-01 : f32
    %436 = vector.broadcast %cst_258 : f32 to vector<2x96xf32>
    %437 = arith.addf %435, %436 : vector<2x96xf32>
    %438 = vector.extract_strided_slice %432 {offsets = [0, 96], sizes = [2, 96], strides = [1, 1]} : vector<2x384xf32> to vector<2x96xf32>
    %cst_259 = arith.constant 5.000000e-01 : f32
    %439 = vector.broadcast %cst_259 : f32 to vector<2x96xf32>
    %440 = arith.mulf %439, %438 : vector<2x96xf32>
    %cst_260 = arith.constant 5.000000e-01 : f32
    %441 = vector.broadcast %cst_260 : f32 to vector<2x96xf32>
    %442 = arith.addf %440, %441 : vector<2x96xf32>
    %443 = vector.extract_strided_slice %432 {offsets = [0, 192], sizes = [2, 96], strides = [1, 1]} : vector<2x384xf32> to vector<2x96xf32>
    %444 = vector.extract_strided_slice %432 {offsets = [0, 288], sizes = [2, 96], strides = [1, 1]} : vector<2x384xf32> to vector<2x96xf32>
    %cst_261 = arith.constant 5.000000e-01 : f32
    %445 = vector.broadcast %cst_261 : f32 to vector<2x96xf32>
    %446 = arith.mulf %445, %444 : vector<2x96xf32>
    %cst_262 = arith.constant 5.000000e-01 : f32
    %447 = vector.broadcast %cst_262 : f32 to vector<2x96xf32>
    %448 = arith.addf %446, %447 : vector<2x96xf32>
    %449 = arith.mulf %442, %410 : vector<2x96xf32>
    %450 = arith.mulf %437, %443 : vector<2x96xf32>
    %451 = arith.addf %449, %450 : vector<2x96xf32>
    %452 = math.tanh %451 : vector<2x96xf32>
    %453 = arith.mulf %448, %452 : vector<2x96xf32>
    %c1_i32_263 = arith.constant 1 : i32
    %454 = arith.subi %c9_i32, %c1_i32_263 : i32
    %455 = vector.extract_strided_slice %453 {offsets = [0, 64], sizes = [2, 32], strides = [1, 1]} : vector<2x96xf32> to vector<2x32xf32>
    %c2_i32_264 = arith.constant 2 : i32
    %456 = arith.addi %454, %c2_i32_264 : i32
    %c2_i32_265 = arith.constant 2 : i32
    %457 = arith.muli %456, %c2_i32_265 : i32
    %458 = arith.index_cast %457 : i32 to index
    %c0_266 = arith.constant 0 : index
    %459 = vector.load %arg16[%458, %c0_266] : memref<36x96xf32, #tpu.memory_space<vmem>>, vector<2x32xf32>
    tpu.vector_store %arg16[%458, %c0_266], %455 {strides = array<i32>} : memref<36x96xf32, #tpu.memory_space<vmem>>, vector<2x32xf32>,
    %c1_i32_267 = arith.constant 1 : i32
    %460 = arith.addi %454, %c1_i32_267 : i32
    %c2_i32_268 = arith.constant 2 : i32
    %461 = arith.muli %460, %c2_i32_268 : i32
    %462 = arith.index_cast %461 : i32 to index
    %c32_269 = arith.constant 32 : index
    %463 = vector.load %arg16[%462, %c32_269] : memref<36x96xf32, #tpu.memory_space<vmem>>, vector<2x32xf32>
    tpu.vector_store %arg16[%462, %c32_269], %455 {strides = array<i32>} : memref<36x96xf32, #tpu.memory_space<vmem>>, vector<2x32xf32>,
    %c2_i32_270 = arith.constant 2 : i32
    %464 = arith.muli %454, %c2_i32_270 : i32
    %465 = arith.index_cast %464 : i32 to index
    %c64_271 = arith.constant 64 : index
    %466 = vector.load %arg16[%465, %c64_271] : memref<36x96xf32, #tpu.memory_space<vmem>>, vector<2x32xf32>
    tpu.vector_store %arg16[%465, %c64_271], %455 {strides = array<i32>} : memref<36x96xf32, #tpu.memory_space<vmem>>, vector<2x32xf32>,
    %c10_i32 = arith.constant 10 : i32
    %c0_272 = arith.constant 0 : index
    %c0_273 = arith.constant 0 : index
    %467 = vector.load %arg7[%c0_272, %c0_273] : memref<96x384xf32, #tpu.memory_space<vmem>>, vector<96x384xf32>
    %cst_274 = arith.constant dense<0.000000e+00> : vector<2x384xf32>
    %468 = tpu.matmul %453, %467, %cst_274 {dimension_numbers = #tpu.dot_dimension_numbers<[1], [0], [0], [1], [0, 0, 1, 1], [], []>} : vector<2x96xf32>, vector<96x384xf32>, vector<2x384xf32> -> vector<2x384xf32>
    %c2_i32_275 = arith.constant 2 : i32
    %469 = arith.muli %c10_i32, %c2_i32_275 : i32
    %470 = arith.index_cast %469 : i32 to index
    %c0_276 = arith.constant 0 : index
    %471 = vector.load %arg15[%470, %c0_276] : memref<32x384xf32, #tpu.memory_space<vmem>>, vector<2x384xf32>
    %472 = arith.addf %471, %468 : vector<2x384xf32>
    %473 = math.tanh %472 : vector<2x384xf32>
    %474 = vector.extract_strided_slice %473 {offsets = [0, 0], sizes = [2, 96], strides = [1, 1]} : vector<2x384xf32> to vector<2x96xf32>
    %cst_277 = arith.constant 5.000000e-01 : f32
    %475 = vector.broadcast %cst_277 : f32 to vector<2x96xf32>
    %476 = arith.mulf %475, %474 : vector<2x96xf32>
    %cst_278 = arith.constant 5.000000e-01 : f32
    %477 = vector.broadcast %cst_278 : f32 to vector<2x96xf32>
    %478 = arith.addf %476, %477 : vector<2x96xf32>
    %479 = vector.extract_strided_slice %473 {offsets = [0, 96], sizes = [2, 96], strides = [1, 1]} : vector<2x384xf32> to vector<2x96xf32>
    %cst_279 = arith.constant 5.000000e-01 : f32
    %480 = vector.broadcast %cst_279 : f32 to vector<2x96xf32>
    %481 = arith.mulf %480, %479 : vector<2x96xf32>
    %cst_280 = arith.constant 5.000000e-01 : f32
    %482 = vector.broadcast %cst_280 : f32 to vector<2x96xf32>
    %483 = arith.addf %481, %482 : vector<2x96xf32>
    %484 = vector.extract_strided_slice %473 {offsets = [0, 192], sizes = [2, 96], strides = [1, 1]} : vector<2x384xf32> to vector<2x96xf32>
    %485 = vector.extract_strided_slice %473 {offsets = [0, 288], sizes = [2, 96], strides = [1, 1]} : vector<2x384xf32> to vector<2x96xf32>
    %cst_281 = arith.constant 5.000000e-01 : f32
    %486 = vector.broadcast %cst_281 : f32 to vector<2x96xf32>
    %487 = arith.mulf %486, %485 : vector<2x96xf32>
    %cst_282 = arith.constant 5.000000e-01 : f32
    %488 = vector.broadcast %cst_282 : f32 to vector<2x96xf32>
    %489 = arith.addf %487, %488 : vector<2x96xf32>
    %490 = arith.mulf %483, %451 : vector<2x96xf32>
    %491 = arith.mulf %478, %484 : vector<2x96xf32>
    %492 = arith.addf %490, %491 : vector<2x96xf32>
    %493 = math.tanh %492 : vector<2x96xf32>
    %494 = arith.mulf %489, %493 : vector<2x96xf32>
    %c1_i32_283 = arith.constant 1 : i32
    %495 = arith.subi %c10_i32, %c1_i32_283 : i32
    %496 = vector.extract_strided_slice %494 {offsets = [0, 64], sizes = [2, 32], strides = [1, 1]} : vector<2x96xf32> to vector<2x32xf32>
    %c2_i32_284 = arith.constant 2 : i32
    %497 = arith.addi %495, %c2_i32_284 : i32
    %c2_i32_285 = arith.constant 2 : i32
    %498 = arith.muli %497, %c2_i32_285 : i32
    %499 = arith.index_cast %498 : i32 to index
    %c0_286 = arith.constant 0 : index
    %500 = vector.load %arg16[%499, %c0_286] : memref<36x96xf32, #tpu.memory_space<vmem>>, vector<2x32xf32>
    tpu.vector_store %arg16[%499, %c0_286], %496 {strides = array<i32>} : memref<36x96xf32, #tpu.memory_space<vmem>>, vector<2x32xf32>,
    %c1_i32_287 = arith.constant 1 : i32
    %501 = arith.addi %495, %c1_i32_287 : i32
    %c2_i32_288 = arith.constant 2 : i32
    %502 = arith.muli %501, %c2_i32_288 : i32
    %503 = arith.index_cast %502 : i32 to index
    %c32_289 = arith.constant 32 : index
    %504 = vector.load %arg16[%503, %c32_289] : memref<36x96xf32, #tpu.memory_space<vmem>>, vector<2x32xf32>
    tpu.vector_store %arg16[%503, %c32_289], %496 {strides = array<i32>} : memref<36x96xf32, #tpu.memory_space<vmem>>, vector<2x32xf32>,
    %c2_i32_290 = arith.constant 2 : i32
    %505 = arith.muli %495, %c2_i32_290 : i32
    %506 = arith.index_cast %505 : i32 to index
    %c64_291 = arith.constant 64 : index
    %507 = vector.load %arg16[%506, %c64_291] : memref<36x96xf32, #tpu.memory_space<vmem>>, vector<2x32xf32>
    tpu.vector_store %arg16[%506, %c64_291], %496 {strides = array<i32>} : memref<36x96xf32, #tpu.memory_space<vmem>>, vector<2x32xf32>,
    %c11_i32 = arith.constant 11 : i32
    %c0_292 = arith.constant 0 : index
    %c0_293 = arith.constant 0 : index
    %508 = vector.load %arg7[%c0_292, %c0_293] : memref<96x384xf32, #tpu.memory_space<vmem>>, vector<96x384xf32>
    %cst_294 = arith.constant dense<0.000000e+00> : vector<2x384xf32>
    %509 = tpu.matmul %494, %508, %cst_294 {dimension_numbers = #tpu.dot_dimension_numbers<[1], [0], [0], [1], [0, 0, 1, 1], [], []>} : vector<2x96xf32>, vector<96x384xf32>, vector<2x384xf32> -> vector<2x384xf32>
    %c2_i32_295 = arith.constant 2 : i32
    %510 = arith.muli %c11_i32, %c2_i32_295 : i32
    %511 = arith.index_cast %510 : i32 to index
    %c0_296 = arith.constant 0 : index
    %512 = vector.load %arg15[%511, %c0_296] : memref<32x384xf32, #tpu.memory_space<vmem>>, vector<2x384xf32>
    %513 = arith.addf %512, %509 : vector<2x384xf32>
    %514 = math.tanh %513 : vector<2x384xf32>
    %515 = vector.extract_strided_slice %514 {offsets = [0, 0], sizes = [2, 96], strides = [1, 1]} : vector<2x384xf32> to vector<2x96xf32>
    %cst_297 = arith.constant 5.000000e-01 : f32
    %516 = vector.broadcast %cst_297 : f32 to vector<2x96xf32>
    %517 = arith.mulf %516, %515 : vector<2x96xf32>
    %cst_298 = arith.constant 5.000000e-01 : f32
    %518 = vector.broadcast %cst_298 : f32 to vector<2x96xf32>
    %519 = arith.addf %517, %518 : vector<2x96xf32>
    %520 = vector.extract_strided_slice %514 {offsets = [0, 96], sizes = [2, 96], strides = [1, 1]} : vector<2x384xf32> to vector<2x96xf32>
    %cst_299 = arith.constant 5.000000e-01 : f32
    %521 = vector.broadcast %cst_299 : f32 to vector<2x96xf32>
    %522 = arith.mulf %521, %520 : vector<2x96xf32>
    %cst_300 = arith.constant 5.000000e-01 : f32
    %523 = vector.broadcast %cst_300 : f32 to vector<2x96xf32>
    %524 = arith.addf %522, %523 : vector<2x96xf32>
    %525 = vector.extract_strided_slice %514 {offsets = [0, 192], sizes = [2, 96], strides = [1, 1]} : vector<2x384xf32> to vector<2x96xf32>
    %526 = vector.extract_strided_slice %514 {offsets = [0, 288], sizes = [2, 96], strides = [1, 1]} : vector<2x384xf32> to vector<2x96xf32>
    %cst_301 = arith.constant 5.000000e-01 : f32
    %527 = vector.broadcast %cst_301 : f32 to vector<2x96xf32>
    %528 = arith.mulf %527, %526 : vector<2x96xf32>
    %cst_302 = arith.constant 5.000000e-01 : f32
    %529 = vector.broadcast %cst_302 : f32 to vector<2x96xf32>
    %530 = arith.addf %528, %529 : vector<2x96xf32>
    %531 = arith.mulf %524, %492 : vector<2x96xf32>
    %532 = arith.mulf %519, %525 : vector<2x96xf32>
    %533 = arith.addf %531, %532 : vector<2x96xf32>
    %534 = math.tanh %533 : vector<2x96xf32>
    %535 = arith.mulf %530, %534 : vector<2x96xf32>
    %c1_i32_303 = arith.constant 1 : i32
    %536 = arith.subi %c11_i32, %c1_i32_303 : i32
    %537 = vector.extract_strided_slice %535 {offsets = [0, 64], sizes = [2, 32], strides = [1, 1]} : vector<2x96xf32> to vector<2x32xf32>
    %c2_i32_304 = arith.constant 2 : i32
    %538 = arith.addi %536, %c2_i32_304 : i32
    %c2_i32_305 = arith.constant 2 : i32
    %539 = arith.muli %538, %c2_i32_305 : i32
    %540 = arith.index_cast %539 : i32 to index
    %c0_306 = arith.constant 0 : index
    %541 = vector.load %arg16[%540, %c0_306] : memref<36x96xf32, #tpu.memory_space<vmem>>, vector<2x32xf32>
    tpu.vector_store %arg16[%540, %c0_306], %537 {strides = array<i32>} : memref<36x96xf32, #tpu.memory_space<vmem>>, vector<2x32xf32>,
    %c1_i32_307 = arith.constant 1 : i32
    %542 = arith.addi %536, %c1_i32_307 : i32
    %c2_i32_308 = arith.constant 2 : i32
    %543 = arith.muli %542, %c2_i32_308 : i32
    %544 = arith.index_cast %543 : i32 to index
    %c32_309 = arith.constant 32 : index
    %545 = vector.load %arg16[%544, %c32_309] : memref<36x96xf32, #tpu.memory_space<vmem>>, vector<2x32xf32>
    tpu.vector_store %arg16[%544, %c32_309], %537 {strides = array<i32>} : memref<36x96xf32, #tpu.memory_space<vmem>>, vector<2x32xf32>,
    %c2_i32_310 = arith.constant 2 : i32
    %546 = arith.muli %536, %c2_i32_310 : i32
    %547 = arith.index_cast %546 : i32 to index
    %c64_311 = arith.constant 64 : index
    %548 = vector.load %arg16[%547, %c64_311] : memref<36x96xf32, #tpu.memory_space<vmem>>, vector<2x32xf32>
    tpu.vector_store %arg16[%547, %c64_311], %537 {strides = array<i32>} : memref<36x96xf32, #tpu.memory_space<vmem>>, vector<2x32xf32>,
    %c12_i32 = arith.constant 12 : i32
    %c0_312 = arith.constant 0 : index
    %c0_313 = arith.constant 0 : index
    %549 = vector.load %arg7[%c0_312, %c0_313] : memref<96x384xf32, #tpu.memory_space<vmem>>, vector<96x384xf32>
    %cst_314 = arith.constant dense<0.000000e+00> : vector<2x384xf32>
    %550 = tpu.matmul %535, %549, %cst_314 {dimension_numbers = #tpu.dot_dimension_numbers<[1], [0], [0], [1], [0, 0, 1, 1], [], []>} : vector<2x96xf32>, vector<96x384xf32>, vector<2x384xf32> -> vector<2x384xf32>
    %c2_i32_315 = arith.constant 2 : i32
    %551 = arith.muli %c12_i32, %c2_i32_315 : i32
    %552 = arith.index_cast %551 : i32 to index
    %c0_316 = arith.constant 0 : index
    %553 = vector.load %arg15[%552, %c0_316] : memref<32x384xf32, #tpu.memory_space<vmem>>, vector<2x384xf32>
    %554 = arith.addf %553, %550 : vector<2x384xf32>
    %555 = math.tanh %554 : vector<2x384xf32>
    %556 = vector.extract_strided_slice %555 {offsets = [0, 0], sizes = [2, 96], strides = [1, 1]} : vector<2x384xf32> to vector<2x96xf32>
    %cst_317 = arith.constant 5.000000e-01 : f32
    %557 = vector.broadcast %cst_317 : f32 to vector<2x96xf32>
    %558 = arith.mulf %557, %556 : vector<2x96xf32>
    %cst_318 = arith.constant 5.000000e-01 : f32
    %559 = vector.broadcast %cst_318 : f32 to vector<2x96xf32>
    %560 = arith.addf %558, %559 : vector<2x96xf32>
    %561 = vector.extract_strided_slice %555 {offsets = [0, 96], sizes = [2, 96], strides = [1, 1]} : vector<2x384xf32> to vector<2x96xf32>
    %cst_319 = arith.constant 5.000000e-01 : f32
    %562 = vector.broadcast %cst_319 : f32 to vector<2x96xf32>
    %563 = arith.mulf %562, %561 : vector<2x96xf32>
    %cst_320 = arith.constant 5.000000e-01 : f32
    %564 = vector.broadcast %cst_320 : f32 to vector<2x96xf32>
    %565 = arith.addf %563, %564 : vector<2x96xf32>
    %566 = vector.extract_strided_slice %555 {offsets = [0, 192], sizes = [2, 96], strides = [1, 1]} : vector<2x384xf32> to vector<2x96xf32>
    %567 = vector.extract_strided_slice %555 {offsets = [0, 288], sizes = [2, 96], strides = [1, 1]} : vector<2x384xf32> to vector<2x96xf32>
    %cst_321 = arith.constant 5.000000e-01 : f32
    %568 = vector.broadcast %cst_321 : f32 to vector<2x96xf32>
    %569 = arith.mulf %568, %567 : vector<2x96xf32>
    %cst_322 = arith.constant 5.000000e-01 : f32
    %570 = vector.broadcast %cst_322 : f32 to vector<2x96xf32>
    %571 = arith.addf %569, %570 : vector<2x96xf32>
    %572 = arith.mulf %565, %533 : vector<2x96xf32>
    %573 = arith.mulf %560, %566 : vector<2x96xf32>
    %574 = arith.addf %572, %573 : vector<2x96xf32>
    %575 = math.tanh %574 : vector<2x96xf32>
    %576 = arith.mulf %571, %575 : vector<2x96xf32>
    %c1_i32_323 = arith.constant 1 : i32
    %577 = arith.subi %c12_i32, %c1_i32_323 : i32
    %578 = vector.extract_strided_slice %576 {offsets = [0, 64], sizes = [2, 32], strides = [1, 1]} : vector<2x96xf32> to vector<2x32xf32>
    %c2_i32_324 = arith.constant 2 : i32
    %579 = arith.addi %577, %c2_i32_324 : i32
    %c2_i32_325 = arith.constant 2 : i32
    %580 = arith.muli %579, %c2_i32_325 : i32
    %581 = arith.index_cast %580 : i32 to index
    %c0_326 = arith.constant 0 : index
    %582 = vector.load %arg16[%581, %c0_326] : memref<36x96xf32, #tpu.memory_space<vmem>>, vector<2x32xf32>
    tpu.vector_store %arg16[%581, %c0_326], %578 {strides = array<i32>} : memref<36x96xf32, #tpu.memory_space<vmem>>, vector<2x32xf32>,
    %c1_i32_327 = arith.constant 1 : i32
    %583 = arith.addi %577, %c1_i32_327 : i32
    %c2_i32_328 = arith.constant 2 : i32
    %584 = arith.muli %583, %c2_i32_328 : i32
    %585 = arith.index_cast %584 : i32 to index
    %c32_329 = arith.constant 32 : index
    %586 = vector.load %arg16[%585, %c32_329] : memref<36x96xf32, #tpu.memory_space<vmem>>, vector<2x32xf32>
    tpu.vector_store %arg16[%585, %c32_329], %578 {strides = array<i32>} : memref<36x96xf32, #tpu.memory_space<vmem>>, vector<2x32xf32>,
    %c2_i32_330 = arith.constant 2 : i32
    %587 = arith.muli %577, %c2_i32_330 : i32
    %588 = arith.index_cast %587 : i32 to index
    %c64_331 = arith.constant 64 : index
    %589 = vector.load %arg16[%588, %c64_331] : memref<36x96xf32, #tpu.memory_space<vmem>>, vector<2x32xf32>
    tpu.vector_store %arg16[%588, %c64_331], %578 {strides = array<i32>} : memref<36x96xf32, #tpu.memory_space<vmem>>, vector<2x32xf32>,
    %c13_i32 = arith.constant 13 : i32
    %c0_332 = arith.constant 0 : index
    %c0_333 = arith.constant 0 : index
    %590 = vector.load %arg7[%c0_332, %c0_333] : memref<96x384xf32, #tpu.memory_space<vmem>>, vector<96x384xf32>
    %cst_334 = arith.constant dense<0.000000e+00> : vector<2x384xf32>
    %591 = tpu.matmul %576, %590, %cst_334 {dimension_numbers = #tpu.dot_dimension_numbers<[1], [0], [0], [1], [0, 0, 1, 1], [], []>} : vector<2x96xf32>, vector<96x384xf32>, vector<2x384xf32> -> vector<2x384xf32>
    %c2_i32_335 = arith.constant 2 : i32
    %592 = arith.muli %c13_i32, %c2_i32_335 : i32
    %593 = arith.index_cast %592 : i32 to index
    %c0_336 = arith.constant 0 : index
    %594 = vector.load %arg15[%593, %c0_336] : memref<32x384xf32, #tpu.memory_space<vmem>>, vector<2x384xf32>
    %595 = arith.addf %594, %591 : vector<2x384xf32>
    %596 = math.tanh %595 : vector<2x384xf32>
    %597 = vector.extract_strided_slice %596 {offsets = [0, 0], sizes = [2, 96], strides = [1, 1]} : vector<2x384xf32> to vector<2x96xf32>
    %cst_337 = arith.constant 5.000000e-01 : f32
    %598 = vector.broadcast %cst_337 : f32 to vector<2x96xf32>
    %599 = arith.mulf %598, %597 : vector<2x96xf32>
    %cst_338 = arith.constant 5.000000e-01 : f32
    %600 = vector.broadcast %cst_338 : f32 to vector<2x96xf32>
    %601 = arith.addf %599, %600 : vector<2x96xf32>
    %602 = vector.extract_strided_slice %596 {offsets = [0, 96], sizes = [2, 96], strides = [1, 1]} : vector<2x384xf32> to vector<2x96xf32>
    %cst_339 = arith.constant 5.000000e-01 : f32
    %603 = vector.broadcast %cst_339 : f32 to vector<2x96xf32>
    %604 = arith.mulf %603, %602 : vector<2x96xf32>
    %cst_340 = arith.constant 5.000000e-01 : f32
    %605 = vector.broadcast %cst_340 : f32 to vector<2x96xf32>
    %606 = arith.addf %604, %605 : vector<2x96xf32>
    %607 = vector.extract_strided_slice %596 {offsets = [0, 192], sizes = [2, 96], strides = [1, 1]} : vector<2x384xf32> to vector<2x96xf32>
    %608 = vector.extract_strided_slice %596 {offsets = [0, 288], sizes = [2, 96], strides = [1, 1]} : vector<2x384xf32> to vector<2x96xf32>
    %cst_341 = arith.constant 5.000000e-01 : f32
    %609 = vector.broadcast %cst_341 : f32 to vector<2x96xf32>
    %610 = arith.mulf %609, %608 : vector<2x96xf32>
    %cst_342 = arith.constant 5.000000e-01 : f32
    %611 = vector.broadcast %cst_342 : f32 to vector<2x96xf32>
    %612 = arith.addf %610, %611 : vector<2x96xf32>
    %613 = arith.mulf %606, %574 : vector<2x96xf32>
    %614 = arith.mulf %601, %607 : vector<2x96xf32>
    %615 = arith.addf %613, %614 : vector<2x96xf32>
    %616 = math.tanh %615 : vector<2x96xf32>
    %617 = arith.mulf %612, %616 : vector<2x96xf32>
    %c1_i32_343 = arith.constant 1 : i32
    %618 = arith.subi %c13_i32, %c1_i32_343 : i32
    %619 = vector.extract_strided_slice %617 {offsets = [0, 64], sizes = [2, 32], strides = [1, 1]} : vector<2x96xf32> to vector<2x32xf32>
    %c2_i32_344 = arith.constant 2 : i32
    %620 = arith.addi %618, %c2_i32_344 : i32
    %c2_i32_345 = arith.constant 2 : i32
    %621 = arith.muli %620, %c2_i32_345 : i32
    %622 = arith.index_cast %621 : i32 to index
    %c0_346 = arith.constant 0 : index
    %623 = vector.load %arg16[%622, %c0_346] : memref<36x96xf32, #tpu.memory_space<vmem>>, vector<2x32xf32>
    tpu.vector_store %arg16[%622, %c0_346], %619 {strides = array<i32>} : memref<36x96xf32, #tpu.memory_space<vmem>>, vector<2x32xf32>,
    %c1_i32_347 = arith.constant 1 : i32
    %624 = arith.addi %618, %c1_i32_347 : i32
    %c2_i32_348 = arith.constant 2 : i32
    %625 = arith.muli %624, %c2_i32_348 : i32
    %626 = arith.index_cast %625 : i32 to index
    %c32_349 = arith.constant 32 : index
    %627 = vector.load %arg16[%626, %c32_349] : memref<36x96xf32, #tpu.memory_space<vmem>>, vector<2x32xf32>
    tpu.vector_store %arg16[%626, %c32_349], %619 {strides = array<i32>} : memref<36x96xf32, #tpu.memory_space<vmem>>, vector<2x32xf32>,
    %c2_i32_350 = arith.constant 2 : i32
    %628 = arith.muli %618, %c2_i32_350 : i32
    %629 = arith.index_cast %628 : i32 to index
    %c64_351 = arith.constant 64 : index
    %630 = vector.load %arg16[%629, %c64_351] : memref<36x96xf32, #tpu.memory_space<vmem>>, vector<2x32xf32>
    tpu.vector_store %arg16[%629, %c64_351], %619 {strides = array<i32>} : memref<36x96xf32, #tpu.memory_space<vmem>>, vector<2x32xf32>,
    %c14_i32 = arith.constant 14 : i32
    %c0_352 = arith.constant 0 : index
    %c0_353 = arith.constant 0 : index
    %631 = vector.load %arg7[%c0_352, %c0_353] : memref<96x384xf32, #tpu.memory_space<vmem>>, vector<96x384xf32>
    %cst_354 = arith.constant dense<0.000000e+00> : vector<2x384xf32>
    %632 = tpu.matmul %617, %631, %cst_354 {dimension_numbers = #tpu.dot_dimension_numbers<[1], [0], [0], [1], [0, 0, 1, 1], [], []>} : vector<2x96xf32>, vector<96x384xf32>, vector<2x384xf32> -> vector<2x384xf32>
    %c2_i32_355 = arith.constant 2 : i32
    %633 = arith.muli %c14_i32, %c2_i32_355 : i32
    %634 = arith.index_cast %633 : i32 to index
    %c0_356 = arith.constant 0 : index
    %635 = vector.load %arg15[%634, %c0_356] : memref<32x384xf32, #tpu.memory_space<vmem>>, vector<2x384xf32>
    %636 = arith.addf %635, %632 : vector<2x384xf32>
    %637 = math.tanh %636 : vector<2x384xf32>
    %638 = vector.extract_strided_slice %637 {offsets = [0, 0], sizes = [2, 96], strides = [1, 1]} : vector<2x384xf32> to vector<2x96xf32>
    %cst_357 = arith.constant 5.000000e-01 : f32
    %639 = vector.broadcast %cst_357 : f32 to vector<2x96xf32>
    %640 = arith.mulf %639, %638 : vector<2x96xf32>
    %cst_358 = arith.constant 5.000000e-01 : f32
    %641 = vector.broadcast %cst_358 : f32 to vector<2x96xf32>
    %642 = arith.addf %640, %641 : vector<2x96xf32>
    %643 = vector.extract_strided_slice %637 {offsets = [0, 96], sizes = [2, 96], strides = [1, 1]} : vector<2x384xf32> to vector<2x96xf32>
    %cst_359 = arith.constant 5.000000e-01 : f32
    %644 = vector.broadcast %cst_359 : f32 to vector<2x96xf32>
    %645 = arith.mulf %644, %643 : vector<2x96xf32>
    %cst_360 = arith.constant 5.000000e-01 : f32
    %646 = vector.broadcast %cst_360 : f32 to vector<2x96xf32>
    %647 = arith.addf %645, %646 : vector<2x96xf32>
    %648 = vector.extract_strided_slice %637 {offsets = [0, 192], sizes = [2, 96], strides = [1, 1]} : vector<2x384xf32> to vector<2x96xf32>
    %649 = vector.extract_strided_slice %637 {offsets = [0, 288], sizes = [2, 96], strides = [1, 1]} : vector<2x384xf32> to vector<2x96xf32>
    %cst_361 = arith.constant 5.000000e-01 : f32
    %650 = vector.broadcast %cst_361 : f32 to vector<2x96xf32>
    %651 = arith.mulf %650, %649 : vector<2x96xf32>
    %cst_362 = arith.constant 5.000000e-01 : f32
    %652 = vector.broadcast %cst_362 : f32 to vector<2x96xf32>
    %653 = arith.addf %651, %652 : vector<2x96xf32>
    %654 = arith.mulf %647, %615 : vector<2x96xf32>
    %655 = arith.mulf %642, %648 : vector<2x96xf32>
    %656 = arith.addf %654, %655 : vector<2x96xf32>
    %657 = math.tanh %656 : vector<2x96xf32>
    %658 = arith.mulf %653, %657 : vector<2x96xf32>
    %c1_i32_363 = arith.constant 1 : i32
    %659 = arith.subi %c14_i32, %c1_i32_363 : i32
    %660 = vector.extract_strided_slice %658 {offsets = [0, 64], sizes = [2, 32], strides = [1, 1]} : vector<2x96xf32> to vector<2x32xf32>
    %c2_i32_364 = arith.constant 2 : i32
    %661 = arith.addi %659, %c2_i32_364 : i32
    %c2_i32_365 = arith.constant 2 : i32
    %662 = arith.muli %661, %c2_i32_365 : i32
    %663 = arith.index_cast %662 : i32 to index
    %c0_366 = arith.constant 0 : index
    %664 = vector.load %arg16[%663, %c0_366] : memref<36x96xf32, #tpu.memory_space<vmem>>, vector<2x32xf32>
    tpu.vector_store %arg16[%663, %c0_366], %660 {strides = array<i32>} : memref<36x96xf32, #tpu.memory_space<vmem>>, vector<2x32xf32>,
    %c1_i32_367 = arith.constant 1 : i32
    %665 = arith.addi %659, %c1_i32_367 : i32
    %c2_i32_368 = arith.constant 2 : i32
    %666 = arith.muli %665, %c2_i32_368 : i32
    %667 = arith.index_cast %666 : i32 to index
    %c32_369 = arith.constant 32 : index
    %668 = vector.load %arg16[%667, %c32_369] : memref<36x96xf32, #tpu.memory_space<vmem>>, vector<2x32xf32>
    tpu.vector_store %arg16[%667, %c32_369], %660 {strides = array<i32>} : memref<36x96xf32, #tpu.memory_space<vmem>>, vector<2x32xf32>,
    %c2_i32_370 = arith.constant 2 : i32
    %669 = arith.muli %659, %c2_i32_370 : i32
    %670 = arith.index_cast %669 : i32 to index
    %c64_371 = arith.constant 64 : index
    %671 = vector.load %arg16[%670, %c64_371] : memref<36x96xf32, #tpu.memory_space<vmem>>, vector<2x32xf32>
    tpu.vector_store %arg16[%670, %c64_371], %660 {strides = array<i32>} : memref<36x96xf32, #tpu.memory_space<vmem>>, vector<2x32xf32>,
    %c15_i32 = arith.constant 15 : i32
    %c0_372 = arith.constant 0 : index
    %c0_373 = arith.constant 0 : index
    %672 = vector.load %arg7[%c0_372, %c0_373] : memref<96x384xf32, #tpu.memory_space<vmem>>, vector<96x384xf32>
    %cst_374 = arith.constant dense<0.000000e+00> : vector<2x384xf32>
    %673 = tpu.matmul %658, %672, %cst_374 {dimension_numbers = #tpu.dot_dimension_numbers<[1], [0], [0], [1], [0, 0, 1, 1], [], []>} : vector<2x96xf32>, vector<96x384xf32>, vector<2x384xf32> -> vector<2x384xf32>
    %c2_i32_375 = arith.constant 2 : i32
    %674 = arith.muli %c15_i32, %c2_i32_375 : i32
    %675 = arith.index_cast %674 : i32 to index
    %c0_376 = arith.constant 0 : index
    %676 = vector.load %arg15[%675, %c0_376] : memref<32x384xf32, #tpu.memory_space<vmem>>, vector<2x384xf32>
    %677 = arith.addf %676, %673 : vector<2x384xf32>
    %678 = math.tanh %677 : vector<2x384xf32>
    %679 = vector.extract_strided_slice %678 {offsets = [0, 0], sizes = [2, 96], strides = [1, 1]} : vector<2x384xf32> to vector<2x96xf32>
    %cst_377 = arith.constant 5.000000e-01 : f32
    %680 = vector.broadcast %cst_377 : f32 to vector<2x96xf32>
    %681 = arith.mulf %680, %679 : vector<2x96xf32>
    %cst_378 = arith.constant 5.000000e-01 : f32
    %682 = vector.broadcast %cst_378 : f32 to vector<2x96xf32>
    %683 = arith.addf %681, %682 : vector<2x96xf32>
    %684 = vector.extract_strided_slice %678 {offsets = [0, 96], sizes = [2, 96], strides = [1, 1]} : vector<2x384xf32> to vector<2x96xf32>
    %cst_379 = arith.constant 5.000000e-01 : f32
    %685 = vector.broadcast %cst_379 : f32 to vector<2x96xf32>
    %686 = arith.mulf %685, %684 : vector<2x96xf32>
    %cst_380 = arith.constant 5.000000e-01 : f32
    %687 = vector.broadcast %cst_380 : f32 to vector<2x96xf32>
    %688 = arith.addf %686, %687 : vector<2x96xf32>
    %689 = vector.extract_strided_slice %678 {offsets = [0, 192], sizes = [2, 96], strides = [1, 1]} : vector<2x384xf32> to vector<2x96xf32>
    %690 = vector.extract_strided_slice %678 {offsets = [0, 288], sizes = [2, 96], strides = [1, 1]} : vector<2x384xf32> to vector<2x96xf32>
    %cst_381 = arith.constant 5.000000e-01 : f32
    %691 = vector.broadcast %cst_381 : f32 to vector<2x96xf32>
    %692 = arith.mulf %691, %690 : vector<2x96xf32>
    %cst_382 = arith.constant 5.000000e-01 : f32
    %693 = vector.broadcast %cst_382 : f32 to vector<2x96xf32>
    %694 = arith.addf %692, %693 : vector<2x96xf32>
    %695 = arith.mulf %688, %656 : vector<2x96xf32>
    %696 = arith.mulf %683, %689 : vector<2x96xf32>
    %697 = arith.addf %695, %696 : vector<2x96xf32>
    %698 = math.tanh %697 : vector<2x96xf32>
    %699 = arith.mulf %694, %698 : vector<2x96xf32>
    %c1_i32_383 = arith.constant 1 : i32
    %700 = arith.subi %c15_i32, %c1_i32_383 : i32
    %701 = vector.extract_strided_slice %699 {offsets = [0, 64], sizes = [2, 32], strides = [1, 1]} : vector<2x96xf32> to vector<2x32xf32>
    %c2_i32_384 = arith.constant 2 : i32
    %702 = arith.addi %700, %c2_i32_384 : i32
    %c2_i32_385 = arith.constant 2 : i32
    %703 = arith.muli %702, %c2_i32_385 : i32
    %704 = arith.index_cast %703 : i32 to index
    %c0_386 = arith.constant 0 : index
    %705 = vector.load %arg16[%704, %c0_386] : memref<36x96xf32, #tpu.memory_space<vmem>>, vector<2x32xf32>
    tpu.vector_store %arg16[%704, %c0_386], %701 {strides = array<i32>} : memref<36x96xf32, #tpu.memory_space<vmem>>, vector<2x32xf32>,
    %c1_i32_387 = arith.constant 1 : i32
    %706 = arith.addi %700, %c1_i32_387 : i32
    %c2_i32_388 = arith.constant 2 : i32
    %707 = arith.muli %706, %c2_i32_388 : i32
    %708 = arith.index_cast %707 : i32 to index
    %c32_389 = arith.constant 32 : index
    %709 = vector.load %arg16[%708, %c32_389] : memref<36x96xf32, #tpu.memory_space<vmem>>, vector<2x32xf32>
    tpu.vector_store %arg16[%708, %c32_389], %701 {strides = array<i32>} : memref<36x96xf32, #tpu.memory_space<vmem>>, vector<2x32xf32>,
    %c2_i32_390 = arith.constant 2 : i32
    %710 = arith.muli %700, %c2_i32_390 : i32
    %711 = arith.index_cast %710 : i32 to index
    %c64_391 = arith.constant 64 : index
    %712 = vector.load %arg16[%711, %c64_391] : memref<36x96xf32, #tpu.memory_space<vmem>>, vector<2x32xf32>
    tpu.vector_store %arg16[%711, %c64_391], %701 {strides = array<i32>} : memref<36x96xf32, #tpu.memory_space<vmem>>, vector<2x32xf32>,
    %c15_i32_392 = arith.constant 15 : i32
    %c0_393 = arith.constant 0 : index
    %c0_394 = arith.constant 0 : index
    %713 = vector.load %arg7[%c0_393, %c0_394] : memref<96x384xf32, #tpu.memory_space<vmem>>, vector<96x384xf32>
    %cst_395 = arith.constant dense<0.000000e+00> : vector<2x384xf32>
    %714 = tpu.matmul %699, %713, %cst_395 {dimension_numbers = #tpu.dot_dimension_numbers<[1], [0], [0], [1], [0, 0, 1, 1], [], []>} : vector<2x96xf32>, vector<96x384xf32>, vector<2x384xf32> -> vector<2x384xf32>
    %c0_396 = arith.constant 0 : index
    %c0_397 = arith.constant 0 : index
    %715 = vector.load %arg6[%c0_396, %c0_397] : memref<1x384xf32, #tpu.memory_space<vmem>>, vector<1x384xf32>
    %716 = vector.broadcast %715 : vector<1x384xf32> to vector<2x384xf32>
    %717 = arith.addf %716, %714 : vector<2x384xf32>
    %718 = math.tanh %717 : vector<2x384xf32>
    %719 = vector.extract_strided_slice %718 {offsets = [0, 0], sizes = [2, 96], strides = [1, 1]} : vector<2x384xf32> to vector<2x96xf32>
    %cst_398 = arith.constant 5.000000e-01 : f32
    %720 = vector.broadcast %cst_398 : f32 to vector<2x96xf32>
    %721 = arith.mulf %720, %719 : vector<2x96xf32>
    %cst_399 = arith.constant 5.000000e-01 : f32
    %722 = vector.broadcast %cst_399 : f32 to vector<2x96xf32>
    %723 = arith.addf %721, %722 : vector<2x96xf32>
    %724 = vector.extract_strided_slice %718 {offsets = [0, 96], sizes = [2, 96], strides = [1, 1]} : vector<2x384xf32> to vector<2x96xf32>
    %cst_400 = arith.constant 5.000000e-01 : f32
    %725 = vector.broadcast %cst_400 : f32 to vector<2x96xf32>
    %726 = arith.mulf %725, %724 : vector<2x96xf32>
    %cst_401 = arith.constant 5.000000e-01 : f32
    %727 = vector.broadcast %cst_401 : f32 to vector<2x96xf32>
    %728 = arith.addf %726, %727 : vector<2x96xf32>
    %729 = vector.extract_strided_slice %718 {offsets = [0, 192], sizes = [2, 96], strides = [1, 1]} : vector<2x384xf32> to vector<2x96xf32>
    %730 = vector.extract_strided_slice %718 {offsets = [0, 288], sizes = [2, 96], strides = [1, 1]} : vector<2x384xf32> to vector<2x96xf32>
    %cst_402 = arith.constant 5.000000e-01 : f32
    %731 = vector.broadcast %cst_402 : f32 to vector<2x96xf32>
    %732 = arith.mulf %731, %730 : vector<2x96xf32>
    %cst_403 = arith.constant 5.000000e-01 : f32
    %733 = vector.broadcast %cst_403 : f32 to vector<2x96xf32>
    %734 = arith.addf %732, %733 : vector<2x96xf32>
    %735 = arith.mulf %728, %697 : vector<2x96xf32>
    %736 = arith.mulf %723, %729 : vector<2x96xf32>
    %737 = arith.addf %735, %736 : vector<2x96xf32>
    %738 = math.tanh %737 : vector<2x96xf32>
    %739 = arith.mulf %734, %738 : vector<2x96xf32>
    %740 = vector.extract_strided_slice %739 {offsets = [0, 64], sizes = [2, 32], strides = [1, 1]} : vector<2x96xf32> to vector<2x32xf32>
    %c34 = arith.constant 34 : index
    %c0_404 = arith.constant 0 : index
    %741 = vector.load %arg16[%c34, %c0_404] : memref<36x96xf32, #tpu.memory_space<vmem>>, vector<2x32xf32>
    tpu.vector_store %arg16[%c34, %c0_404], %740 {strides = array<i32>} : memref<36x96xf32, #tpu.memory_space<vmem>>, vector<2x32xf32>,
    %c32_405 = arith.constant 32 : index
    %c32_406 = arith.constant 32 : index
    %742 = vector.load %arg16[%c32_405, %c32_406] : memref<36x96xf32, #tpu.memory_space<vmem>>, vector<2x32xf32>
    tpu.vector_store %arg16[%c32_405, %c32_406], %740 {strides = array<i32>} : memref<36x96xf32, #tpu.memory_space<vmem>>, vector<2x32xf32>,
    %c30_407 = arith.constant 30 : index
    %c64_408 = arith.constant 64 : index
    %743 = vector.load %arg16[%c30_407, %c64_408] : memref<36x96xf32, #tpu.memory_space<vmem>>, vector<2x32xf32>
    tpu.vector_store %arg16[%c30_407, %c64_408], %740 {strides = array<i32>} : memref<36x96xf32, #tpu.memory_space<vmem>>, vector<2x32xf32>,
    %c2_409 = arith.constant 2 : index
    %c0_410 = arith.constant 0 : index
    %744 = vector.load %arg16[%c2_409, %c0_410] : memref<36x96xf32, #tpu.memory_space<vmem>>, vector<32x96xf32>
    %c0_411 = arith.constant 0 : index
    %c0_412 = arith.constant 0 : index
    %745 = vector.load %arg8[%c0_411, %c0_412] : memref<96x32xf32, #tpu.memory_space<vmem>>, vector<96x32xf32>
    %cst_413 = arith.constant dense<0.000000e+00> : vector<32x32xf32>
    %746 = tpu.matmul %744, %745, %cst_413 {dimension_numbers = #tpu.dot_dimension_numbers<[1], [0], [0], [1], [0, 0, 1, 1], [], []>} : vector<32x96xf32>, vector<96x32xf32>, vector<32x32xf32> -> vector<32x32xf32>
    %c0_414 = arith.constant 0 : index
    %c0_415 = arith.constant 0 : index
    %747 = vector.load %arg9[%c0_414, %c0_415] : memref<1x32xf32, #tpu.memory_space<vmem>>, vector<1x32xf32>
    %748 = vector.broadcast %747 : vector<1x32xf32> to vector<32x32xf32>
    %749 = arith.addf %746, %748 : vector<32x32xf32>
    %cst_416 = arith.constant 0.000000e+00 : f32
    %750 = vector.broadcast %cst_416 : f32 to vector<32x32xf32>
    %751 = arith.maximumf %749, %750 : vector<32x32xf32>
    %c2_417 = arith.constant 2 : index
    %c0_418 = arith.constant 0 : index
    %752 = vector.load %arg17[%c2_417, %c0_418] : memref<36x64xf32, #tpu.memory_space<vmem>>, vector<32x32xf32>
    tpu.vector_store %arg17[%c2_417, %c0_418], %751 {strides = array<i32>} : memref<36x64xf32, #tpu.memory_space<vmem>>, vector<32x32xf32>,
    %753 = vector.extract_strided_slice %751 {offsets = [0, 0], sizes = [32, 16], strides = [1, 1]} : vector<32x32xf32> to vector<32x16xf32>
    %c0_419 = arith.constant 0 : index
    %c32_420 = arith.constant 32 : index
    %754 = vector.load %arg17[%c0_419, %c32_420] : memref<36x64xf32, #tpu.memory_space<vmem>>, vector<32x16xf32>
    tpu.vector_store %arg17[%c0_419, %c32_420], %753 {strides = array<i32>} : memref<36x64xf32, #tpu.memory_space<vmem>>, vector<32x16xf32>,
    %755 = vector.extract_strided_slice %751 {offsets = [0, 16], sizes = [32, 16], strides = [1, 1]} : vector<32x32xf32> to vector<32x16xf32>
    %c4_421 = arith.constant 4 : index
    %c48_422 = arith.constant 48 : index
    %756 = vector.load %arg17[%c4_421, %c48_422] : memref<36x64xf32, #tpu.memory_space<vmem>>, vector<32x16xf32>
    tpu.vector_store %arg17[%c4_421, %c48_422], %755 {strides = array<i32>} : memref<36x64xf32, #tpu.memory_space<vmem>>, vector<32x16xf32>,
    %c32_423 = arith.constant 32 : index
    %c32_424 = arith.constant 32 : index
    %757 = vector.load %arg17[%c32_423, %c32_424] : memref<36x64xf32, #tpu.memory_space<vmem>>, vector<2x16xf32>
    tpu.vector_store %arg17[%c32_423, %c32_424], %48 {strides = array<i32>} : memref<36x64xf32, #tpu.memory_space<vmem>>, vector<2x16xf32>,
    %c2_425 = arith.constant 2 : index
    %c48_426 = arith.constant 48 : index
    %758 = vector.load %arg17[%c2_425, %c48_426] : memref<36x64xf32, #tpu.memory_space<vmem>>, vector<2x16xf32>
    tpu.vector_store %arg17[%c2_425, %c48_426], %48 {strides = array<i32>} : memref<36x64xf32, #tpu.memory_space<vmem>>, vector<2x16xf32>,
    %c2_427 = arith.constant 2 : index
    %c0_428 = arith.constant 0 : index
    %759 = vector.load %arg17[%c2_427, %c0_428] : memref<36x64xf32, #tpu.memory_space<vmem>>, vector<32x64xf32>
    %c0_429 = arith.constant 0 : index
    %c0_430 = arith.constant 0 : index
    %760 = vector.load %arg10[%c0_429, %c0_430] : memref<64x4xf32, #tpu.memory_space<vmem>>, vector<64x4xf32>
    %cst_431 = arith.constant dense<0.000000e+00> : vector<32x4xf32>
    %761 = tpu.matmul %759, %760, %cst_431 {dimension_numbers = #tpu.dot_dimension_numbers<[1], [0], [0], [1], [0, 0, 1, 1], [], []>} : vector<32x64xf32>, vector<64x4xf32>, vector<32x4xf32> -> vector<32x4xf32>
    %c0_432 = arith.constant 0 : index
    %c0_433 = arith.constant 0 : index
    %762 = vector.load %arg11[%c0_432, %c0_433] : memref<1x4xf32, #tpu.memory_space<vmem>>, vector<1x4xf32>
    %763 = vector.broadcast %762 : vector<1x4xf32> to vector<32x4xf32>
    %764 = arith.addf %761, %763 : vector<32x4xf32>
    %765 = math.tanh %764 : vector<32x4xf32>
    %766 = vector.extract_strided_slice %765 {offsets = [0, 0], sizes = [2, 4], strides = [1, 1]} : vector<32x4xf32> to vector<2x4xf32>
    %c0_434 = arith.constant 0 : index
    %c0_435 = arith.constant 0 : index
    %767 = vector.load %arg12[%c0_434, %c0_435] : memref<2x64xf32, #tpu.memory_space<vmem>>, vector<2x4xf32>
    tpu.vector_store %arg12[%c0_434, %c0_435], %766 {strides = array<i32>} : memref<2x64xf32, #tpu.memory_space<vmem>>, vector<2x4xf32>,
    %768 = vector.extract_strided_slice %765 {offsets = [2, 0], sizes = [2, 4], strides = [1, 1]} : vector<32x4xf32> to vector<2x4xf32>
    %c0_436 = arith.constant 0 : index
    %c4_437 = arith.constant 4 : index
    %769 = vector.load %arg12[%c0_436, %c4_437] : memref<2x64xf32, #tpu.memory_space<vmem>>, vector<2x4xf32>
    tpu.vector_store %arg12[%c0_436, %c4_437], %768 {strides = array<i32>} : memref<2x64xf32, #tpu.memory_space<vmem>>, vector<2x4xf32>,
    %770 = vector.extract_strided_slice %765 {offsets = [4, 0], sizes = [2, 4], strides = [1, 1]} : vector<32x4xf32> to vector<2x4xf32>
    %c0_438 = arith.constant 0 : index
    %c8_439 = arith.constant 8 : index
    %771 = vector.load %arg12[%c0_438, %c8_439] : memref<2x64xf32, #tpu.memory_space<vmem>>, vector<2x4xf32>
    tpu.vector_store %arg12[%c0_438, %c8_439], %770 {strides = array<i32>} : memref<2x64xf32, #tpu.memory_space<vmem>>, vector<2x4xf32>,
    %772 = vector.extract_strided_slice %765 {offsets = [6, 0], sizes = [2, 4], strides = [1, 1]} : vector<32x4xf32> to vector<2x4xf32>
    %c0_440 = arith.constant 0 : index
    %c12_441 = arith.constant 12 : index
    %773 = vector.load %arg12[%c0_440, %c12_441] : memref<2x64xf32, #tpu.memory_space<vmem>>, vector<2x4xf32>
    tpu.vector_store %arg12[%c0_440, %c12_441], %772 {strides = array<i32>} : memref<2x64xf32, #tpu.memory_space<vmem>>, vector<2x4xf32>,
    %774 = vector.extract_strided_slice %765 {offsets = [8, 0], sizes = [2, 4], strides = [1, 1]} : vector<32x4xf32> to vector<2x4xf32>
    %c0_442 = arith.constant 0 : index
    %c16_443 = arith.constant 16 : index
    %775 = vector.load %arg12[%c0_442, %c16_443] : memref<2x64xf32, #tpu.memory_space<vmem>>, vector<2x4xf32>
    tpu.vector_store %arg12[%c0_442, %c16_443], %774 {strides = array<i32>} : memref<2x64xf32, #tpu.memory_space<vmem>>, vector<2x4xf32>,
    %776 = vector.extract_strided_slice %765 {offsets = [10, 0], sizes = [2, 4], strides = [1, 1]} : vector<32x4xf32> to vector<2x4xf32>
    %c0_444 = arith.constant 0 : index
    %c20_445 = arith.constant 20 : index
    %777 = vector.load %arg12[%c0_444, %c20_445] : memref<2x64xf32, #tpu.memory_space<vmem>>, vector<2x4xf32>
    tpu.vector_store %arg12[%c0_444, %c20_445], %776 {strides = array<i32>} : memref<2x64xf32, #tpu.memory_space<vmem>>, vector<2x4xf32>,
    %778 = vector.extract_strided_slice %765 {offsets = [12, 0], sizes = [2, 4], strides = [1, 1]} : vector<32x4xf32> to vector<2x4xf32>
    %c0_446 = arith.constant 0 : index
    %c24_447 = arith.constant 24 : index
    %779 = vector.load %arg12[%c0_446, %c24_447] : memref<2x64xf32, #tpu.memory_space<vmem>>, vector<2x4xf32>
    tpu.vector_store %arg12[%c0_446, %c24_447], %778 {strides = array<i32>} : memref<2x64xf32, #tpu.memory_space<vmem>>, vector<2x4xf32>,
    %780 = vector.extract_strided_slice %765 {offsets = [14, 0], sizes = [2, 4], strides = [1, 1]} : vector<32x4xf32> to vector<2x4xf32>
    %c0_448 = arith.constant 0 : index
    %c28_449 = arith.constant 28 : index
    %781 = vector.load %arg12[%c0_448, %c28_449] : memref<2x64xf32, #tpu.memory_space<vmem>>, vector<2x4xf32>
    tpu.vector_store %arg12[%c0_448, %c28_449], %780 {strides = array<i32>} : memref<2x64xf32, #tpu.memory_space<vmem>>, vector<2x4xf32>,
    %782 = vector.extract_strided_slice %765 {offsets = [16, 0], sizes = [2, 4], strides = [1, 1]} : vector<32x4xf32> to vector<2x4xf32>
    %c0_450 = arith.constant 0 : index
    %c32_451 = arith.constant 32 : index
    %783 = vector.load %arg12[%c0_450, %c32_451] : memref<2x64xf32, #tpu.memory_space<vmem>>, vector<2x4xf32>
    tpu.vector_store %arg12[%c0_450, %c32_451], %782 {strides = array<i32>} : memref<2x64xf32, #tpu.memory_space<vmem>>, vector<2x4xf32>,
    %784 = vector.extract_strided_slice %765 {offsets = [18, 0], sizes = [2, 4], strides = [1, 1]} : vector<32x4xf32> to vector<2x4xf32>
    %c0_452 = arith.constant 0 : index
    %c36_453 = arith.constant 36 : index
    %785 = vector.load %arg12[%c0_452, %c36_453] : memref<2x64xf32, #tpu.memory_space<vmem>>, vector<2x4xf32>
    tpu.vector_store %arg12[%c0_452, %c36_453], %784 {strides = array<i32>} : memref<2x64xf32, #tpu.memory_space<vmem>>, vector<2x4xf32>,
    %786 = vector.extract_strided_slice %765 {offsets = [20, 0], sizes = [2, 4], strides = [1, 1]} : vector<32x4xf32> to vector<2x4xf32>
    %c0_454 = arith.constant 0 : index
    %c40_455 = arith.constant 40 : index
    %787 = vector.load %arg12[%c0_454, %c40_455] : memref<2x64xf32, #tpu.memory_space<vmem>>, vector<2x4xf32>
    tpu.vector_store %arg12[%c0_454, %c40_455], %786 {strides = array<i32>} : memref<2x64xf32, #tpu.memory_space<vmem>>, vector<2x4xf32>,
    %788 = vector.extract_strided_slice %765 {offsets = [22, 0], sizes = [2, 4], strides = [1, 1]} : vector<32x4xf32> to vector<2x4xf32>
    %c0_456 = arith.constant 0 : index
    %c44_457 = arith.constant 44 : index
    %789 = vector.load %arg12[%c0_456, %c44_457] : memref<2x64xf32, #tpu.memory_space<vmem>>, vector<2x4xf32>
    tpu.vector_store %arg12[%c0_456, %c44_457], %788 {strides = array<i32>} : memref<2x64xf32, #tpu.memory_space<vmem>>, vector<2x4xf32>,
    %790 = vector.extract_strided_slice %765 {offsets = [24, 0], sizes = [2, 4], strides = [1, 1]} : vector<32x4xf32> to vector<2x4xf32>
    %c0_458 = arith.constant 0 : index
    %c48_459 = arith.constant 48 : index
    %791 = vector.load %arg12[%c0_458, %c48_459] : memref<2x64xf32, #tpu.memory_space<vmem>>, vector<2x4xf32>
    tpu.vector_store %arg12[%c0_458, %c48_459], %790 {strides = array<i32>} : memref<2x64xf32, #tpu.memory_space<vmem>>, vector<2x4xf32>,
    %792 = vector.extract_strided_slice %765 {offsets = [26, 0], sizes = [2, 4], strides = [1, 1]} : vector<32x4xf32> to vector<2x4xf32>
    %c0_460 = arith.constant 0 : index
    %c52_461 = arith.constant 52 : index
    %793 = vector.load %arg12[%c0_460, %c52_461] : memref<2x64xf32, #tpu.memory_space<vmem>>, vector<2x4xf32>
    tpu.vector_store %arg12[%c0_460, %c52_461], %792 {strides = array<i32>} : memref<2x64xf32, #tpu.memory_space<vmem>>, vector<2x4xf32>,
    %794 = vector.extract_strided_slice %765 {offsets = [28, 0], sizes = [2, 4], strides = [1, 1]} : vector<32x4xf32> to vector<2x4xf32>
    %c0_462 = arith.constant 0 : index
    %c56_463 = arith.constant 56 : index
    %795 = vector.load %arg12[%c0_462, %c56_463] : memref<2x64xf32, #tpu.memory_space<vmem>>, vector<2x4xf32>
    tpu.vector_store %arg12[%c0_462, %c56_463], %794 {strides = array<i32>} : memref<2x64xf32, #tpu.memory_space<vmem>>, vector<2x4xf32>,
    %796 = vector.extract_strided_slice %765 {offsets = [30, 0], sizes = [2, 4], strides = [1, 1]} : vector<32x4xf32> to vector<2x4xf32>
    %c0_464 = arith.constant 0 : index
    %c60 = arith.constant 60 : index
    %797 = vector.load %arg12[%c0_464, %c60] : memref<2x64xf32, #tpu.memory_space<vmem>>, vector<2x4xf32>
    tpu.vector_store %arg12[%c0_464, %c60], %796 {strides = array<i32>} : memref<2x64xf32, #tpu.memory_space<vmem>>, vector<2x4xf32>,
    return
  }
}

</mosaic_0001>

<bundles_post_ra>
// kernel: forward.1
= control target key start
LH: loop header
LB: loop body
LE: loop exit
PB: predicated region body
PF: predicated region fallthrough
CT: control target
= control target key end

     0   :  { %17 = vsyncpa [#allocation8], 0  ;;  %s5538_s0 = inlined_call_operand.vmem [shape: f32[2,64], index: 0, kind: input, shape index: {}]   ;;  %s5539_s1 = inlined_call_operand.vmem [shape: f32[12,32], index: 1, kind: input, shape index: {}]   ;;  %s5540_s2 = inlined_call_operand.vmem [shape: f32[1,32], index: 2, kind: input, shape index: {}]   ;;  %s5541_s3 = inlined_call_operand.vmem [shape: f32[80,32], index: 3, kind: input, shape index: {}]   ;;  %s5542_s4 = inlined_call_operand.vmem [shape: f32[1,32], index: 4, kind: input, shape index: {}]   ;;  %s5543_s5 = inlined_call_operand.vmem [shape: f32[32,384], index: 5, kind: input, shape index: {}]   ;;  %s5544_s6 = inlined_call_operand.vmem [shape: f32[1,384], index: 6, kind: input, shape index: {}]   ;;  %s5545_s7 = inlined_call_operand.hbm [shape: f32[96,384], index: 7, kind: input, shape index: {}]   ;;  %s5546_s8 = inlined_call_operand.vmem [shape: f32[96,32], index: 8, kind: input, shape index: {}]   ;;  %s5547_s9 = inlined_call_operand.vmem [shape: f32[1,32], index: 9, kind: input, shape index: {}]   ;;  %s5548_s10 = inlined_call_operand.vmem [shape: f32[64,4], index: 10, kind: input, shape index: {}]   ;;  %s5549_s11 = inlined_call_operand.vmem [shape: f32[1,4], index: 11, kind: input, shape index: {}]   ;;  %s5550_s12 = inlined_call_operand.hbm [shape: f32[2,64], index: 12, kind: output, shape index: {}]  }
   0x1   :  { %18 = vsyncpa [#allocation9], 0  ;;  %s37_s23 = sshll.u32 %s5545_s7, 4  ;;  %s3846_s24 = smov [#allocation7]   ;;  %s38_s23 = int_to_ptr.hbm [resolvable:$true] %s37_s23 }
   0x2   :  { %s39_s25 = sshll.u32 %s3846_s24, 4  ;;  %s3847_s26 = smov 384   ;;  %s40_s25 = int_to_ptr.vmem [resolvable:$true] %s39_s25 }
   0x3   :  { %s3848_s27 = smov 24  }
   0x4   :  { %45 = dma.hbm_to_vmem [thread:$0]  %s38_s23, 4608, %s40_s25, [#allocation8], %s3847_s26, %s3847_s26, %s3848_s27  }
   0x5   :  { %3842 = dma.done.wait [#allocation8], 4608  }
   0x6   :  { %3843 = vsyncadd [#allocation8], 4294962688  ;;  %v58_v0 = vld [vmem:[%s5538_s0] sm:$0x3]  ;;  %s3849_s14 = smov 4   ;;  %s3850_s7 = smov 120  }
   0x7   :  { %v74_v1 = vld [vmem:[%s5538_s0] sm:$0x3]  ;;  %60 = vrot.lane.b32.xlu0 %v58_v0, %s3849_s14  ;;  %s3851_s17 = smov 112   ;;  %s3852_s24 = smov 124   ;;  %vm66_vm0 = vcmask 91136   ;;  %vm180_vm1 = vcmask 1043456  }
   0x8   :  { %76 = vrot.lane.b32.xlu1 %v74_v1, %s3850_s7  ;;  %v86_v2 = vld [vmem:[%s5538_s0] sm:$0x3]  ;;  %s3853_s25 = smov 116   ;;  %s3854_s26 = smov 108   ;;  %v162_v8 = vld [vmem:[%s5539_s1 + $0x8] sm:$0xf] }
   0x9   :  { %88 = vrot.lane.b32.xlu2 %v86_v2, %s3851_s17  ;;  %v68_v3 = vld [vmem:[%s5538_s0] sm:$0x3]  ;;  %s3855_s30 = smov 104   ;;  %3498 = vmatpush.msk.msra.mxu0 %vm180_vm1, %v162_v8  ;;  %vm63_vm2 = vcmask 91168   ;;  %vm153_vm3 = vcmask 25600   ;;  %v3856_v14 = vmov 0.0  }
   0xa   :  { %v80_v4 = vld [vmem:[%s5538_s0] sm:$0x3]  ;;  %3576 = vmatpush.msk.msra.mxu2 %vm180_vm1, %v162_v8  ;;  %vm167_vm4 = vcmask 97280   ;;  %vm217_vm5 = vcmask 261120   ;;  %s3857_s20 = smov 64   ;;  %s3858_s21 = smov 32  }
   0xb   :  { %v92_v5 = vld [vmem:[%s5538_s0] sm:$0x3]  ;;  %v277_v27 = vld [vmem:[%s5541_s3 + $0x48] sm:$0xff]  ;;  %s3859_s28 = smov 96   ;;  %vm260_vm6 = vcmask 254976   ;;  %v275_v30 = vld [vmem:[%s5541_s3 + $0x38] sm:$0xff] }
   0xc   :  { %v98_v6 = vld [vmem:[%s5538_s0] sm:$0x3]  ;;  %301 = vmatpush.msra.mxu1 %v277_v27  ;;  %459 = vst.msk [vmem:[#allocation5 + $0x2] sm:$0x3] %vm260_vm6, %v3856_v14  ;;  %v274_v31 = vld [vmem:[%s5541_s3 + $0x30] sm:$0xff]  ;;  %v273_v32 = vld [vmem:[%s5541_s3 + $0x28] sm:$0xff] }
   0xd   :  { %v65_v7 = vld [vmem:[%s5538_s0] sm:$0x3]  ;;  %s3860_s23 = smov 72   ;;  %v271_v36 = vld [vmem:[%s5541_s3 + $0x18] sm:$0xff]  ;;  %v270_v37 = vld [vmem:[%s5541_s3 + $0x10] sm:$0xff]  ;;  %s3863_s22 = smov 84  }
   0xe   :  { %v161_v9 = vld [vmem:[%s5539_s1] sm:$0xff]  ;;  %67 = vst.msk [vmem:[#allocation2 + $0x2] sm:$0x3] %vm66_vm0, %v65_v7  ;;  %v269_v40 = vld [vmem:[%s5541_s3 + $0x8] sm:$0xff]  ;;  %vm238_vm7 = vcmask 523520   ;;  %vm255_vm8 = vcmask 654848  }
   0xf   :  { %70 = vrot.lane.b32.xlu0 %v68_v3, %s3852_s24  ;;  %199 = vmatpush.msra.mxu0 %v161_v9  ;;  %v3994_v20 = vld [vmem:[%s5540_s2] ss:$0 sm:$0xff]  ;;  %s3861_s24 = smov 92   ;;  %s3862_s2 = smov 76   ;;  %vm282_vm9 = vcmask 654336   ;;  %v337_v51 = vld [vmem:[%s5543_s5 + $0x48] sm:$0xff] }
  0x10   :  { %82 = vrot.lane.b32.xlu1 %v80_v4, %s3853_s25  ;;  %3577 = vmatpush.msra.mxu2 %v161_v9  ;;  %v276_v28 = vld [vmem:[%s5541_s3 + $0x40] sm:$0xff]  ;;  %s3864_s25 = smov 100   ;;  %s3866_s7 = smov 80   ;;  %v338_v52 = vld [vmem:[%s5543_s5 + $0x50] sm:$0xff]  ;;  %v339_v53 = vld [vmem:[%s5543_s5 + $0x58] sm:$0xff]  ;;  %vm151_vm10 = vcmask 58368  }
  0x11   :  { %94 = vrot.lane.b32.xlu2 %v92_v5, %s3854_s26  ;;  %v110_v29 = vld [vmem:[%s5538_s0] sm:$0x3]  ;;  %302 = vmatpush.msra.mxu1 %v276_v28  ;;  %vm155_vm11 = vcmask 91200   ;;  %v334_v63 = vld [vmem:[%s5543_s5 + $0x30] sm:$0xff]  ;;  %v335_v0 = vld [vmem:[%s5543_s5 + $0x38] sm:$0xff]  ;;  %vm262_vm12 = vcmask 648704  }
  0x12   :  { %v146_v33 = vld [vmem:[%s5538_s0] sm:$0x3]  ;;  %372 = vmatpush.msrb.mxu2 %v337_v51  ;;  %401 = vmatpush.msra.mxu3 %v338_v52  ;;  %v331_v2 = vld [vmem:[%s5543_s5 + $0x18] sm:$0xff]  ;;  %v333_v4 = vld [vmem:[%s5543_s5 + $0x28] sm:$0xff]  ;;  %vm487_vm13 = vcmask 523264   ;;  %vm557_vm15 = vcmask 785408  }
  0x13   :  { %303 = vmatpush.msra.mxu1 %v275_v30  ;;  %v116_v34 = vld [vmem:[%s5538_s0] sm:$0x3]  ;;  %430 = vmatpush.msrb.mxu0 %v339_v53  ;;  %v330_v7 = vld [vmem:[%s5543_s5 + $0x10] sm:$0xff]  ;;  %vm687_vm1 = vcmask 519426   ;;  %s3876_s26 = smov 52  }
  0x14   :  { %v272_v35 = vld [vmem:[%s5541_s3 + $0x20] sm:$0xff]  ;;  %373 = vmatpush.msrb.mxu2 %v334_v63  ;;  %402 = vmatpush.msra.mxu3 %v335_v0 }
  0x15   :  { %304 = vmatpush.msra.mxu1 %v274_v31  ;;  %v140_v38 = vld [vmem:[%s5538_s0] sm:$0x3] }
  0x16   :  { %v128_v39 = vld [vmem:[%s5538_s0] sm:$0x3]  ;;  %374 = vmatpush.msrb.mxu2 %v331_v2 }
  0x17   :  { %100 = vrot.lane.b32.xlu0 %v98_v6, %s3855_s30  ;;  %305 = vmatpush.msra.mxu1 %v273_v32  ;;  %v268_v41 = vld [vmem:[%s5541_s3] sm:$0xff]  ;;  %s3865_s3 = smov 88   ;;  %v329_v6 = vld [vmem:[%s5543_s5 + $0x8] sm:$0xff]  ;;  %s3488_s30 = sshll.u32 %s5550_s12, 4  ;;  %s3489_s30 = int_to_ptr.hbm [resolvable:$true] %s3488_s30 }
  0x18   :  { %v104_v43 = vld [vmem:[%s5538_s0] sm:$0x3] }
  0x19   :  { %306 = vmatpush.msra.mxu1 %v272_v35  ;;  %v122_v44 = vld [vmem:[%s5538_s0] sm:$0x3] }
  0x1a   :  { %v134_v45 = vld [vmem:[%s5538_s0] sm:$0x3] }
  0x1b   :  { %307 = vmatpush.msra.mxu1 %v271_v36  ;;  %v336_v1 = vld [vmem:[%s5543_s5 + $0x40] sm:$0xff] }
  0x1c   :  { %431 = vmatpush.msrb.mxu0 %v336_v1  ;;  %v332_v3 = vld [vmem:[%s5543_s5 + $0x20] sm:$0xff] }
  0x1d   :  { %308 = vmatpush.msra.mxu1 %v270_v37  ;;  %403 = vmatpush.msra.mxu3 %v332_v3  ;;  %v328_v5 = vld [vmem:[%s5543_s5] sm:$0xff] }
  0x1e   :  { %432 = vmatpush.msrb.mxu0 %v333_v4  ;;  %375 = vmatpush.msrb.mxu2 %v328_v5  ;;  %v4117_v8 = vld [vmem:[%s5542_s4] ss:$0 sm:$0xff] }
  0x1f   :  { %309 = vmatpush.msra.mxu1 %v269_v40  ;;  %404 = vmatpush.msra.mxu3 %v329_v6 }
  0x20   :  { %433 = vmatpush.msrb.mxu0 %v330_v7 }
  0x21   :  { %310 = vmatpush.msra.mxu1 %v268_v41 }
  0x63   :  { %v89_v10 = vpop.permute.xlu2 %88 }
  0x64   :  { %91 = vst.msk [vmem:[#allocation2 + $0xa] sm:$0x3] %vm66_vm0, %v89_v10 }
  0x6b   :  { %v95_v11 = vpop.permute.xlu2 %94 }
  0x6c   :  { %97 = vst.msk [vmem:[#allocation2 + $0xc] sm:$0x3] %vm66_vm0, %v95_v11 }
  0x79   :  { %v61_v12 = vpop.permute.xlu0 %60 }
  0x7a   :  { %v77_v13 = vpop.permute.xlu1 %76  ;;  %64 = vst.msk [vmem:[#allocation2] sm:$0x3] %vm63_vm2, %v61_v12  ;;  %vm460_vm2 = vcmask 779776  }
  0x7b   :  { %154 = vst.msk [vmem:[#allocation2] sm:$0x3] %vm153_vm3, %v3856_v14 }
  0x7c   :  { %79 = vst.msk [vmem:[#allocation2 + $0x6] sm:$0x3] %vm66_vm0, %v77_v13 }
  0x7d   :  { %461 = vst.msk [vmem:[#allocation5 + $0x20] sm:$0x3] %vm460_vm2, %v3856_v14 }
  0x81   :  { %v71_v15 = vpop.permute.xlu0 %70 }
  0x82   :  { %v83_v16 = vpop.permute.xlu1 %82  ;;  %73 = vst.msk [vmem:[#allocation2 + $0x4] sm:$0x3] %vm66_vm0, %v71_v15 }
  0x83   :  { %85 = vst.msk [vmem:[#allocation2 + $0x8] sm:$0x3] %vm66_vm0, %v83_v16 }
  0x89   :  { %v101_v17 = vpop.permute.xlu0 %100  ;;  %v157_v18 = vld [vmem:[#allocation2] sm:$0xff] }
  0x8a   :  { %103 = vst.msk [vmem:[#allocation2 + $0xe] sm:$0x3] %vm66_vm0, %v101_v17  ;;  %3499 = vmatmul.msk.f32.vlgmr.msra.gmra.mxu0 %vm167_vm4, %v157_v18 }
  0x91   :  { %v158_v19 = vld [vmem:[#allocation2 + $0x8] sm:$0xff] }
  0x92   :  { %3500 = vmatmul.msk.f32.gmra.mxu0 %vm167_vm4, %v158_v19  ;;  %v340_v19 = vld [vmem:[%s5544_s6] sm:$0x7] }
 0x107   :  { %v201_v21 = vpop.f32.mrf.mxu0 }
 0x108   :  { %v202_v22 = vadd.f32 %v3994_v20, %v201_v21  ;;  %v4132_v21 = vperm.slane %v340_v19, 2 }
 0x10a   :  { %v213_v23 = vmax.f32 %v202_v22, 0.0 }
 0x10c   :  { %218 = vst.msk [vmem:[#allocation3 + $0x4] sm:$0xff] %vm217_vm5, %v213_v23  ;;  %243 = vrot.lane.b32.xlu0 %v213_v23, %s3857_s20  ;;  %226 = vrot.lane.b32.xlu1 %v213_v23, %s3858_s21 }
 0x10f   :  { %v204_v24 = vpop.f32.mrf.mxu0 }
 0x110   :  { %v205_v25 = vadd.f32 %v3994_v20, %v204_v24  ;;  %v4135_v24 = vperm.slane %v340_v19, 0 }
 0x112   :  { %v214_v26 = vmax.f32 %v205_v25, 0.0  ;;  %v4137_v25 = vperm.slane %v340_v19, 1  ;;  %v4198_v19 = vld [vmem:[#allocation7 + $0xc8] sm:$0xff] }
 0x114   :  { %219 = vst.msk [vmem:[#allocation3 + $0xc] sm:$0xff] %vm217_vm5, %v214_v26  ;;  %245 = vrot.lane.b32.xlu1 %v214_v26, %s3857_s20  ;;  %228 = vrot.lane.b32.xlu2 %v214_v26, %s3858_s21 }
 0x115   :  { %112 = vrot.lane.b32.xlu0 %v110_v29, %s3859_s28 }
 0x11c   :  { %118 = vrot.lane.b32.xlu1 %v116_v34, %s3861_s24  ;;  %106 = vrot.lane.b32.xlu2 %v104_v43, %s3864_s25  ;;  %s3872_s24 = smov 36   ;;  %s3874_s25 = smov 48  }
 0x11d   :  { %148 = vrot.lane.b32.xlu0 %v146_v33, %s3860_s23  ;;  %s3868_s23 = smov 12  }
 0x124   :  { %130 = vrot.lane.b32.xlu1 %v128_v39, %s3863_s22  ;;  %124 = vrot.lane.b32.xlu2 %v122_v44, %s3865_s3  ;;  %s3867_s22 = smov 8  }
 0x125   :  { %142 = vrot.lane.b32.xlu0 %v140_v38, %s3862_s2 }
 0x12c   :  { %136 = vrot.lane.b32.xlu2 %v134_v45, %s3866_s7 }
 0x16e   :  { %v229_v42 = vpop.permute.xlu2 %228 }
 0x16f   :  { %240 = vst.msk [vmem:[#allocation3 + $0xa] sm:$0xff] %vm238_vm7, %v229_v42 }
 0x176   :  { %v107_v54 = vpop.permute.xlu2 %106 }
 0x177   :  { %109 = vst.msk [vmem:[#allocation2 + $0x10] sm:$0x3] %vm66_vm0, %v107_v54 }
 0x17e   :  { %v227_v46 = vpop.permute.xlu1 %226  ;;  %v244_v47 = vpop.permute.xlu0 %243 }
 0x17f   :  { %239 = vst.msk [vmem:[#allocation3 + $0x2] sm:$0xff] %vm238_vm7, %v227_v46  ;;  %v125_v55 = vpop.permute.xlu2 %124 }
 0x180   :  { %256 = vst.msk [vmem:[#allocation3] sm:$0xff] %vm255_vm8, %v244_v47 }
 0x181   :  { %261 = vst.msk [vmem:[#allocation3 + $0x2] sm:$0x3] %vm260_vm6, %v3856_v14 }
 0x182   :  { %127 = vst.msk [vmem:[#allocation2 + $0x16] sm:$0x3] %vm66_vm0, %v125_v55 }
 0x186   :  { %v246_v48 = vpop.permute.xlu1 %245 }
 0x187   :  { %257 = vst.msk [vmem:[#allocation3 + $0x8] sm:$0xff] %vm255_vm8, %v246_v48  ;;  %v113_v50 = vpop.permute.xlu0 %112  ;;  %v137_v58 = vpop.permute.xlu2 %136  ;;  %v462_v48 = vlaneseq }
 0x188   :  { %115 = vst.msk [vmem:[#allocation2 + $0x12] sm:$0x3] %vm66_vm0, %v113_v50 }
 0x189   :  { %139 = vst.msk [vmem:[#allocation2 + $0x1a] sm:$0x3] %vm66_vm0, %v137_v58 }
 0x18e   :  { %v264_v49 = vld [vmem:[#allocation3 + $0x2] sm:$0xff]  ;;  %v119_v56 = vpop.permute.xlu1 %118 }
 0x18f   :  { %3503 = vmatmul.msk.f32.vlgmr.msra.gmra.mxu1 %vm282_vm9, %v264_v49  ;;  %v149_v57 = vpop.permute.xlu0 %148  ;;  %121 = vst.msk [vmem:[#allocation2 + $0x14] sm:$0x3] %vm66_vm0, %v119_v56  ;;  %v463_v49 = vand.u32 127, %v462_v48 }
 0x190   :  { %152 = vst.msk [vmem:[#allocation2 + $0x1e] sm:$0x3] %vm151_vm10, %v149_v57  ;;  %vm862_vm10 = vcmask 521476  }
 0x191   :  { %156 = vst.msk [vmem:[#allocation2 + $0x1e] sm:$0x3] %vm155_vm11, %v3856_v14  ;;  %vm464_vm14 = vcmp.lt.s32.totalorder %v463_v49, 64  ;;  %vm1042_vm11 = vcmask 785926  }
 0x192   :  { %v3519_v50 = vsel %vm464_vm14, 1.0, %v3856_v14  ;;  %vm692_vm14 = vcmask 781826  }
 0x196   :  { %v131_v59 = vpop.permute.xlu1 %130  ;;  %v159_v61 = vld [vmem:[#allocation2 + $0x10] sm:$0xff] }
 0x197   :  { %v143_v60 = vpop.permute.xlu0 %142  ;;  %133 = vst.msk [vmem:[#allocation2 + $0x18] sm:$0x3] %vm66_vm0, %v131_v59  ;;  %3501 = vmatmul.msk.f32.gmra.mxu0 %vm167_vm4, %v159_v61 }
 0x198   :  { %145 = vst.msk [vmem:[#allocation2 + $0x1c] sm:$0x3] %vm66_vm0, %v143_v60  ;;  %vm682_vm0 = vcmask 257026  }
 0x19f   :  { %v160_v62 = vld [vmem:[#allocation2 + $0x18] sm:$0xff] }
 0x1a0   :  { %3502 = vmatmul.msk.f32.vlgmr.msra.gmra.mxu2 %vm167_vm4, %v160_v62  ;;  %vm1032_vm4 = vcmask 261126  }
 0x20c   :  { %v312_v9 = vpop.f32.mrf.mxu1 }
 0x20d   :  { %v313_v10 = vadd.f32 %v4117_v8, %v312_v9 }
 0x20f   :  { %v324_v11 = vmax.f32 %v313_v10, 0.0 }
 0x211   :  { %3507 = vmatmul.msk.f32.vlgmr.msrb.gmra.mxu2 %vm217_vm5, %v324_v11  ;;  %3511 = vmatmul.msk.f32.vlgmr.msra.gmra.mxu3 %vm217_vm5, %v324_v11 }
 0x212   :  { %3515 = vmatmul.msk.f32.vlgmr.msrb.gmra.mxu0 %vm217_vm5, %v324_v11 }
 0x214   :  { %v207_v12 = vpop.f32.mrf.mxu0 }
 0x215   :  { %v208_v13 = vadd.f32 %v3994_v20, %v207_v12 }
 0x217   :  { %v215_v15 = vmax.f32 %v208_v13, 0.0 }
 0x219   :  { %220 = vst.msk [vmem:[#allocation3 + $0x14] sm:$0xff] %vm217_vm5, %v215_v15  ;;  %230 = vrot.lane.b32.xlu0 %v215_v15, %s3858_s21 }
 0x223   :  { %v210_v16 = vpop.f32.mrf.mxu2 }
 0x224   :  { %v211_v17 = vadd.f32 %v3994_v20, %v210_v16  ;;  %v4190_v16 = vld [vmem:[#allocation7 + $0xe0] sm:$0xff] }
 0x226   :  { %v216_v18 = vmax.f32 %v211_v17, 0.0  ;;  %v4192_v17 = vld [vmem:[#allocation7 + $0x108] sm:$0xff] }
 0x227   :  { %564 = vmatpush.msra.mxu2 %v4192_v17 }
 0x228   :  { %221 = vst.msk [vmem:[#allocation3 + $0x1c] sm:$0xff] %vm217_vm5, %v216_v18  ;;  %249 = vrot.lane.b32.xlu0 %v216_v18, %s3857_s20 }
 0x28b   :  { %v231_v33 = vpop.permute.xlu0 %230 }
 0x28c   :  { %241 = vst.msk [vmem:[#allocation3 + $0x12] sm:$0xff] %vm238_vm7, %v231_v33  ;;  %v4235_v33 = vld [vmem:[#allocation7 + $0xd0] sm:$0xff] }
 0x28f   :  { %v435_v22 = vpop.f32.mrf.mxu0 }
 0x290   :  { %v436_v23 = vadd.f32 %v435_v22, %v4132_v21  ;;  %v4200_v22 = vld [vmem:[#allocation7 + $0xd8] sm:$0xff] }
 0x292   :  { %449 = vst [vmem:[#allocation4 + $0x58] sm:$0xff] %v436_v23  ;;  %v4205_v23 = vld [vmem:[#allocation7 + $0x118] sm:$0xff] }
 0x293   :  { %779 = vmatpush.msra.mxu0 %v4205_v23 }
 0x294   :  { %v377_v20 = vpop.f32.mrf.mxu2  ;;  %v406_v26 = vpop.f32.mrf.mxu3 }
 0x295   :  { %v378_v27 = vadd.f32 %v377_v20, %v4135_v24  ;;  %v407_v28 = vadd.f32 %v406_v26, %v4137_v25  ;;  %v4207_v20 = vld [vmem:[#allocation7 + $0xb0] sm:$0xff]  ;;  %v4209_v26 = vld [vmem:[#allocation7 + $0xc0] sm:$0xff] }
 0x297   :  { %447 = vst [vmem:[#allocation4 + $0x30] sm:$0xff] %v378_v27  ;;  %v4215_v27 = vld [vmem:[#allocation7 + $0x100] sm:$0xff] }
 0x298   :  { %448 = vst [vmem:[#allocation4] sm:$0xff] %v407_v28  ;;  %v4217_v28 = vld [vmem:[#allocation7 + $0x98] sm:$0xff]  ;;  %780 = vmatpush.msra.mxu0 %v4215_v27 }
 0x299   :  { %v469_v29 = vld [vmem:[#allocation4 + $0x58] sm:$0x3] }
 0x29a   :  { %3616 = vtanh.f32 %v469_v29  ;;  %v250_v36 = vpop.permute.xlu0 %249  ;;  %v4219_v29 = vld [vmem:[#allocation7 + $0xa8] sm:$0xff] }
 0x29e   :  { %v467_v37 = vld [vmem:[#allocation4 + $0x30] sm:$0x3] }
 0x29f   :  { %v468_v30 = vld [vmem:[#allocation4] sm:$0x3] }
 0x2a0   :  { %v4141_v31 = vpop.eup %3616  ;;  %3618 = vtanh.f32 %v468_v30  ;;  %v4225_v30 = vld [vmem:[#allocation7 + $0xe8] sm:$0xff] }
 0x2a1   :  { %485 = vrot.lane.b32.xlu2 %v4141_v31, %s3857_s20  ;;  %3620 = vtanh.f32 %v467_v37  ;;  %v477_v5 = vmul.f32 0.5, %v4141_v31  ;;  %v4227_v31 = vld [vmem:[#allocation7 + $0x80] sm:$0xff]  ;;  %781 = vmatpush.msra.mxu0 %v4225_v30  ;;  %v4247_v37 = vld [vmem:[#allocation7 + $0x50] sm:$0xff] }
 0x2a3   :  { %v478_v7 = vadd.f32 0.5, %v477_v5  ;;  %782 = vmatpush.msra.mxu0 %v4235_v33 }
 0x2a6   :  { %v3619_v32 = vpop.eup %3618 }
 0x2a7   :  { %483 = vrot.lane.b32.xlu1 %v3619_v32, %s3857_s20  ;;  %v3621_v38 = vpop.eup %3620  ;;  %v475_v51 = vmul.f32 0.5, %v3619_v32  ;;  %v4229_v32 = vld [vmem:[#allocation7 + $0x90] sm:$0xff] }
 0x2a8   :  { %v473_v39 = vmul.f32 0.5, %v3621_v38  ;;  %v4249_v38 = vld [vmem:[#allocation7 + $0x60] sm:$0xff] }
 0x2a9   :  { %232 = vrot.lane.b32.xlu2 %v216_v18, %s3858_s21  ;;  %v476_v52 = vadd.f32 0.5, %v475_v51  ;;  %v4196_v18 = vld [vmem:[#allocation7 + $0xf0] sm:$0xff]  ;;  %v4280_v51 = vld [vmem:[#allocation7 + $0x18] sm:$0xff] }
 0x2aa   :  { %v474_v41 = vadd.f32 0.5, %v473_v39  ;;  %565 = vmatpush.msra.mxu2 %v4196_v18 }
 0x2ab   :  { %v480_v53 = vmul.f32 0.0, %v476_v52 }
 0x2ac   :  { %v479_v54 = vmul.f32 0.0, %v474_v41  ;;  %566 = vmatpush.msra.mxu2 %v4200_v22 }
 0x2ae   :  { %567 = vmatpush.msra.mxu2 %v4209_v26 }
 0x2af   :  { %247 = vrot.lane.b32.xlu1 %v215_v15, %s3857_s20  ;;  %v4186_v15 = vld [vmem:[#allocation7 + $0xf8] sm:$0xff] }
 0x2b0   :  { %568 = vmatpush.msra.mxu2 %v4219_v29 }
 0x2b2   :  { %569 = vmatpush.msra.mxu2 %v4229_v32 }
 0x2fb   :  { %v486_v34 = vpop.permute.xlu2 %485 }
 0x303   :  { %v233_v35 = vpop.permute.xlu2 %232 }
 0x304   :  { %242 = vst.msk [vmem:[#allocation3 + $0x1a] sm:$0xff] %vm238_vm7, %v233_v35  ;;  %v4239_v35 = vld [vmem:[#allocation7 + $0x78] sm:$0xff]  ;;  %vm1202_vm7 = vcmask 517376  }
 0x305   :  { %263 = vst.msk [vmem:[#allocation3 + $0x20] sm:$0x3] %vm262_vm12, %v3856_v14  ;;  %570 = vmatpush.msra.mxu2 %v4239_v35  ;;  %vm867_vm12 = vcmask 783876  }
 0x306   :  { %259 = vst.msk [vmem:[#allocation3 + $0x18] sm:$0xff] %vm255_vm8, %v250_v36  ;;  %v4245_v36 = vld [vmem:[#allocation7 + $0xb8] sm:$0xff] }
 0x307   :  { %783 = vmatpush.msra.mxu0 %v4245_v36  ;;  %571 = vmatpush.msra.mxu2 %v4249_v38 }
 0x30d   :  { %v267_v47 = vld [vmem:[#allocation3 + $0x1a] sm:$0xff] }
 0x319   :  { %v484_v40 = vpop.permute.xlu1 %483 }
 0x31a   :  { %v488_v42 = vsel %vm487_vm13, %v484_v40, %v486_v34  ;;  %v4237_v34 = vld [vmem:[#allocation7 + $0x68] sm:$0xff]  ;;  %v4255_v40 = vld [vmem:[#allocation7 + $0xa0] sm:$0xff] }
 0x31b   :  { %v490_v43 = vmul.f32 %v488_v42, %v474_v41  ;;  %v4258_v42 = vld [vmem:[#allocation7 + $0x38] sm:$0xff]  ;;  %784 = vmatpush.msra.mxu0 %v4255_v40 }
 0x31d   :  { %492 = vrot.lane.b32.xlu1 %v490_v43, %s3859_s28  ;;  %v4260_v43 = vld [vmem:[#allocation7 + $0x48] sm:$0xff] }
 0x31e   :  { %572 = vmatpush.msra.mxu2 %v4260_v43 }
 0x321   :  { %v248_v44 = vpop.permute.xlu1 %247 }
 0x322   :  { %258 = vst.msk [vmem:[#allocation3 + $0x10] sm:$0xff] %vm255_vm8, %v248_v44  ;;  %v4266_v44 = vld [vmem:[#allocation7 + $0x88] sm:$0xff]  ;;  %vm857_vm8 = vcmask 259076  }
 0x323   :  { %785 = vmatpush.msra.mxu0 %v4266_v44 }
 0x325   :  { %509 = vrot.lane.b32.xlu1 %v3519_v50, %s3858_s21 }
 0x329   :  { %v265_v45 = vld [vmem:[#allocation3 + $0xa] sm:$0xff]  ;;  %v266_v46 = vld [vmem:[#allocation3 + $0x12] sm:$0xff] }
 0x32a   :  { %3504 = vmatmul.msk.f32.gmra.mxu1 %vm282_vm9, %v265_v45  ;;  %v4268_v45 = vld [vmem:[#allocation7 + $0x20] sm:$0xff] }
 0x332   :  { %3505 = vmatmul.msk.f32.gmra.mxu1 %vm282_vm9, %v266_v46  ;;  %v4270_v46 = vld [vmem:[#allocation7 + $0x30] sm:$0xff] }
 0x333   :  { %573 = vmatpush.msra.mxu2 %v4270_v46 }
 0x335   :  { %574 = vmatpush.msra.mxu2 %v4280_v51 }
 0x33a   :  { %3506 = vmatmul.msk.f32.gmra.mxu1 %vm282_vm9, %v267_v47  ;;  %v4276_v47 = vld [vmem:[#allocation7 + $0x70] sm:$0xff]  ;;  %vm1037_vm9 = vcmask 523526  }
 0x33b   :  { %786 = vmatpush.msra.mxu0 %v4276_v47 }
 0x38f   :  { %v493_v55 = vpop.permute.xlu1 %492 }
 0x390   :  { %v4160_v56 = vadd.f32 %v493_v55, %v479_v54  ;;  %v4162_v57 = vadd.f32 %v493_v55, %v480_v53  ;;  %v4288_v54 = vld [vmem:[#allocation7] sm:$0xff] }
 0x391   :  { %575 = vmatpush.msra.mxu2 %v4288_v54 }
 0x392   :  { %3622 = vtanh.f32 %v4160_v56 }
 0x393   :  { %3624 = vtanh.f32 %v4162_v57  ;;  %739 = vmatpush.msrb.mxu2 %v4192_v17 }
 0x395   :  { %740 = vmatpush.msrb.mxu2 %v4196_v18 }
 0x397   :  { %v510_v11 = vpop.permute.xlu1 %509  ;;  %741 = vmatpush.msrb.mxu2 %v4200_v22 }
 0x398   :  { %v3623_v58 = vpop.eup %3622 }
 0x399   :  { %v3625_v59 = vpop.eup %3624  ;;  %501 = vrot.lane.b32.xlu2 %v3623_v58, %s3857_s20  ;;  %742 = vmatpush.msrb.mxu2 %v4209_v26 }
 0x39a   :  { %503 = vrot.lane.b32.xlu0 %v3625_v59, %s3857_s20 }
 0x39b   :  { %743 = vmatpush.msrb.mxu2 %v4219_v29 }
 0x39d   :  { %744 = vmatpush.msrb.mxu2 %v4229_v32 }
 0x39f   :  { %745 = vmatpush.msrb.mxu2 %v4239_v35 }
 0x3a1   :  { %746 = vmatpush.msrb.mxu2 %v4249_v38 }
 0x3a3   :  { %747 = vmatpush.msrb.mxu2 %v4260_v43 }
 0x3a5   :  { %748 = vmatpush.msrb.mxu2 %v4270_v46 }
 0x3a7   :  { %v315_v60 = vpop.f32.mrf.mxu1  ;;  %749 = vmatpush.msrb.mxu2 %v4280_v51 }
 0x3a8   :  { %v316_v61 = vadd.f32 %v4117_v8, %v315_v60 }
 0x3a9   :  { %750 = vmatpush.msrb.mxu2 %v4288_v54 }
 0x3aa   :  { %v325_v62 = vmax.f32 %v316_v61, 0.0 }
 0x3ac   :  { %3508 = vmatmul.msk.f32.gmra.mxu2 %vm217_vm5, %v325_v62  ;;  %3512 = vmatmul.msk.f32.gmra.mxu3 %vm217_vm5, %v325_v62 }
 0x3ad   :  { %3516 = vmatmul.msk.f32.gmra.mxu0 %vm217_vm5, %v325_v62 }
 0x3af   :  { %v318_v63 = vpop.f32.mrf.mxu1 }
 0x3b0   :  { %v319_v0 = vadd.f32 %v4117_v8, %v318_v63  ;;  %v4326_v63 = vld [vmem:[#allocation7 + $0x58] sm:$0xff] }
 0x3b1   :  { %787 = vmatpush.msra.mxu0 %v4326_v63 }
 0x3b2   :  { %v326_v1 = vmax.f32 %v319_v0, 0.0  ;;  %v4328_v0 = vld [vmem:[#allocation7 + $0x40] sm:$0xff] }
 0x3b3   :  { %788 = vmatpush.msra.mxu0 %v4328_v0 }
 0x3b4   :  { %3509 = vmatmul.msk.f32.gmra.mxu2 %vm217_vm5, %v326_v1  ;;  %3513 = vmatmul.msk.f32.gmra.mxu3 %vm217_vm5, %v326_v1 }
 0x3b5   :  { %3517 = vmatmul.msk.f32.gmra.mxu0 %vm217_vm5, %v326_v1  ;;  %v4332_v1 = vld [vmem:[#allocation7 + $0x28] sm:$0xff] }
 0x3b6   :  { %789 = vmatpush.msra.mxu0 %v4332_v1 }
 0x3b7   :  { %v321_v2 = vpop.f32.mrf.mxu1 }
 0x3b8   :  { %v322_v3 = vadd.f32 %v4117_v8, %v321_v2  ;;  %v4184_v8 = vld [vmem:[#allocation7 + $0x110] sm:$0xff] }
 0x3b9   :  { %584 = vmatpush.msrb.mxu1 %v4184_v8  ;;  %759 = vmatpush.msrb.mxu3 %v4184_v8  ;;  %v4337_v2 = vld [vmem:[#allocation7 + $0x10] sm:$0xff] }
 0x3ba   :  { %v327_v4 = vmax.f32 %v322_v3, 0.0  ;;  %790 = vmatpush.msra.mxu0 %v4337_v2 }
 0x3bb   :  { %585 = vmatpush.msrb.mxu1 %v4186_v15  ;;  %760 = vmatpush.msrb.mxu3 %v4186_v15 }
 0x3bc   :  { %3510 = vmatmul.msk.f32.gmra.mxu2 %vm217_vm5, %v327_v4  ;;  %3514 = vmatmul.msk.f32.gmra.mxu3 %vm217_vm5, %v327_v4 }
 0x3bd   :  { %3518 = vmatmul.msk.f32.gmra.mxu0 %vm217_vm5, %v327_v4  ;;  %586 = vmatpush.msrb.mxu1 %v4190_v16 }
 0x3be   :  { %761 = vmatpush.msrb.mxu3 %v4190_v16  ;;  %1089 = vmatpush.msrb.mxu0 %v4192_v17 }
 0x3bf   :  { %587 = vmatpush.msrb.mxu1 %v4198_v19 }
 0x3c0   :  { %762 = vmatpush.msrb.mxu3 %v4198_v19  ;;  %1090 = vmatpush.msrb.mxu0 %v4196_v18 }
 0x3c1   :  { %588 = vmatpush.msrb.mxu1 %v4207_v20 }
 0x3c2   :  { %763 = vmatpush.msrb.mxu3 %v4207_v20  ;;  %1091 = vmatpush.msrb.mxu0 %v4200_v22 }
 0x3c3   :  { %589 = vmatpush.msrb.mxu1 %v4217_v28 }
 0x3c4   :  { %764 = vmatpush.msrb.mxu3 %v4217_v28  ;;  %1092 = vmatpush.msrb.mxu0 %v4209_v26 }
 0x3c5   :  { %590 = vmatpush.msrb.mxu1 %v4227_v31 }
 0x3c6   :  { %765 = vmatpush.msrb.mxu3 %v4227_v31  ;;  %1093 = vmatpush.msrb.mxu0 %v4219_v29 }
 0x3c7   :  { %591 = vmatpush.msrb.mxu1 %v4237_v34 }
 0x3c8   :  { %766 = vmatpush.msrb.mxu3 %v4237_v34  ;;  %1094 = vmatpush.msrb.mxu0 %v4229_v32 }
 0x3c9   :  { %592 = vmatpush.msrb.mxu1 %v4247_v37 }
 0x3ca   :  { %767 = vmatpush.msrb.mxu3 %v4247_v37  ;;  %1095 = vmatpush.msrb.mxu0 %v4239_v35 }
 0x3cb   :  { %593 = vmatpush.msrb.mxu1 %v4258_v42 }
 0x3cc   :  { %768 = vmatpush.msrb.mxu3 %v4258_v42  ;;  %1096 = vmatpush.msrb.mxu0 %v4249_v38 }
 0x3cd   :  { %594 = vmatpush.msrb.mxu1 %v4268_v45 }
 0x3ce   :  { %769 = vmatpush.msrb.mxu3 %v4268_v45  ;;  %1097 = vmatpush.msrb.mxu0 %v4260_v43 }
 0x3d0   :  { %1098 = vmatpush.msrb.mxu0 %v4270_v46 }
 0x3d2   :  { %1099 = vmatpush.msrb.mxu0 %v4280_v51 }
 0x3d4   :  { %1100 = vmatpush.msrb.mxu0 %v4288_v54 }
 0x3f3   :  { %v502_v6 = vpop.permute.xlu2 %501 }
 0x40c   :  { %v504_v9 = vpop.permute.xlu0 %503 }
 0x40d   :  { %v505_v10 = vsel %vm487_vm13, %v502_v6, %v504_v9 }
 0x40e   :  { %v507_v12 = vmul.f32 %v505_v10, %v478_v7  ;;  %v621_v10 = vld [vmem:[#allocation4] sm:$0xc] }
 0x410   :  { %v512_v13 = vmul.f32 %v510_v11, %v507_v12 }
 0x412   :  { %555 = vrot.lane.b32.xlu2 %v512_v13, %s3859_s28 }
 0x41a   :  { %513 = vrot.lane.b32.xlu2 %v3519_v50, %s3859_s28  ;;  %v4278_v50 = vld [vmem:[#allocation7 + $0x8] sm:$0xff] }
 0x41b   :  { %595 = vmatpush.msrb.mxu1 %v4278_v50  ;;  %770 = vmatpush.msrb.mxu3 %v4278_v50 }
 0x41d   :  { %604 = vmatpush.msra.mxu1 %v4205_v23  ;;  %954 = vmatpush.msra.mxu3 %v4205_v23 }
 0x41f   :  { %605 = vmatpush.msra.mxu1 %v4215_v27  ;;  %955 = vmatpush.msra.mxu3 %v4215_v27 }
 0x421   :  { %606 = vmatpush.msra.mxu1 %v4225_v30  ;;  %956 = vmatpush.msra.mxu3 %v4225_v30 }
 0x423   :  { %607 = vmatpush.msra.mxu1 %v4235_v33  ;;  %957 = vmatpush.msra.mxu3 %v4235_v33 }
 0x425   :  { %608 = vmatpush.msra.mxu1 %v4245_v36  ;;  %958 = vmatpush.msra.mxu3 %v4245_v36 }
 0x427   :  { %609 = vmatpush.msra.mxu1 %v4255_v40  ;;  %959 = vmatpush.msra.mxu3 %v4255_v40 }
 0x429   :  { %610 = vmatpush.msra.mxu1 %v4266_v44  ;;  %960 = vmatpush.msra.mxu3 %v4266_v44 }
 0x42a   :  { %v438_v39 = vpop.f32.mrf.mxu0 }
 0x42b   :  { %v439_v41 = vadd.f32 %v438_v39, %v4132_v21  ;;  %611 = vmatpush.msra.mxu1 %v4276_v47  ;;  %961 = vmatpush.msra.mxu3 %v4276_v47 }
 0x42d   :  { %452 = vst [vmem:[#allocation4 + $0x20] sm:$0xff] %v439_v41  ;;  %612 = vmatpush.msra.mxu1 %v4326_v63  ;;  %962 = vmatpush.msra.mxu3 %v4326_v63  ;;  %v620_v41 = vld [vmem:[#allocation4 + $0x30] sm:$0xc] }
 0x42f   :  { %v380_v48 = vpop.f32.mrf.mxu2  ;;  %v409_v49 = vpop.f32.mrf.mxu3  ;;  %613 = vmatpush.msra.mxu1 %v4328_v0  ;;  %963 = vmatpush.msra.mxu3 %v4328_v0 }
 0x430   :  { %v381_v52 = vadd.f32 %v380_v48, %v4135_v24  ;;  %v410_v53 = vadd.f32 %v409_v49, %v4137_v25 }
 0x431   :  { %614 = vmatpush.msra.mxu1 %v4332_v1  ;;  %964 = vmatpush.msra.mxu3 %v4332_v1 }
 0x432   :  { %450 = vst [vmem:[#allocation4 + $0x18] sm:$0xff] %v381_v52  ;;  %v441_v55 = vpop.f32.mrf.mxu0 }
 0x433   :  { %451 = vst [vmem:[#allocation4 + $0x50] sm:$0xff] %v410_v53  ;;  %v442_v58 = vadd.f32 %v441_v55, %v4132_v21  ;;  %615 = vmatpush.msra.mxu1 %v4337_v2  ;;  %965 = vmatpush.msra.mxu3 %v4337_v2 }
 0x435   :  { %455 = vst [vmem:[#allocation4 + $0x28] sm:$0xff] %v442_v58 }
 0x437   :  { %v383_v59 = vpop.f32.mrf.mxu2  ;;  %v412_v60 = vpop.f32.mrf.mxu3 }
 0x438   :  { %v384_v61 = vadd.f32 %v383_v59, %v4135_v24  ;;  %v413_v62 = vadd.f32 %v412_v60, %v4137_v25 }
 0x43a   :  { %453 = vst [vmem:[#allocation4 + $0x8] sm:$0xff] %v384_v61  ;;  %v444_v3 = vpop.f32.mrf.mxu0 }
 0x43b   :  { %454 = vst [vmem:[#allocation4 + $0x38] sm:$0xff] %v413_v62  ;;  %v445_v4 = vadd.f32 %v444_v3, %v4132_v21 }
 0x43d   :  { %458 = vst [vmem:[#allocation4 + $0x40] sm:$0xff] %v445_v4 }
 0x43f   :  { %v386_v5 = vpop.f32.mrf.mxu2  ;;  %v415_v6 = vpop.f32.mrf.mxu3 }
 0x440   :  { %v387_v7 = vadd.f32 %v386_v5, %v4135_v24  ;;  %v416_v9 = vadd.f32 %v415_v6, %v4137_v25 }
 0x442   :  { %456 = vst [vmem:[#allocation4 + $0x48] sm:$0xff] %v387_v7 }
 0x443   :  { %457 = vst [vmem:[#allocation4 + $0x10] sm:$0xff] %v416_v9 }
 0x46c   :  { %v556_v21 = vpop.permute.xlu2 %555 }
 0x46d   :  { %3520 = vmatmul.msk.f32.vlgmr.msra.gmra.mxu2 %vm557_vm15, %v556_v21  ;;  %3521 = vmatmul.msk.f32.vlgmr.msrb.gmra.mxu1 %vm557_vm15, %v556_v21 }
 0x46e   :  { %914 = vmatpush.msrb.mxu1 %v4192_v17  ;;  %934 = vmatpush.msra.mxu2 %v4184_v8 }
 0x470   :  { %915 = vmatpush.msrb.mxu1 %v4196_v18  ;;  %935 = vmatpush.msra.mxu2 %v4186_v15 }
 0x472   :  { %916 = vmatpush.msrb.mxu1 %v4200_v22  ;;  %936 = vmatpush.msra.mxu2 %v4190_v16 }
 0x474   :  { %917 = vmatpush.msrb.mxu1 %v4209_v26  ;;  %937 = vmatpush.msra.mxu2 %v4198_v19  ;;  %v514_v58 = vpop.permute.xlu2 %513 }
 0x475   :  { %3522 = vmatmul.msk.f32.vlgmr.msra.gmra.mxu1 %vm557_vm15, %v556_v21  ;;  %v516_v60 = vmul.f32 %v514_v58, %v4160_v56  ;;  %v517_v61 = vmul.f32 %v514_v58, %v4162_v57 }
 0x476   :  { %918 = vmatpush.msrb.mxu1 %v4219_v29  ;;  %938 = vmatpush.msra.mxu2 %v4207_v20 }
 0x477   :  { %v646_v3 = vrot.slane %v516_v60, 6  ;;  %v647_v4 = vrot.slane %v517_v61, 6 }
 0x478   :  { %919 = vmatpush.msrb.mxu1 %v4229_v32  ;;  %939 = vmatpush.msra.mxu2 %v4217_v28 }
 0x47a   :  { %920 = vmatpush.msrb.mxu1 %v4239_v35  ;;  %940 = vmatpush.msra.mxu2 %v4227_v31 }
 0x47c   :  { %921 = vmatpush.msrb.mxu1 %v4249_v38  ;;  %941 = vmatpush.msra.mxu2 %v4237_v34 }
 0x47e   :  { %922 = vmatpush.msrb.mxu1 %v4260_v43  ;;  %942 = vmatpush.msra.mxu2 %v4247_v37 }
 0x480   :  { %923 = vmatpush.msrb.mxu1 %v4270_v46  ;;  %943 = vmatpush.msra.mxu2 %v4258_v42 }
 0x482   :  { %924 = vmatpush.msrb.mxu1 %v4280_v51  ;;  %944 = vmatpush.msra.mxu2 %v4268_v45 }
 0x484   :  { %925 = vmatpush.msrb.mxu1 %v4288_v54  ;;  %945 = vmatpush.msra.mxu2 %v4278_v50 }
 0x486   :  { %1109 = vmatpush.msra.mxu1 %v4184_v8 }
 0x488   :  { %1110 = vmatpush.msra.mxu1 %v4186_v15 }
 0x48a   :  { %1111 = vmatpush.msra.mxu1 %v4190_v16 }
 0x48c   :  { %1112 = vmatpush.msra.mxu1 %v4198_v19 }
 0x48e   :  { %1113 = vmatpush.msra.mxu1 %v4207_v20  ;;  %v622_v20 = vld [vmem:[#allocation4 + $0x58] sm:$0xc] }
 0x490   :  { %1114 = vmatpush.msra.mxu1 %v4217_v28 }
 0x492   :  { %1115 = vmatpush.msra.mxu1 %v4227_v31 }
 0x494   :  { %1116 = vmatpush.msra.mxu1 %v4237_v34 }
 0x496   :  { %1117 = vmatpush.msra.mxu1 %v4247_v37 }
 0x498   :  { %1118 = vmatpush.msra.mxu1 %v4258_v42 }
 0x49a   :  { %1119 = vmatpush.msra.mxu1 %v4268_v45 }
 0x49c   :  { %1120 = vmatpush.msra.mxu1 %v4278_v50 }
 0x4ea   :  { %v597_v24 = vpop.f32.mrf.mxu1 }
 0x4eb   :  { %v627_v25 = vrot.slane %v597_v24, 6 }
 0x4ed   :  { %v633_v11 = vadd.f32 %v627_v25, %v621_v10 }
 0x4ef   :  { %3626 = vtanh.f32 %v633_v11 }
 0x4f0   :  { %v577_v37 = vpop.f32.mrf.mxu2 }
 0x4f1   :  { %v626_v39 = vrot.slane %v577_v37, 6 }
 0x4f2   :  { %v617_v12 = vpop.f32.mrf.mxu1 }
 0x4f3   :  { %v628_v13 = vrot.slane %v617_v12, 6  ;;  %v632_v42 = vadd.f32 %v626_v39, %v620_v41 }
 0x4f5   :  { %v3627_v28 = vpop.eup %3626  ;;  %v634_v31 = vadd.f32 %v628_v13, %v622_v20 }
 0x4f6   :  { %654 = vrot.lane.b32.xlu0 %v3627_v28, %s3857_s20  ;;  %v640_v59 = vmul.f32 0.5, %v3627_v28 }
 0x4f7   :  { %3628 = vtanh.f32 %v634_v31  ;;  %v795_v31 = vld [vmem:[#allocation4 + $0x30] sm:$0x30] }
 0x4f8   :  { %3630 = vtanh.f32 %v632_v42  ;;  %v641_v62 = vadd.f32 0.5, %v640_v59 }
 0x4fa   :  { %v651_v6 = vmul.f32 %v647_v4, %v641_v62 }
 0x4fd   :  { %v3629_v34 = vpop.eup %3628 }
 0x4fe   :  { %656 = vrot.lane.b32.xlu1 %v3629_v34, %s3857_s20  ;;  %v3631_v45 = vpop.eup %3630  ;;  %v642_v56 = vmul.f32 0.5, %v3629_v34 }
 0x4ff   :  { %v638_v48 = vmul.f32 0.5, %v3631_v45 }
 0x500   :  { %v643_v10 = vadd.f32 0.5, %v642_v56 }
 0x501   :  { %v639_v52 = vadd.f32 0.5, %v638_v48 }
 0x503   :  { %v650_v5 = vmul.f32 %v646_v3, %v639_v52 }
 0x568   :  { %v655_v49 = vpop.permute.xlu0 %654 }
 0x570   :  { %v657_v50 = vpop.permute.xlu1 %656 }
 0x571   :  { %v658_v53 = vsel %vm487_vm13, %v655_v49, %v657_v50 }
 0x572   :  { %v660_v55 = vmul.f32 %v658_v53, %v639_v52 }
 0x574   :  { %662 = vrot.lane.b32.xlu0 %v660_v55, %s3859_s28 }
 0x5e6   :  { %v663_v7 = vpop.permute.xlu0 %662 }
 0x5e7   :  { %v4406_v9 = vadd.f32 %v663_v7, %v650_v5  ;;  %v4408_v21 = vadd.f32 %v663_v7, %v651_v6 }
 0x5e9   :  { %3632 = vtanh.f32 %v4406_v9  ;;  %v821_v50 = vrot.slane %v4406_v9, 6 }
 0x5ea   :  { %3634 = vtanh.f32 %v4408_v21 }
 0x5ef   :  { %v3633_v24 = vpop.eup %3632 }
 0x5f0   :  { %v3635_v25 = vpop.eup %3634  ;;  %671 = vrot.lane.b32.xlu1 %v3633_v24, %s3857_s20  ;;  %v972_v24 = vld [vmem:[#allocation4 + $0x58] sm:$0xc0] }
 0x5f1   :  { %673 = vrot.lane.b32.xlu2 %v3635_v25, %s3857_s20 }
 0x64b   :  { %v674_v57 = vpop.permute.xlu2 %673 }
 0x662   :  { %v672_v11 = vpop.permute.xlu1 %671 }
 0x663   :  { %v675_v12 = vsel %vm487_vm13, %v672_v11, %v674_v57  ;;  %v970_v57 = vld [vmem:[#allocation4 + $0x30] sm:$0xc0] }
 0x664   :  { %v4415_v13 = vmul.f32 %v675_v12, %v643_v10 }
 0x666   :  { %v730_v20 = vrot.slane %v4415_v13, 2 }
 0x668   :  { %731 = vrot.lane.b32.xlu0 %v730_v20, %s3859_s28 }
 0x6da   :  { %v732_v28 = vpop.permute.xlu0 %731 }
 0x6db   :  { %3523 = vmatmul.msk.f32.vlgmr.msrb.gmra.mxu2 %vm557_vm15, %v732_v28  ;;  %3524 = vmatmul.msk.f32.vlgmr.msrb.gmra.mxu3 %vm557_vm15, %v732_v28 }
 0x6dc   :  { %3525 = vmatmul.msk.f32.vlgmr.msra.gmra.mxu0 %vm557_vm15, %v732_v28  ;;  %1129 = vmatpush.msrb.mxu2 %v4205_v23 }
 0x6dd   :  { %1250 = vmatpush.msrb.mxu3 %v4192_v17  ;;  %1270 = vmatpush.msra.mxu0 %v4184_v8 }
 0x6de   :  { %1130 = vmatpush.msrb.mxu2 %v4215_v27 }
 0x6df   :  { %1251 = vmatpush.msrb.mxu3 %v4196_v18  ;;  %1271 = vmatpush.msra.mxu0 %v4186_v15 }
 0x6e0   :  { %1131 = vmatpush.msrb.mxu2 %v4225_v30 }
 0x6e1   :  { %1252 = vmatpush.msrb.mxu3 %v4200_v22  ;;  %1272 = vmatpush.msra.mxu0 %v4190_v16  ;;  %v797_v16 = vld [vmem:[#allocation4 + $0x58] sm:$0x30]  ;;  %v796_v22 = vld [vmem:[#allocation4] sm:$0x30] }
 0x6e2   :  { %1132 = vmatpush.msrb.mxu2 %v4235_v33 }
 0x6e3   :  { %1253 = vmatpush.msrb.mxu3 %v4209_v26  ;;  %1273 = vmatpush.msra.mxu0 %v4198_v19 }
 0x6e4   :  { %1133 = vmatpush.msrb.mxu2 %v4245_v36 }
 0x6e5   :  { %1254 = vmatpush.msrb.mxu3 %v4219_v29 }
 0x6e6   :  { %1134 = vmatpush.msrb.mxu2 %v4255_v40 }
 0x6e7   :  { %1255 = vmatpush.msrb.mxu3 %v4229_v32 }
 0x6e8   :  { %1135 = vmatpush.msrb.mxu2 %v4266_v44 }
 0x6e9   :  { %1256 = vmatpush.msrb.mxu3 %v4239_v35 }
 0x6ea   :  { %1136 = vmatpush.msrb.mxu2 %v4276_v47 }
 0x6eb   :  { %1257 = vmatpush.msrb.mxu3 %v4249_v38  ;;  %v822_v38 = vrot.slane %v4408_v21, 6 }
 0x6ec   :  { %1137 = vmatpush.msrb.mxu2 %v4326_v63 }
 0x6ed   :  { %1258 = vmatpush.msrb.mxu3 %v4260_v43 }
 0x6ee   :  { %1138 = vmatpush.msrb.mxu2 %v4328_v0 }
 0x6ef   :  { %1259 = vmatpush.msrb.mxu3 %v4270_v46 }
 0x6f0   :  { %1139 = vmatpush.msrb.mxu2 %v4332_v1 }
 0x6f1   :  { %1260 = vmatpush.msrb.mxu3 %v4280_v51 }
 0x6f2   :  { %1140 = vmatpush.msrb.mxu2 %v4337_v2 }
 0x6f3   :  { %1261 = vmatpush.msrb.mxu3 %v4288_v54 }
 0x759   :  { %v792_v8 = vpop.f32.mrf.mxu0 }
 0x75a   :  { %v803_v15 = vrot.slane %v792_v8, 4 }
 0x75c   :  { %v809_v17 = vadd.f32 %v803_v15, %v797_v16 }
 0x75e   :  { %3636 = vtanh.f32 %v809_v17  ;;  %v772_v18 = vpop.f32.mrf.mxu3  ;;  %v752_v51 = vpop.f32.mrf.mxu2 }
 0x75f   :  { %v802_v19 = vrot.slane %v772_v18, 4  ;;  %v801_v54 = vrot.slane %v752_v51, 4 }
 0x761   :  { %v808_v26 = vadd.f32 %v802_v19, %v796_v22  ;;  %v807_v34 = vadd.f32 %v801_v54, %v795_v31 }
 0x763   :  { %3638 = vtanh.f32 %v808_v26 }
 0x764   :  { %v3637_v29 = vpop.eup %3636  ;;  %3640 = vtanh.f32 %v807_v34 }
 0x765   :  { %831 = vrot.lane.b32.xlu2 %v3637_v29, %s3857_s20  ;;  %v817_v61 = vmul.f32 0.5, %v3637_v29 }
 0x767   :  { %v818_v3 = vadd.f32 0.5, %v817_v61 }
 0x769   :  { %v3639_v32 = vpop.eup %3638 }
 0x76a   :  { %829 = vrot.lane.b32.xlu1 %v3639_v32, %s3857_s20  ;;  %v815_v35 = vmul.f32 0.5, %v3639_v32  ;;  %v3641_v37 = vpop.eup %3640 }
 0x76b   :  { %v813_v39 = vmul.f32 0.5, %v3641_v37 }
 0x76c   :  { %v816_v43 = vadd.f32 0.5, %v815_v35 }
 0x76d   :  { %v814_v45 = vadd.f32 0.5, %v813_v39  ;;  %v1146_v39 = vld [vmem:[#allocation4 + $0x50] sm:$0x3] }
 0x76e   :  { %v826_v46 = vmul.f32 %v822_v38, %v816_v43 }
 0x76f   :  { %v825_v52 = vmul.f32 %v821_v50, %v814_v45 }
 0x7bf   :  { %v832_v41 = vpop.permute.xlu2 %831 }
 0x7dc   :  { %v830_v42 = vpop.permute.xlu1 %829 }
 0x7dd   :  { %v833_v48 = vsel %vm487_vm13, %v830_v42, %v832_v41 }
 0x7de   :  { %v835_v49 = vmul.f32 %v833_v48, %v814_v45  ;;  %v1147_v45 = vld [vmem:[#allocation4 + $0x20] sm:$0x3] }
 0x7e0   :  { %837 = vrot.lane.b32.xlu0 %v835_v49, %s3859_s28 }
 0x852   :  { %v838_v53 = vpop.permute.xlu0 %837 }
 0x853   :  { %v4456_v55 = vadd.f32 %v838_v53, %v825_v52  ;;  %v841_v58 = vadd.f32 %v838_v53, %v826_v46 }
 0x855   :  { %3642 = vtanh.f32 %v4456_v55  ;;  %v996_v17 = vrot.slane %v4456_v55, 6 }
 0x856   :  { %3644 = vtanh.f32 %v841_v58 }
 0x85b   :  { %v3643_v59 = vpop.eup %3642 }
 0x85c   :  { %v3645_v60 = vpop.eup %3644  ;;  %846 = vrot.lane.b32.xlu1 %v3643_v59, %s3857_s20 }
 0x85d   :  { %848 = vrot.lane.b32.xlu2 %v3645_v60, %s3857_s20  ;;  %v1145_v60 = vld [vmem:[#allocation4 + $0x18] sm:$0x3] }
 0x8b7   :  { %v849_v62 = vpop.permute.xlu2 %848 }
 0x8ce   :  { %v847_v4 = vpop.permute.xlu1 %846 }
 0x8cf   :  { %v850_v5 = vsel %vm487_vm13, %v847_v4, %v849_v62 }
 0x8d0   :  { %v4462_v6 = vmul.f32 %v850_v5, %v818_v3 }
 0x8d2   :  { %v905_v7 = vrot.slane %v4462_v6, 4 }
 0x8d4   :  { %906 = vrot.lane.b32.xlu0 %v905_v7, %s3859_s28 }
 0x946   :  { %v907_v9 = vpop.permute.xlu0 %906 }
 0x947   :  { %3526 = vmatmul.msk.f32.vlgmr.msrb.gmra.mxu1 %vm557_vm15, %v907_v9  ;;  %3527 = vmatmul.msk.f32.vlgmr.msra.gmra.mxu2 %vm557_vm15, %v907_v9 }
 0x948   :  { %3528 = vmatmul.msk.f32.vlgmr.msra.gmra.mxu3 %vm557_vm15, %v907_v9  ;;  %1290 = vmatpush.msrb.mxu1 %v4205_v23 }
 0x94a   :  { %1291 = vmatpush.msrb.mxu1 %v4215_v27 }
 0x94c   :  { %1292 = vmatpush.msrb.mxu1 %v4225_v30 }
 0x94e   :  { %1293 = vmatpush.msrb.mxu1 %v4235_v33  ;;  %v971_v33 = vld [vmem:[#allocation4] sm:$0xc0] }
 0x950   :  { %1294 = vmatpush.msrb.mxu1 %v4245_v36 }
 0x952   :  { %1295 = vmatpush.msrb.mxu1 %v4255_v40 }
 0x954   :  { %1296 = vmatpush.msrb.mxu1 %v4266_v44 }
 0x956   :  { %1297 = vmatpush.msrb.mxu1 %v4276_v47 }
 0x958   :  { %1298 = vmatpush.msrb.mxu1 %v4326_v63 }
 0x95a   :  { %1299 = vmatpush.msrb.mxu1 %v4328_v0  ;;  %v997_v0 = vrot.slane %v841_v58, 6 }
 0x95c   :  { %1300 = vmatpush.msrb.mxu1 %v4332_v1 }
 0x95e   :  { %1301 = vmatpush.msrb.mxu1 %v4337_v2 }
 0x9c4   :  { %v927_v25 = vpop.f32.mrf.mxu1 }
 0x9c5   :  { %v976_v56 = vrot.slane %v927_v25, 2  ;;  %v4522_v25 = vld [vmem:[#allocation7 + $0x20] sm:$0xff] }
 0x9c7   :  { %v982_v10 = vadd.f32 %v976_v56, %v970_v57  ;;  %v4525_v56 = vld [vmem:[#allocation7 + $0x8] sm:$0xff] }
 0x9ca   :  { %v947_v23 = vpop.f32.mrf.mxu2 }
 0x9cb   :  { %v977_v27 = vrot.slane %v947_v23, 2  ;;  %v967_v30 = vpop.f32.mrf.mxu3 }
 0x9cc   :  { %v978_v21 = vrot.slane %v967_v30, 2 }
 0x9cd   :  { %v983_v36 = vadd.f32 %v977_v27, %v971_v33 }
 0x9ce   :  { %v984_v40 = vadd.f32 %v978_v21, %v972_v24 }
 0x9cf   :  { %3646 = vtanh.f32 %v983_v36 }
 0x9d0   :  { %3648 = vtanh.f32 %v984_v40 }
 0x9d1   :  { %3650 = vtanh.f32 %v982_v10 }
 0x9d5   :  { %v3647_v44 = vpop.eup %3646 }
 0x9d6   :  { %v3649_v47 = vpop.eup %3648  ;;  %1004 = vrot.lane.b32.xlu1 %v3647_v44, %s3857_s20  ;;  %v990_v63 = vmul.f32 0.5, %v3647_v44  ;;  %v4505_v44 = vld [vmem:[#allocation7 + $0xb0] sm:$0xff] }
 0x9d7   :  { %1006 = vrot.lane.b32.xlu2 %v3649_v47, %s3857_s20  ;;  %v3651_v11 = vpop.eup %3650  ;;  %v992_v35 = vmul.f32 0.5, %v3649_v47  ;;  %v4507_v47 = vld [vmem:[#allocation7 + $0x98] sm:$0xff]  ;;  %1274 = vmatpush.msra.mxu0 %v4505_v44 }
 0x9d8   :  { %v991_v1 = vadd.f32 0.5, %v990_v63  ;;  %v988_v12 = vmul.f32 0.5, %v3651_v11  ;;  %v4510_v63 = vld [vmem:[#allocation7 + $0x80] sm:$0xff] }
 0x9d9   :  { %v993_v43 = vadd.f32 0.5, %v992_v35  ;;  %1275 = vmatpush.msra.mxu0 %v4507_v47 }
 0x9da   :  { %v1001_v2 = vmul.f32 %v997_v0, %v991_v1  ;;  %v989_v8 = vadd.f32 0.5, %v988_v12  ;;  %v4513_v0 = vld [vmem:[#allocation7 + $0x68] sm:$0xff]  ;;  %v4516_v1 = vld [vmem:[#allocation7 + $0x50] sm:$0xff] }
 0x9db   :  { %1276 = vmatpush.msra.mxu0 %v4510_v63 }
 0x9dc   :  { %v1000_v18 = vmul.f32 %v996_v17, %v989_v8 }
 0x9dd   :  { %1277 = vmatpush.msra.mxu0 %v4513_v0 }
 0x9df   :  { %1278 = vmatpush.msra.mxu0 %v4516_v1 }
 0xa31   :  { %v1007_v20 = vpop.permute.xlu2 %1006 }
 0xa48   :  { %v1005_v28 = vpop.permute.xlu1 %1004 }
 0xa49   :  { %v1008_v15 = vsel %vm487_vm13, %v1005_v28, %v1007_v20 }
 0xa4a   :  { %v1010_v16 = vmul.f32 %v1008_v15, %v989_v8 }
 0xa4c   :  { %1012 = vrot.lane.b32.xlu0 %v1010_v16, %s3859_s28 }
 0xabe   :  { %v1013_v19 = vpop.permute.xlu0 %1012 }
 0xabf   :  { %v1015_v22 = vadd.f32 %v1013_v19, %v1000_v18  ;;  %v1016_v26 = vadd.f32 %v1013_v19, %v1001_v2  ;;  %v4519_v2 = vld [vmem:[#allocation7 + $0x38] sm:$0xff]  ;;  %v1307_v18 = vld [vmem:[#allocation4 + $0x50] sm:$0xc] }
 0xac0   :  { %1279 = vmatpush.msra.mxu0 %v4519_v2 }
 0xac1   :  { %3652 = vtanh.f32 %v1015_v22  ;;  %v1163_v52 = vrot.slane %v1016_v26, 6  ;;  %v1162_v27 = vrot.slane %v1015_v22, 6 }
 0xac2   :  { %3654 = vtanh.f32 %v1016_v26  ;;  %1280 = vmatpush.msra.mxu0 %v4522_v25  ;;  %v1308_v26 = vld [vmem:[#allocation4 + $0x20] sm:$0xc] }
 0xac4   :  { %1281 = vmatpush.msra.mxu0 %v4525_v56 }
 0xac7   :  { %v3653_v29 = vpop.eup %3652 }
 0xac8   :  { %v3655_v32 = vpop.eup %3654  ;;  %1021 = vrot.lane.b32.xlu1 %v3653_v29, %s3857_s20 }
 0xac9   :  { %1023 = vrot.lane.b32.xlu2 %v3655_v32, %s3857_s20 }
 0xb23   :  { %v1024_v38 = vpop.permute.xlu2 %1023 }
 0xb3a   :  { %v1022_v46 = vpop.permute.xlu1 %1021 }
 0xb3b   :  { %v1025_v51 = vsel %vm487_vm13, %v1022_v46, %v1024_v38 }
 0xb3c   :  { %v4489_v54 = vmul.f32 %v1025_v51, %v993_v43 }
 0xb3e   :  { %v1080_v31 = vrot.slane %v4489_v54, 6 }
 0xb40   :  { %1081 = vrot.lane.b32.xlu0 %v1080_v31, %s3859_s28 }
 0xbb2   :  { %v1082_v34 = vpop.permute.xlu0 %1081 }
 0xbb3   :  { %3529 = vmatmul.msk.f32.vlgmr.msrb.gmra.mxu0 %vm557_vm15, %v1082_v34  ;;  %3530 = vmatmul.msk.f32.vlgmr.msra.gmra.mxu1 %vm557_vm15, %v1082_v34 }
 0xbb4   :  { %3531 = vmatmul.msk.f32.vlgmr.msrb.gmra.mxu2 %vm557_vm15, %v1082_v34 }
 0xc30   :  { %v1122_v37 = vpop.f32.mrf.mxu1  ;;  %v1102_v59 = vpop.f32.mrf.mxu0 }
 0xc31   :  { %v1149_v41 = vadd.f32 %v1146_v39, %v1122_v37  ;;  %v1148_v61 = vadd.f32 %v1145_v60, %v1102_v59  ;;  %v1306_v37 = vld [vmem:[#allocation4 + $0x18] sm:$0xc] }
 0xc33   :  { %3656 = vtanh.f32 %v1149_v41 }
 0xc37   :  { %v1142_v42 = vpop.f32.mrf.mxu2 }
 0xc38   :  { %v1150_v48 = vadd.f32 %v1147_v45, %v1142_v42 }
 0xc39   :  { %v3657_v49 = vpop.eup %3656 }
 0xc3a   :  { %3658 = vtanh.f32 %v1150_v48  ;;  %1170 = vrot.lane.b32.xlu1 %v3657_v49, %s3857_s20  ;;  %v1156_v50 = vmul.f32 0.5, %v3657_v49 }
 0xc3b   :  { %3660 = vtanh.f32 %v1148_v61 }
 0xc3c   :  { %v1157_v53 = vadd.f32 0.5, %v1156_v50 }
 0xc3e   :  { %v1167_v55 = vmul.f32 %v1163_v52, %v1157_v53 }
 0xc40   :  { %v3659_v58 = vpop.eup %3658 }
 0xc41   :  { %1172 = vrot.lane.b32.xlu2 %v3659_v58, %s3857_s20  ;;  %v3661_v62 = vpop.eup %3660  ;;  %v1158_v57 = vmul.f32 0.5, %v3659_v58 }
 0xc42   :  { %v1154_v3 = vmul.f32 0.5, %v3661_v62 }
 0xc43   :  { %v1159_v11 = vadd.f32 0.5, %v1158_v57  ;;  %v4598_v57 = vld [vmem:[#allocation7 + $0xb8] sm:$0xff] }
 0xc44   :  { %v1155_v4 = vadd.f32 0.5, %v1154_v3  ;;  %v4558_v3 = vld [vmem:[#allocation7 + $0x108] sm:$0xff] }
 0xc45   :  { %1422 = vmatpush.msra.mxu2 %v4558_v3  ;;  %1594 = vmatpush.msra.mxu1 %v4558_v3 }
 0xc46   :  { %v1166_v30 = vmul.f32 %v1162_v27, %v1155_v4  ;;  %v4573_v27 = vld [vmem:[#allocation7 + $0xd8] sm:$0xff] }
 0xc9b   :  { %v1173_v5 = vpop.permute.xlu2 %1172 }
 0xcac   :  { %v1171_v7 = vpop.permute.xlu1 %1170 }
 0xcad   :  { %v1174_v9 = vsel %vm487_vm13, %v1171_v7, %v1173_v5  ;;  %v4562_v5 = vld [vmem:[#allocation7 + $0x118] sm:$0xff]  ;;  %v4566_v7 = vld [vmem:[#allocation7 + $0xf0] sm:$0xff] }
 0xcae   :  { %v1176_v23 = vmul.f32 %v1174_v9, %v1155_v4  ;;  %v4560_v4 = vld [vmem:[#allocation7 + $0x110] sm:$0xff]  ;;  %v4568_v9 = vld [vmem:[#allocation7 + $0xf8] sm:$0xff]  ;;  %1462 = vmatpush.msrb.mxu0 %v4562_v5  ;;  %1423 = vmatpush.msra.mxu2 %v4566_v7 }
 0xcaf   :  { %1442 = vmatpush.msra.mxu3 %v4560_v4  ;;  %1595 = vmatpush.msra.mxu1 %v4566_v7 }
 0xcb0   :  { %1178 = vrot.lane.b32.xlu0 %v1176_v23, %s3859_s28  ;;  %v4570_v23 = vld [vmem:[#allocation7 + $0x100] sm:$0xff]  ;;  %1424 = vmatpush.msra.mxu2 %v4573_v27 }
 0xcb1   :  { %1443 = vmatpush.msra.mxu3 %v4568_v9  ;;  %1463 = vmatpush.msrb.mxu0 %v4570_v23 }
 0xcb2   :  { %1596 = vmatpush.msra.mxu1 %v4573_v27 }
 0xd22   :  { %v1179_v33 = vpop.permute.xlu0 %1178 }
 0xd23   :  { %v4500_v21 = vadd.f32 %v1179_v33, %v1166_v30  ;;  %v1182_v36 = vadd.f32 %v1179_v33, %v1167_v55  ;;  %v4575_v30 = vld [vmem:[#allocation7 + $0xe0] sm:$0xff]  ;;  %v4580_v33 = vld [vmem:[#allocation7 + $0xe8] sm:$0xff] }
 0xd24   :  { %1444 = vmatpush.msra.mxu3 %v4575_v30  ;;  %1464 = vmatpush.msrb.mxu0 %v4580_v33 }
 0xd25   :  { %3662 = vtanh.f32 %v4500_v21  ;;  %v1333_v43 = vrot.slane %v1182_v36, 6  ;;  %v1332_v53 = vrot.slane %v4500_v21, 6  ;;  %v4583_v21 = vld [vmem:[#allocation7 + $0xc0] sm:$0xff] }
 0xd26   :  { %3664 = vtanh.f32 %v1182_v36  ;;  %v4585_v36 = vld [vmem:[#allocation7 + $0xc8] sm:$0xff]  ;;  %1425 = vmatpush.msra.mxu2 %v4583_v21  ;;  %1597 = vmatpush.msra.mxu1 %v4583_v21 }
 0xd27   :  { %1445 = vmatpush.msra.mxu3 %v4585_v36 }
 0xd29   :  { %1446 = vmatpush.msra.mxu3 %v4505_v44 }
 0xd2b   :  { %v3663_v24 = vpop.eup %3662  ;;  %1447 = vmatpush.msra.mxu3 %v4507_v47 }
 0xd2c   :  { %v3665_v40 = vpop.eup %3664  ;;  %1187 = vrot.lane.b32.xlu1 %v3663_v24, %s3857_s20  ;;  %v4590_v24 = vld [vmem:[#allocation7 + $0xd0] sm:$0xff] }
 0xd2d   :  { %1189 = vrot.lane.b32.xlu2 %v3665_v40, %s3857_s20  ;;  %v4593_v40 = vld [vmem:[#allocation7 + $0xa8] sm:$0xff]  ;;  %1465 = vmatpush.msrb.mxu0 %v4590_v24 }
 0xd2e   :  { %1426 = vmatpush.msra.mxu2 %v4593_v40  ;;  %1598 = vmatpush.msra.mxu1 %v4593_v40 }
 0xd2f   :  { %1466 = vmatpush.msrb.mxu0 %v4598_v57  ;;  %1448 = vmatpush.msra.mxu3 %v4510_v63 }
 0xd31   :  { %1449 = vmatpush.msra.mxu3 %v4513_v0 }
 0xd33   :  { %1450 = vmatpush.msra.mxu3 %v4516_v1 }
 0xd35   :  { %1451 = vmatpush.msra.mxu3 %v4519_v2 }
 0xd37   :  { %1452 = vmatpush.msra.mxu3 %v4522_v25 }
 0xd39   :  { %1453 = vmatpush.msra.mxu3 %v4525_v56 }
 0xd87   :  { %v1190_v10 = vpop.permute.xlu2 %1189 }
 0xd9e   :  { %v1188_v12 = vpop.permute.xlu1 %1187 }
 0xd9f   :  { %v1191_v20 = vsel %vm487_vm13, %v1188_v12, %v1190_v10  ;;  %v4601_v10 = vld [vmem:[#allocation7 + $0x90] sm:$0xff]  ;;  %v4609_v12 = vld [vmem:[#allocation7 + $0x78] sm:$0xff] }
 0xda0   :  { %v4530_v28 = vmul.f32 %v1191_v20, %v1159_v11  ;;  %v4606_v11 = vld [vmem:[#allocation7 + $0xa0] sm:$0xff]  ;;  %1427 = vmatpush.msra.mxu2 %v4601_v10  ;;  %v4614_v20 = vld [vmem:[#allocation7 + $0x88] sm:$0xff]  ;;  %1599 = vmatpush.msra.mxu1 %v4601_v10 }
 0xda1   :  { %1467 = vmatpush.msrb.mxu0 %v4606_v11 }
 0xda2   :  { %1204 = vrot.lane.b32.xlu0 %v4530_v28, %s3859_s28  ;;  %1428 = vmatpush.msra.mxu2 %v4609_v12 }
 0xda3   :  { %1468 = vmatpush.msrb.mxu0 %v4614_v20  ;;  %1600 = vmatpush.msra.mxu1 %v4609_v12 }
 0xe14   :  { %v4534_v8 = vpop.permute.xlu0 %1204 }
 0xe15   :  { %3532 = vmatmul.msk.f32.vlgmr.msrb.gmra.mxu3 %vm557_vm15, %v4534_v8  ;;  %3533 = vmatmul.msk.f32.vlgmr.msra.gmra.mxu0 %vm557_vm15, %v4534_v8 }
 0xe16   :  { %3534 = vmatmul.msk.f32.vlgmr.msrb.gmra.mxu1 %vm557_vm15, %v4534_v8  ;;  %1634 = vmatpush.msrb.mxu3 %v4562_v5 }
 0xe18   :  { %1635 = vmatpush.msrb.mxu3 %v4570_v23 }
 0xe1a   :  { %1636 = vmatpush.msrb.mxu3 %v4580_v33 }
 0xe1c   :  { %1637 = vmatpush.msrb.mxu3 %v4590_v24 }
 0xe1e   :  { %1638 = vmatpush.msrb.mxu3 %v4598_v57 }
 0xe20   :  { %1639 = vmatpush.msrb.mxu3 %v4606_v11 }
 0xe22   :  { %1640 = vmatpush.msrb.mxu3 %v4614_v20 }
 0xe92   :  { %v1283_v15 = vpop.f32.mrf.mxu0 }
 0xe93   :  { %v1313_v16 = vrot.slane %v1283_v15, 6  ;;  %v1303_v17 = vpop.f32.mrf.mxu1  ;;  %v4617_v15 = vld [vmem:[#allocation7 + $0x60] sm:$0xff] }
 0xe94   :  { %v1314_v19 = vrot.slane %v1303_v17, 6  ;;  %v4625_v17 = vld [vmem:[#allocation7 + $0x48] sm:$0xff]  ;;  %1429 = vmatpush.msra.mxu2 %v4617_v15  ;;  %1601 = vmatpush.msra.mxu1 %v4617_v15 }
 0xe95   :  { %v1319_v22 = vadd.f32 %v1313_v16, %v1307_v18  ;;  %v4622_v16 = vld [vmem:[#allocation7 + $0x70] sm:$0xff]  ;;  %v4630_v18 = vld [vmem:[#allocation7 + $0x58] sm:$0xff] }
 0xe96   :  { %v1320_v29 = vadd.f32 %v1314_v19, %v1308_v26  ;;  %1469 = vmatpush.msrb.mxu0 %v4622_v16  ;;  %v4633_v19 = vld [vmem:[#allocation7 + $0x30] sm:$0xff]  ;;  %1430 = vmatpush.msra.mxu2 %v4625_v17  ;;  %v4641_v26 = vld [vmem:[#allocation7 + $0x18] sm:$0xff] }
 0xe97   :  { %3666 = vtanh.f32 %v1319_v22  ;;  %v4638_v22 = vld [vmem:[#allocation7 + $0x40] sm:$0xff]  ;;  %1602 = vmatpush.msra.mxu1 %v4625_v17  ;;  %1641 = vmatpush.msrb.mxu3 %v4622_v16 }
 0xe98   :  { %3668 = vtanh.f32 %v1320_v29  ;;  %v1263_v31 = vpop.f32.mrf.mxu3  ;;  %1470 = vmatpush.msrb.mxu0 %v4630_v18  ;;  %1431 = vmatpush.msra.mxu2 %v4633_v19  ;;  %v4646_v29 = vld [vmem:[#allocation7 + $0x28] sm:$0xff] }
 0xe99   :  { %v1312_v34 = vrot.slane %v1263_v31, 6  ;;  %1603 = vmatpush.msra.mxu1 %v4633_v19  ;;  %1642 = vmatpush.msrb.mxu3 %v4630_v18 }
 0xe9a   :  { %1471 = vmatpush.msrb.mxu0 %v4638_v22  ;;  %1432 = vmatpush.msra.mxu2 %v4641_v26 }
 0xe9b   :  { %v1318_v39 = vadd.f32 %v1312_v34, %v1306_v37  ;;  %1604 = vmatpush.msra.mxu1 %v4641_v26  ;;  %1643 = vmatpush.msrb.mxu3 %v4638_v22 }
 0xe9c   :  { %1472 = vmatpush.msrb.mxu0 %v4646_v29 }
 0xe9d   :  { %v3667_v32 = vpop.eup %3666  ;;  %3670 = vtanh.f32 %v1318_v39  ;;  %1644 = vmatpush.msrb.mxu3 %v4646_v29 }
 0xe9e   :  { %v4542_v35 = vpop.eup %3668  ;;  %1340 = vrot.lane.b32.xlu1 %v3667_v32, %s3857_s20  ;;  %v1326_v38 = vmul.f32 0.5, %v3667_v32  ;;  %v4649_v32 = vld [vmem:[#allocation7] sm:$0xff] }
 0xe9f   :  { %1342 = vrot.lane.b32.xlu2 %v4542_v35, %s3857_s20  ;;  %1433 = vmatpush.msra.mxu2 %v4649_v32 }
 0xea0   :  { %v1327_v46 = vadd.f32 0.5, %v1326_v38  ;;  %v4654_v38 = vld [vmem:[#allocation7 + $0x10] sm:$0xff]  ;;  %1605 = vmatpush.msra.mxu1 %v4649_v32 }
 0xea1   :  { %1473 = vmatpush.msrb.mxu0 %v4654_v38  ;;  %1614 = vmatpush.msrb.mxu2 %v4560_v4 }
 0xea2   :  { %v1337_v51 = vmul.f32 %v1333_v43, %v1327_v46  ;;  %v1328_v43 = vmul.f32 0.5, %v4542_v35  ;;  %1786 = vmatpush.msrb.mxu1 %v4560_v4  ;;  %1645 = vmatpush.msrb.mxu3 %v4654_v38 }
 0xea3   :  { %v3671_v41 = vpop.eup %3670  ;;  %1615 = vmatpush.msrb.mxu2 %v4568_v9  ;;  %1766 = vmatpush.msra.mxu0 %v4558_v3 }
 0xea4   :  { %v1324_v42 = vmul.f32 0.5, %v3671_v41  ;;  %1787 = vmatpush.msrb.mxu1 %v4568_v9 }
 0xea5   :  { %1616 = vmatpush.msrb.mxu2 %v4575_v30  ;;  %1767 = vmatpush.msra.mxu0 %v4566_v7 }
 0xea6   :  { %v1325_v49 = vadd.f32 0.5, %v1324_v42  ;;  %1788 = vmatpush.msrb.mxu1 %v4575_v30 }
 0xea7   :  { %1617 = vmatpush.msrb.mxu2 %v4585_v36  ;;  %1768 = vmatpush.msra.mxu0 %v4573_v27 }
 0xea8   :  { %v1336_v55 = vmul.f32 %v1332_v53, %v1325_v49  ;;  %1789 = vmatpush.msrb.mxu1 %v4585_v36 }
 0xea9   :  { %1618 = vmatpush.msrb.mxu2 %v4505_v44  ;;  %1769 = vmatpush.msra.mxu0 %v4583_v21 }
 0xeaa   :  { %1790 = vmatpush.msrb.mxu1 %v4505_v44 }
 0xeab   :  { %1619 = vmatpush.msrb.mxu2 %v4507_v47  ;;  %1770 = vmatpush.msra.mxu0 %v4593_v40 }
 0xeac   :  { %1791 = vmatpush.msrb.mxu1 %v4507_v47 }
 0xead   :  { %1620 = vmatpush.msrb.mxu2 %v4510_v63  ;;  %1771 = vmatpush.msra.mxu0 %v4601_v10 }
 0xeae   :  { %1792 = vmatpush.msrb.mxu1 %v4510_v63 }
 0xeaf   :  { %1621 = vmatpush.msrb.mxu2 %v4513_v0  ;;  %1772 = vmatpush.msra.mxu0 %v4609_v12 }
 0xeb0   :  { %1793 = vmatpush.msrb.mxu1 %v4513_v0 }
 0xeb1   :  { %1622 = vmatpush.msrb.mxu2 %v4516_v1  ;;  %1773 = vmatpush.msra.mxu0 %v4617_v15 }
 0xeb2   :  { %1794 = vmatpush.msrb.mxu1 %v4516_v1 }
 0xeb3   :  { %1623 = vmatpush.msrb.mxu2 %v4519_v2  ;;  %1774 = vmatpush.msra.mxu0 %v4625_v17 }
 0xeb4   :  { %1795 = vmatpush.msrb.mxu1 %v4519_v2 }
 0xeb5   :  { %1624 = vmatpush.msrb.mxu2 %v4522_v25  ;;  %1775 = vmatpush.msra.mxu0 %v4633_v19 }
 0xeb6   :  { %1796 = vmatpush.msrb.mxu1 %v4522_v25 }
 0xeb7   :  { %1625 = vmatpush.msrb.mxu2 %v4525_v56  ;;  %1776 = vmatpush.msra.mxu0 %v4641_v26 }
 0xeb8   :  { %1797 = vmatpush.msrb.mxu1 %v4525_v56 }
 0xeb9   :  { %1777 = vmatpush.msra.mxu0 %v4649_v32 }
 0xef9   :  { %v1343_v45 = vpop.permute.xlu2 %1342 }
 0xf10   :  { %v1341_v48 = vpop.permute.xlu1 %1340 }
 0xf11   :  { %v1344_v50 = vsel %vm487_vm13, %v1341_v48, %v1343_v45 }
 0xf12   :  { %v1346_v52 = vmul.f32 %v1344_v50, %v1325_v49 }
 0xf14   :  { %1348 = vrot.lane.b32.xlu0 %v1346_v52, %s3859_s28 }
 0xf86   :  { %v1349_v58 = vpop.permute.xlu0 %1348 }
 0xf87   :  { %v4550_v59 = vadd.f32 %v1349_v58, %v1336_v55  ;;  %v4552_v60 = vadd.f32 %v1349_v58, %v1337_v51  ;;  %v1329_v51 = vadd.f32 0.5, %v1328_v43  ;;  %v1478_v55 = vld [vmem:[#allocation4 + $0x18] sm:$0x30] }
 0xf89   :  { %3672 = vtanh.f32 %v4550_v59  ;;  %v1505_v49 = vrot.slane %v4552_v60, 6 }
 0xf8a   :  { %3674 = vtanh.f32 %v4552_v60 }
 0xf8f   :  { %v3673_v61 = vpop.eup %3672 }
 0xf90   :  { %v3675_v62 = vpop.eup %3674  ;;  %1357 = vrot.lane.b32.xlu1 %v3673_v61, %s3857_s20 }
 0xf91   :  { %1359 = vrot.lane.b32.xlu2 %v3675_v62, %s3857_s20 }
 0xfeb   :  { %v1360_v46 = vpop.permute.xlu2 %1359 }
0x1002   :  { %v1358_v31 = vpop.permute.xlu1 %1357 }
0x1003   :  { %v1361_v35 = vsel %vm487_vm13, %v1358_v31, %v1360_v46 }
0x1004   :  { %v4670_v34 = vmul.f32 %v1361_v35, %v1329_v51 }
0x1006   :  { %v1413_v37 = vrot.slane %v4670_v34, 2 }
0x1008   :  { %1414 = vrot.lane.b32.xlu0 %v1413_v37, %s3859_s28  ;;  %v1504_v37 = vrot.slane %v4550_v59, 6 }
0x107a   :  { %v1415_v39 = vpop.permute.xlu0 %1414 }
0x107b   :  { %3535 = vmatmul.msk.f32.vlgmr.msra.gmra.mxu2 %vm557_vm15, %v1415_v39  ;;  %3536 = vmatmul.msk.f32.vlgmr.msra.gmra.mxu3 %vm557_vm15, %v1415_v39 }
0x107c   :  { %3537 = vmatmul.msk.f32.vlgmr.msrb.gmra.mxu0 %vm557_vm15, %v1415_v39  ;;  %1806 = vmatpush.msra.mxu2 %v4562_v5 }
0x107d   :  { %1926 = vmatpush.msra.mxu3 %v4558_v3  ;;  %1946 = vmatpush.msrb.mxu0 %v4560_v4 }
0x107e   :  { %1807 = vmatpush.msra.mxu2 %v4570_v23 }
0x107f   :  { %1927 = vmatpush.msra.mxu3 %v4566_v7  ;;  %1947 = vmatpush.msrb.mxu0 %v4568_v9 }
0x1080   :  { %1808 = vmatpush.msra.mxu2 %v4580_v33 }
0x1081   :  { %1928 = vmatpush.msra.mxu3 %v4573_v27  ;;  %1948 = vmatpush.msrb.mxu0 %v4575_v30 }
0x1082   :  { %1809 = vmatpush.msra.mxu2 %v4590_v24 }
0x1083   :  { %1929 = vmatpush.msra.mxu3 %v4583_v21  ;;  %1949 = vmatpush.msrb.mxu0 %v4585_v36 }
0x1084   :  { %1810 = vmatpush.msra.mxu2 %v4598_v57 }
0x1085   :  { %1930 = vmatpush.msra.mxu3 %v4593_v40  ;;  %1950 = vmatpush.msrb.mxu0 %v4505_v44 }
0x1086   :  { %1811 = vmatpush.msra.mxu2 %v4606_v11 }
0x1087   :  { %1931 = vmatpush.msra.mxu3 %v4601_v10  ;;  %1951 = vmatpush.msrb.mxu0 %v4507_v47 }
0x1088   :  { %1812 = vmatpush.msra.mxu2 %v4614_v20 }
0x1089   :  { %1932 = vmatpush.msra.mxu3 %v4609_v12  ;;  %1952 = vmatpush.msrb.mxu0 %v4510_v63  ;;  %v1480_v63 = vld [vmem:[#allocation4 + $0x20] sm:$0x30] }
0x108a   :  { %1813 = vmatpush.msra.mxu2 %v4622_v16 }
0x108b   :  { %1933 = vmatpush.msra.mxu3 %v4617_v15  ;;  %1953 = vmatpush.msrb.mxu0 %v4513_v0 }
0x108c   :  { %1814 = vmatpush.msra.mxu2 %v4630_v18 }
0x108d   :  { %1934 = vmatpush.msra.mxu3 %v4625_v17  ;;  %1954 = vmatpush.msrb.mxu0 %v4516_v1 }
0x108e   :  { %1815 = vmatpush.msra.mxu2 %v4638_v22 }
0x108f   :  { %1935 = vmatpush.msra.mxu3 %v4633_v19  ;;  %1955 = vmatpush.msrb.mxu0 %v4519_v2  ;;  %v1479_v2 = vld [vmem:[#allocation4 + $0x50] sm:$0x30] }
0x1090   :  { %1816 = vmatpush.msra.mxu2 %v4646_v29 }
0x1091   :  { %1936 = vmatpush.msra.mxu3 %v4641_v26  ;;  %1956 = vmatpush.msrb.mxu0 %v4522_v25 }
0x1092   :  { %1817 = vmatpush.msra.mxu2 %v4654_v38 }
0x1093   :  { %1937 = vmatpush.msra.mxu3 %v4649_v32  ;;  %1957 = vmatpush.msrb.mxu0 %v4525_v56 }
0x10f9   :  { %v1475_v44 = vpop.f32.mrf.mxu0 }
0x10fa   :  { %v1486_v47 = vrot.slane %v1475_v44, 4 }
0x10fc   :  { %v1492_v0 = vadd.f32 %v1486_v47, %v1480_v63 }
0x10fe   :  { %3676 = vtanh.f32 %v1492_v0  ;;  %v1455_v1 = vpop.f32.mrf.mxu3  ;;  %v1435_v52 = vpop.f32.mrf.mxu2 }
0x10ff   :  { %v1485_v41 = vrot.slane %v1455_v1, 4  ;;  %v1484_v53 = vrot.slane %v1435_v52, 4 }
0x1101   :  { %v1491_v42 = vadd.f32 %v1485_v41, %v1479_v2  ;;  %v1490_v58 = vadd.f32 %v1484_v53, %v1478_v55 }
0x1103   :  { %3678 = vtanh.f32 %v1491_v42 }
0x1104   :  { %v3677_v45 = vpop.eup %3676  ;;  %3680 = vtanh.f32 %v1490_v58 }
0x1105   :  { %1514 = vrot.lane.b32.xlu2 %v3677_v45, %s3857_s20  ;;  %v1500_v1 = vmul.f32 0.5, %v3677_v45  ;;  %v1650_v45 = vld [vmem:[#allocation4 + $0x18] sm:$0xc0] }
0x1107   :  { %v1501_v2 = vadd.f32 0.5, %v1500_v1 }
0x1109   :  { %v3679_v25 = vpop.eup %3678 }
0x110a   :  { %1512 = vrot.lane.b32.xlu1 %v3679_v25, %s3857_s20  ;;  %v1498_v48 = vmul.f32 0.5, %v3679_v25  ;;  %v3681_v61 = vpop.eup %3680 }
0x110b   :  { %v1496_v62 = vmul.f32 0.5, %v3681_v61 }
0x110c   :  { %v1499_v56 = vadd.f32 0.5, %v1498_v48 }
0x110d   :  { %v1497_v51 = vadd.f32 0.5, %v1496_v62 }
0x110e   :  { %v1509_v50 = vmul.f32 %v1505_v49, %v1499_v56 }
0x110f   :  { %v1508_v60 = vmul.f32 %v1504_v37, %v1497_v51 }
0x115f   :  { %v1515_v43 = vpop.permute.xlu2 %1514 }
0x117c   :  { %v1513_v46 = vpop.permute.xlu1 %1512 }
0x117d   :  { %v1516_v31 = vsel %vm487_vm13, %v1513_v46, %v1515_v43 }
0x117e   :  { %v1518_v35 = vmul.f32 %v1516_v31, %v1497_v51 }
0x1180   :  { %1520 = vrot.lane.b32.xlu0 %v1518_v35, %s3859_s28 }
0x11f2   :  { %v1521_v39 = vpop.permute.xlu0 %1520 }
0x11f3   :  { %v4761_v44 = vadd.f32 %v1521_v39, %v1508_v60  ;;  %v4763_v47 = vadd.f32 %v1521_v39, %v1509_v50 }
0x11f5   :  { %3682 = vtanh.f32 %v4761_v44  ;;  %v1676_v43 = vrot.slane %v4761_v44, 6 }
0x11f6   :  { %3684 = vtanh.f32 %v4763_v47 }
0x11fb   :  { %v3683_v63 = vpop.eup %3682 }
0x11fc   :  { %v3685_v0 = vpop.eup %3684  ;;  %1529 = vrot.lane.b32.xlu1 %v3683_v63, %s3857_s20 }
0x11fd   :  { %1531 = vrot.lane.b32.xlu2 %v3685_v0, %s3857_s20 }
0x1257   :  { %v1532_v41 = vpop.permute.xlu2 %1531 }
0x126e   :  { %v1530_v59 = vpop.permute.xlu1 %1529 }
0x126f   :  { %v1533_v42 = vsel %vm487_vm13, %v1530_v59, %v1532_v41 }
0x1270   :  { %v4770_v25 = vmul.f32 %v1533_v42, %v1501_v2 }
0x1272   :  { %v1585_v48 = vrot.slane %v4770_v25, 4 }
0x1274   :  { %1586 = vrot.lane.b32.xlu0 %v1585_v48, %s3859_s28 }
0x12e6   :  { %v1587_v49 = vpop.permute.xlu0 %1586 }
0x12e7   :  { %3538 = vmatmul.msk.f32.vlgmr.msra.gmra.mxu1 %vm557_vm15, %v1587_v49  ;;  %3539 = vmatmul.msk.f32.vlgmr.msrb.gmra.mxu2 %vm557_vm15, %v1587_v49 }
0x12e8   :  { %3540 = vmatmul.msk.f32.vlgmr.msrb.gmra.mxu3 %vm557_vm15, %v1587_v49  ;;  %1966 = vmatpush.msra.mxu1 %v4562_v5 }
0x12e9   :  { %2098 = vmatpush.msrb.mxu2 %v4558_v3  ;;  %2118 = vmatpush.msrb.mxu3 %v4560_v4 }
0x12ea   :  { %1967 = vmatpush.msra.mxu1 %v4570_v23 }
0x12eb   :  { %2099 = vmatpush.msrb.mxu2 %v4566_v7  ;;  %2119 = vmatpush.msrb.mxu3 %v4568_v9  ;;  %v1651_v9 = vld [vmem:[#allocation4 + $0x50] sm:$0xc0] }
0x12ec   :  { %1968 = vmatpush.msra.mxu1 %v4580_v33 }
0x12ed   :  { %2100 = vmatpush.msrb.mxu2 %v4573_v27  ;;  %2120 = vmatpush.msrb.mxu3 %v4575_v30 }
0x12ee   :  { %1969 = vmatpush.msra.mxu1 %v4590_v24 }
0x12ef   :  { %2101 = vmatpush.msrb.mxu2 %v4583_v21  ;;  %2121 = vmatpush.msrb.mxu3 %v4585_v36  ;;  %v1652_v21 = vld [vmem:[#allocation4 + $0x20] sm:$0xc0] }
0x12f0   :  { %1970 = vmatpush.msra.mxu1 %v4598_v57 }
0x12f1   :  { %2102 = vmatpush.msrb.mxu2 %v4593_v40 }
0x12f2   :  { %1971 = vmatpush.msra.mxu1 %v4606_v11 }
0x12f3   :  { %2103 = vmatpush.msrb.mxu2 %v4601_v10 }
0x12f4   :  { %1972 = vmatpush.msra.mxu1 %v4614_v20 }
0x12f5   :  { %2104 = vmatpush.msrb.mxu2 %v4609_v12 }
0x12f6   :  { %1973 = vmatpush.msra.mxu1 %v4622_v16 }
0x12f7   :  { %2105 = vmatpush.msrb.mxu2 %v4617_v15  ;;  %v1677_v15 = vrot.slane %v4763_v47, 6 }
0x12f8   :  { %1974 = vmatpush.msra.mxu1 %v4630_v18 }
0x12f9   :  { %2106 = vmatpush.msrb.mxu2 %v4625_v17 }
0x12fa   :  { %1975 = vmatpush.msra.mxu1 %v4638_v22 }
0x12fb   :  { %2107 = vmatpush.msrb.mxu2 %v4633_v19 }
0x12fc   :  { %1976 = vmatpush.msra.mxu1 %v4646_v29 }
0x12fd   :  { %2108 = vmatpush.msrb.mxu2 %v4641_v26 }
0x12fe   :  { %1977 = vmatpush.msra.mxu1 %v4654_v38 }
0x12ff   :  { %2109 = vmatpush.msrb.mxu2 %v4649_v32 }
0x1364   :  { %v1607_v26 = vpop.f32.mrf.mxu1 }
0x1365   :  { %v1656_v32 = vrot.slane %v1607_v26, 2 }
0x1367   :  { %v1662_v56 = vadd.f32 %v1656_v32, %v1650_v45 }
0x136a   :  { %v1627_v3 = vpop.f32.mrf.mxu2 }
0x136b   :  { %v1657_v4 = vrot.slane %v1627_v3, 2  ;;  %v1647_v7 = vpop.f32.mrf.mxu3 }
0x136c   :  { %v1658_v27 = vrot.slane %v1647_v7, 2 }
0x136d   :  { %v1663_v30 = vadd.f32 %v1657_v4, %v1651_v9 }
0x136e   :  { %v1664_v36 = vadd.f32 %v1658_v27, %v1652_v21 }
0x136f   :  { %3686 = vtanh.f32 %v1663_v30 }
0x1370   :  { %3688 = vtanh.f32 %v1664_v36 }
0x1371   :  { %3690 = vtanh.f32 %v1662_v56 }
0x1375   :  { %v3687_v40 = vpop.eup %3686 }
0x1376   :  { %v3689_v10 = vpop.eup %3688  ;;  %1684 = vrot.lane.b32.xlu1 %v3687_v40, %s3857_s20  ;;  %v1670_v12 = vmul.f32 0.5, %v3687_v40 }
0x1377   :  { %1686 = vrot.lane.b32.xlu2 %v3689_v10, %s3857_s20  ;;  %v3691_v50 = vpop.eup %3690  ;;  %v1672_v39 = vmul.f32 0.5, %v3689_v10 }
0x1378   :  { %v1671_v17 = vadd.f32 0.5, %v1670_v12  ;;  %v1668_v52 = vmul.f32 0.5, %v3691_v50 }
0x1379   :  { %v1673_v63 = vadd.f32 0.5, %v1672_v39 }
0x137a   :  { %v1681_v19 = vmul.f32 %v1677_v15, %v1671_v17  ;;  %v1669_v58 = vadd.f32 0.5, %v1668_v52 }
0x137c   :  { %v1680_v46 = vmul.f32 %v1676_v43, %v1669_v58 }
0x13d1   :  { %v1687_v53 = vpop.permute.xlu2 %1686 }
0x13e8   :  { %v1685_v55 = vpop.permute.xlu1 %1684 }
0x13e9   :  { %v1688_v61 = vsel %vm487_vm13, %v1685_v55, %v1687_v53 }
0x13ea   :  { %v1690_v62 = vmul.f32 %v1688_v61, %v1669_v58  ;;  %v1983_v61 = vld [vmem:[#allocation4 + $0x38] sm:$0xc] }
0x13ec   :  { %1692 = vrot.lane.b32.xlu0 %v1690_v62, %s3859_s28 }
0x145e   :  { %v1693_v51 = vpop.permute.xlu0 %1692 }
0x145f   :  { %v1695_v31 = vadd.f32 %v1693_v51, %v1680_v46  ;;  %v1696_v35 = vadd.f32 %v1693_v51, %v1681_v19  ;;  %v1984_v46 = vld [vmem:[#allocation4 + $0x28] sm:$0xc] }
0x1461   :  { %3692 = vtanh.f32 %v1695_v31  ;;  %v1839_v21 = vrot.slane %v1695_v31, 6 }
0x1462   :  { %3694 = vtanh.f32 %v1696_v35 }
0x1467   :  { %v3693_v37 = vpop.eup %3692 }
0x1468   :  { %v3695_v60 = vpop.eup %3694  ;;  %1701 = vrot.lane.b32.xlu1 %v3693_v37, %s3857_s20 }
0x1469   :  { %1703 = vrot.lane.b32.xlu2 %v3695_v60, %s3857_s20 }
0x14c3   :  { %v1704_v47 = vpop.permute.xlu2 %1703 }
0x14da   :  { %v1702_v0 = vpop.permute.xlu1 %1701 }
0x14db   :  { %v1705_v1 = vsel %vm487_vm13, %v1702_v0, %v1704_v47 }
0x14dc   :  { %v4814_v41 = vmul.f32 %v1705_v1, %v1673_v63  ;;  %v1982_v1 = vld [vmem:[#allocation4 + $0x8] sm:$0xc] }
0x14de   :  { %v1757_v44 = vrot.slane %v4814_v41, 6 }
0x14e0   :  { %1758 = vrot.lane.b32.xlu0 %v1757_v44, %s3859_s28 }
0x1552   :  { %v1759_v2 = vpop.permute.xlu0 %1758 }
0x1553   :  { %3541 = vmatmul.msk.f32.vlgmr.msra.gmra.mxu0 %vm557_vm15, %v1759_v2  ;;  %3542 = vmatmul.msk.f32.vlgmr.msrb.gmra.mxu1 %vm557_vm15, %v1759_v2 }
0x1554   :  { %3543 = vmatmul.msk.f32.vlgmr.msra.gmra.mxu2 %vm557_vm15, %v1759_v2  ;;  %2138 = vmatpush.msra.mxu0 %v4562_v5 }
0x1556   :  { %2139 = vmatpush.msra.mxu0 %v4570_v23  ;;  %v1823_v23 = vld [vmem:[#allocation4 + $0x38] sm:$0x3] }
0x1558   :  { %2140 = vmatpush.msra.mxu0 %v4580_v33 }
0x155a   :  { %2141 = vmatpush.msra.mxu0 %v4590_v24 }
0x155c   :  { %2142 = vmatpush.msra.mxu0 %v4598_v57  ;;  %v1824_v57 = vld [vmem:[#allocation4 + $0x28] sm:$0x3] }
0x155e   :  { %2143 = vmatpush.msra.mxu0 %v4606_v11 }
0x1560   :  { %2144 = vmatpush.msra.mxu0 %v4614_v20 }
0x1562   :  { %2145 = vmatpush.msra.mxu0 %v4622_v16  ;;  %v1840_v16 = vrot.slane %v1696_v35, 6 }
0x1564   :  { %2146 = vmatpush.msra.mxu0 %v4630_v18 }
0x1566   :  { %2147 = vmatpush.msra.mxu0 %v4638_v22 }
0x1568   :  { %2148 = vmatpush.msra.mxu0 %v4646_v29 }
0x156a   :  { %2149 = vmatpush.msra.mxu0 %v4654_v38  ;;  %v1822_v38 = vld [vmem:[#allocation4 + $0x8] sm:$0x3] }
0x15d0   :  { %v1799_v5 = vpop.f32.mrf.mxu1  ;;  %v1779_v29 = vpop.f32.mrf.mxu0 }
0x15d1   :  { %v1826_v33 = vadd.f32 %v1823_v23, %v1799_v5  ;;  %v1825_v48 = vadd.f32 %v1822_v38, %v1779_v29  ;;  %v4861_v38 = vld [vmem:[#allocation7 + $0xb0] sm:$0xff] }
0x15d2   :  { %2122 = vmatpush.msrb.mxu3 %v4861_v38 }
0x15d3   :  { %3696 = vtanh.f32 %v1826_v33 }
0x15d7   :  { %v1819_v24 = vpop.f32.mrf.mxu2 }
0x15d8   :  { %v1827_v59 = vadd.f32 %v1824_v57, %v1819_v24 }
0x15d9   :  { %v3697_v11 = vpop.eup %3696 }
0x15da   :  { %3698 = vtanh.f32 %v1827_v59  ;;  %1847 = vrot.lane.b32.xlu1 %v3697_v11, %s3857_s20  ;;  %v1833_v20 = vmul.f32 0.5, %v3697_v11 }
0x15db   :  { %3700 = vtanh.f32 %v1825_v48  ;;  %v4863_v48 = vld [vmem:[#allocation7 + $0x98] sm:$0xff] }
0x15dc   :  { %v1834_v18 = vadd.f32 0.5, %v1833_v20  ;;  %2123 = vmatpush.msrb.mxu3 %v4863_v48 }
0x15de   :  { %v1844_v42 = vmul.f32 %v1840_v16, %v1834_v18 }
0x15e0   :  { %v3699_v22 = vpop.eup %3698 }
0x15e1   :  { %1849 = vrot.lane.b32.xlu2 %v3699_v22, %s3857_s20  ;;  %v3701_v49 = vpop.eup %3700  ;;  %v1835_v19 = vmul.f32 0.5, %v3699_v22 }
0x15e2   :  { %v1831_v3 = vmul.f32 0.5, %v3701_v49  ;;  %v4866_v49 = vld [vmem:[#allocation7 + $0x80] sm:$0xff] }
0x15e3   :  { %v1836_v32 = vadd.f32 0.5, %v1835_v19  ;;  %2124 = vmatpush.msrb.mxu3 %v4866_v49 }
0x15e4   :  { %v1832_v4 = vadd.f32 0.5, %v1831_v3  ;;  %v4869_v3 = vld [vmem:[#allocation7 + $0x68] sm:$0xff] }
0x15e5   :  { %2125 = vmatpush.msrb.mxu3 %v4869_v3 }
0x15e6   :  { %v1843_v36 = vmul.f32 %v1839_v21, %v1832_v4 }
0x163b   :  { %v1850_v7 = vpop.permute.xlu2 %1849 }
0x164c   :  { %v1848_v9 = vpop.permute.xlu1 %1847 }
0x164d   :  { %v1851_v27 = vsel %vm487_vm13, %v1848_v9, %v1850_v7  ;;  %v4875_v7 = vld [vmem:[#allocation7 + $0x38] sm:$0xff]  ;;  %v4878_v9 = vld [vmem:[#allocation7 + $0x20] sm:$0xff] }
0x164e   :  { %v1853_v30 = vmul.f32 %v1851_v27, %v1832_v4  ;;  %v4872_v4 = vld [vmem:[#allocation7 + $0x50] sm:$0xff]  ;;  %v4881_v27 = vld [vmem:[#allocation7 + $0x8] sm:$0xff] }
0x164f   :  { %2126 = vmatpush.msrb.mxu3 %v4872_v4 }
0x1650   :  { %1855 = vrot.lane.b32.xlu0 %v1853_v30, %s3859_s28 }
0x1651   :  { %2127 = vmatpush.msrb.mxu3 %v4875_v7 }
0x1653   :  { %2128 = vmatpush.msrb.mxu3 %v4878_v9 }
0x1655   :  { %2129 = vmatpush.msrb.mxu3 %v4881_v27 }
0x16c2   :  { %v1856_v40 = vpop.permute.xlu0 %1855 }
0x16c3   :  { %v1858_v10 = vadd.f32 %v1856_v40, %v1843_v36  ;;  %v1859_v12 = vadd.f32 %v1856_v40, %v1844_v42 }
0x16c5   :  { %3702 = vtanh.f32 %v1858_v10  ;;  %v2009_v60 = vrot.slane %v1859_v12, 6  ;;  %v2008_v11 = vrot.slane %v1858_v10, 6 }
0x16c6   :  { %3704 = vtanh.f32 %v1859_v12 }
0x16cb   :  { %v3703_v15 = vpop.eup %3702 }
0x16cc   :  { %v3705_v17 = vpop.eup %3704  ;;  %1864 = vrot.lane.b32.xlu1 %v3703_v15, %s3857_s20 }
0x16cd   :  { %1866 = vrot.lane.b32.xlu2 %v3705_v17, %s3857_s20 }
0x1727   :  { %v1867_v26 = vpop.permute.xlu2 %1866 }
0x173e   :  { %v1865_v45 = vpop.permute.xlu1 %1864 }
0x173f   :  { %v1868_v56 = vsel %vm487_vm13, %v1865_v45, %v1867_v26 }
0x1740   :  { %v4840_v50 = vmul.f32 %v1868_v56, %v1836_v32  ;;  %v2156_v32 = vld [vmem:[#allocation4 + $0x28] sm:$0x30] }
0x1742   :  { %1880 = vrot.lane.b32.xlu0 %v4840_v50, %s3859_s28 }
0x17b4   :  { %v4844_v52 = vpop.permute.xlu0 %1880 }
0x17b5   :  { %3544 = vmatmul.msk.f32.vlgmr.msra.gmra.mxu3 %vm557_vm15, %v4844_v52  ;;  %3545 = vmatmul.msk.f32.vlgmr.msrb.gmra.mxu0 %vm557_vm15, %v4844_v52 }
0x17b6   :  { %3546 = vmatmul.msk.f32.vlgmr.msra.gmra.mxu1 %vm557_vm15, %v4844_v52 }
0x1832   :  { %v1959_v53 = vpop.f32.mrf.mxu0 }
0x1833   :  { %v1989_v55 = vrot.slane %v1959_v53, 6  ;;  %v1979_v58 = vpop.f32.mrf.mxu1 }
0x1834   :  { %v1990_v62 = vrot.slane %v1979_v58, 6 }
0x1835   :  { %v1995_v43 = vadd.f32 %v1989_v55, %v1983_v61  ;;  %v2155_v55 = vld [vmem:[#allocation4 + $0x38] sm:$0x30] }
0x1836   :  { %v1996_v51 = vadd.f32 %v1990_v62, %v1984_v46 }
0x1837   :  { %3706 = vtanh.f32 %v1995_v43 }
0x1838   :  { %3708 = vtanh.f32 %v1996_v51  ;;  %v1939_v63 = vpop.f32.mrf.mxu3 }
0x1839   :  { %v1988_v0 = vrot.slane %v1939_v63, 6 }
0x183b   :  { %v1994_v44 = vadd.f32 %v1988_v0, %v1982_v1 }
0x183d   :  { %v3707_v31 = vpop.eup %3706  ;;  %3710 = vtanh.f32 %v1994_v44 }
0x183e   :  { %v3709_v35 = vpop.eup %3708  ;;  %2016 = vrot.lane.b32.xlu1 %v3707_v31, %s3857_s20  ;;  %v2002_v37 = vmul.f32 0.5, %v3707_v31 }
0x183f   :  { %2018 = vrot.lane.b32.xlu2 %v3709_v35, %s3857_s20  ;;  %v2004_v30 = vmul.f32 0.5, %v3709_v35 }
0x1840   :  { %v2003_v39 = vadd.f32 0.5, %v2002_v37 }
0x1841   :  { %v2005_v36 = vadd.f32 0.5, %v2004_v30  ;;  %v4921_v30 = vld [vmem:[#allocation7 + $0x100] sm:$0xff] }
0x1842   :  { %v2013_v47 = vmul.f32 %v2009_v60, %v2003_v39  ;;  %v2154_v60 = vld [vmem:[#allocation4 + $0x8] sm:$0x30] }
0x1843   :  { %v3711_v2 = vpop.eup %3710 }
0x1844   :  { %v2000_v5 = vmul.f32 0.5, %v3711_v2 }
0x1846   :  { %v2001_v24 = vadd.f32 0.5, %v2000_v5 }
0x1848   :  { %v2012_v20 = vmul.f32 %v2008_v11, %v2001_v24 }
0x1899   :  { %v2019_v23 = vpop.permute.xlu2 %2018 }
0x18b0   :  { %v2017_v33 = vpop.permute.xlu1 %2016 }
0x18b1   :  { %v2020_v57 = vsel %vm487_vm13, %v2017_v33, %v2019_v23 }
0x18b2   :  { %v2022_v59 = vmul.f32 %v2020_v57, %v2001_v24 }
0x18b4   :  { %2024 = vrot.lane.b32.xlu0 %v2022_v59, %s3859_s28 }
0x1926   :  { %v2025_v16 = vpop.permute.xlu0 %2024 }
0x1927   :  { %v4856_v18 = vadd.f32 %v2025_v16, %v2012_v20  ;;  %v2028_v42 = vadd.f32 %v2025_v16, %v2013_v47  ;;  %v4909_v16 = vld [vmem:[#allocation7 + $0x108] sm:$0xff] }
0x1928   :  { %2270 = vmatpush.msrb.mxu1 %v4909_v16  ;;  %2442 = vmatpush.msrb.mxu0 %v4909_v16 }
0x1929   :  { %3712 = vtanh.f32 %v4856_v18  ;;  %v2181_v46 = vrot.slane %v2028_v42, 6  ;;  %v2180_v23 = vrot.slane %v4856_v18, 6  ;;  %v4913_v18 = vld [vmem:[#allocation7 + $0x118] sm:$0xff] }
0x192a   :  { %3714 = vtanh.f32 %v2028_v42  ;;  %v4911_v42 = vld [vmem:[#allocation7 + $0x110] sm:$0xff]  ;;  %2310 = vmatpush.msra.mxu3 %v4913_v18 }
0x192b   :  { %2290 = vmatpush.msra.mxu2 %v4911_v42 }
0x192c   :  { %2311 = vmatpush.msra.mxu3 %v4921_v30 }
0x192f   :  { %v3713_v22 = vpop.eup %3712 }
0x1930   :  { %v3715_v29 = vpop.eup %3714  ;;  %2033 = vrot.lane.b32.xlu1 %v3713_v22, %s3857_s20  ;;  %v4917_v22 = vld [vmem:[#allocation7 + $0xf0] sm:$0xff] }
0x1931   :  { %2035 = vrot.lane.b32.xlu2 %v3715_v29, %s3857_s20  ;;  %v4919_v29 = vld [vmem:[#allocation7 + $0xf8] sm:$0xff]  ;;  %2271 = vmatpush.msrb.mxu1 %v4917_v22 }
0x1932   :  { %2291 = vmatpush.msra.mxu2 %v4919_v29  ;;  %2443 = vmatpush.msrb.mxu0 %v4917_v22 }
0x198b   :  { %v2036_v21 = vpop.permute.xlu2 %2035 }
0x19a2   :  { %v2034_v40 = vpop.permute.xlu1 %2033 }
0x19a3   :  { %v2037_v10 = vsel %vm487_vm13, %v2034_v40, %v2036_v21  ;;  %v4924_v21 = vld [vmem:[#allocation7 + $0xd8] sm:$0xff]  ;;  %v4931_v40 = vld [vmem:[#allocation7 + $0xe8] sm:$0xff] }
0x19a4   :  { %v4886_v12 = vmul.f32 %v2037_v10, %v2005_v36  ;;  %v4926_v36 = vld [vmem:[#allocation7 + $0xe0] sm:$0xff]  ;;  %2272 = vmatpush.msrb.mxu1 %v4924_v21  ;;  %2312 = vmatpush.msra.mxu3 %v4931_v40 }
0x19a5   :  { %v4934_v10 = vld [vmem:[#allocation7 + $0xc0] sm:$0xff]  ;;  %2292 = vmatpush.msra.mxu2 %v4926_v36  ;;  %2444 = vmatpush.msrb.mxu0 %v4924_v21 }
0x19a6   :  { %v2089_v15 = vrot.slane %v4886_v12, 2  ;;  %2273 = vmatpush.msrb.mxu1 %v4934_v10 }
0x19a7   :  { %2445 = vmatpush.msrb.mxu0 %v4934_v10 }
0x19a8   :  { %2090 = vrot.lane.b32.xlu0 %v2089_v15, %s3859_s28  ;;  %v4936_v15 = vld [vmem:[#allocation7 + $0xc8] sm:$0xff] }
0x19a9   :  { %2293 = vmatpush.msra.mxu2 %v4936_v15 }
0x19ab   :  { %2294 = vmatpush.msra.mxu2 %v4861_v38 }
0x19ad   :  { %2295 = vmatpush.msra.mxu2 %v4863_v48 }
0x19af   :  { %2296 = vmatpush.msra.mxu2 %v4866_v49 }
0x19b1   :  { %2297 = vmatpush.msra.mxu2 %v4869_v3 }
0x19b3   :  { %2298 = vmatpush.msra.mxu2 %v4872_v4 }
0x19b5   :  { %2299 = vmatpush.msra.mxu2 %v4875_v7 }
0x19b7   :  { %2300 = vmatpush.msra.mxu2 %v4878_v9 }
0x19b9   :  { %2301 = vmatpush.msra.mxu2 %v4881_v27 }
0x1a1a   :  { %v2091_v17 = vpop.permute.xlu0 %2090 }
0x1a1b   :  { %3547 = vmatmul.msk.f32.vlgmr.msrb.gmra.mxu2 %vm557_vm15, %v2091_v17  ;;  %3548 = vmatmul.msk.f32.vlgmr.msrb.gmra.mxu3 %vm557_vm15, %v2091_v17 }
0x1a1c   :  { %3549 = vmatmul.msk.f32.vlgmr.msra.gmra.mxu0 %vm557_vm15, %v2091_v17  ;;  %v4941_v17 = vld [vmem:[#allocation7 + $0xd0] sm:$0xff]  ;;  %2482 = vmatpush.msrb.mxu2 %v4913_v18 }
0x1a1d   :  { %2313 = vmatpush.msra.mxu3 %v4941_v17 }
0x1a1e   :  { %2483 = vmatpush.msrb.mxu2 %v4921_v30 }
0x1a20   :  { %2484 = vmatpush.msrb.mxu2 %v4931_v40 }
0x1a22   :  { %2485 = vmatpush.msrb.mxu2 %v4941_v17 }
0x1a99   :  { %v2151_v19 = vpop.f32.mrf.mxu0 }
0x1a9a   :  { %v2162_v26 = vrot.slane %v2151_v19, 4  ;;  %v4944_v19 = vld [vmem:[#allocation7 + $0xa8] sm:$0xff] }
0x1a9b   :  { %2274 = vmatpush.msrb.mxu1 %v4944_v19  ;;  %2446 = vmatpush.msrb.mxu0 %v4944_v19 }
0x1a9c   :  { %v2168_v45 = vadd.f32 %v2162_v26, %v2156_v32  ;;  %v4949_v26 = vld [vmem:[#allocation7 + $0xb8] sm:$0xff]  ;;  %v4952_v32 = vld [vmem:[#allocation7 + $0x90] sm:$0xff] }
0x1a9d   :  { %2314 = vmatpush.msra.mxu3 %v4949_v26  ;;  %2275 = vmatpush.msrb.mxu1 %v4952_v32 }
0x1a9e   :  { %3716 = vtanh.f32 %v2168_v45  ;;  %v2131_v56 = vpop.f32.mrf.mxu3  ;;  %v2111_v35 = vpop.f32.mrf.mxu2  ;;  %v4957_v45 = vld [vmem:[#allocation7 + $0xa0] sm:$0xff]  ;;  %2447 = vmatpush.msrb.mxu0 %v4952_v32  ;;  %2486 = vmatpush.msrb.mxu2 %v4949_v26 }
0x1a9f   :  { %v2161_v53 = vrot.slane %v2131_v56, 4  ;;  %v2160_v37 = vrot.slane %v2111_v35, 4  ;;  %v4960_v56 = vld [vmem:[#allocation7 + $0x78] sm:$0xff]  ;;  %2315 = vmatpush.msra.mxu3 %v4957_v45  ;;  %v4997_v35 = vld [vmem:[#allocation7 + $0x28] sm:$0xff] }
0x1aa0   :  { %2276 = vmatpush.msrb.mxu1 %v4960_v56  ;;  %2448 = vmatpush.msrb.mxu0 %v4960_v56 }
0x1aa1   :  { %v2167_v58 = vadd.f32 %v2161_v53, %v2155_v55  ;;  %v2166_v39 = vadd.f32 %v2160_v37, %v2154_v60  ;;  %v4965_v53 = vld [vmem:[#allocation7 + $0x88] sm:$0xff]  ;;  %v4968_v55 = vld [vmem:[#allocation7 + $0x60] sm:$0xff]  ;;  %v5005_v60 = vld [vmem:[#allocation7 + $0x10] sm:$0xff]  ;;  %2487 = vmatpush.msrb.mxu2 %v4957_v45 }
0x1aa2   :  { %2316 = vmatpush.msra.mxu3 %v4965_v53  ;;  %2277 = vmatpush.msrb.mxu1 %v4968_v55  ;;  %v5000_v37 = vld [vmem:[#allocation7] sm:$0xff] }
0x1aa3   :  { %3718 = vtanh.f32 %v2167_v58  ;;  %v4973_v58 = vld [vmem:[#allocation7 + $0x70] sm:$0xff]  ;;  %2449 = vmatpush.msrb.mxu0 %v4968_v55  ;;  %2488 = vmatpush.msrb.mxu2 %v4965_v53 }
0x1aa4   :  { %v4893_v61 = vpop.eup %3716  ;;  %3720 = vtanh.f32 %v2166_v39  ;;  %2317 = vmatpush.msra.mxu3 %v4973_v58 }
0x1aa5   :  { %2190 = vrot.lane.b32.xlu2 %v4893_v61, %s3857_s20  ;;  %v2176_v39 = vmul.f32 0.5, %v4893_v61  ;;  %2489 = vmatpush.msrb.mxu2 %v4973_v58 }
0x1aa9   :  { %v3719_v62 = vpop.eup %3718 }
0x1aaa   :  { %2188 = vrot.lane.b32.xlu1 %v3719_v62, %s3857_s20  ;;  %v2174_v43 = vmul.f32 0.5, %v3719_v62  ;;  %v3721_v47 = vpop.eup %3720  ;;  %v4976_v62 = vld [vmem:[#allocation7 + $0x48] sm:$0xff] }
0x1aab   :  { %v2172_v63 = vmul.f32 0.5, %v3721_v47  ;;  %2278 = vmatpush.msrb.mxu1 %v4976_v62  ;;  %2450 = vmatpush.msrb.mxu0 %v4976_v62 }
0x1aac   :  { %v2175_v51 = vadd.f32 0.5, %v2174_v43  ;;  %v4981_v43 = vld [vmem:[#allocation7 + $0x58] sm:$0xff] }
0x1aad   :  { %v2173_v44 = vadd.f32 0.5, %v2172_v63  ;;  %2318 = vmatpush.msra.mxu3 %v4981_v43  ;;  %v2177_v63 = vadd.f32 0.5, %v2176_v39  ;;  %2490 = vmatpush.msrb.mxu2 %v4981_v43 }
0x1aae   :  { %v2185_v31 = vmul.f32 %v2181_v46, %v2175_v51  ;;  %v4984_v46 = vld [vmem:[#allocation7 + $0x30] sm:$0xff]  ;;  %v4989_v51 = vld [vmem:[#allocation7 + $0x40] sm:$0xff] }
0x1aaf   :  { %v2184_v33 = vmul.f32 %v2180_v23, %v2173_v44  ;;  %2279 = vmatpush.msrb.mxu1 %v4984_v46  ;;  %2319 = vmatpush.msra.mxu3 %v4989_v51  ;;  %v2328_v23 = vld [vmem:[#allocation4 + $0x28] sm:$0xc0] }
0x1ab0   :  { %2451 = vmatpush.msrb.mxu0 %v4984_v46  ;;  %2491 = vmatpush.msrb.mxu2 %v4989_v51 }
0x1ab1   :  { %2320 = vmatpush.msra.mxu3 %v4997_v35 }
0x1ab2   :  { %2492 = vmatpush.msrb.mxu2 %v4997_v35 }
0x1ab3   :  { %2321 = vmatpush.msra.mxu3 %v5005_v60 }
0x1ab4   :  { %2493 = vmatpush.msrb.mxu2 %v5005_v60 }
0x1ab5   :  { %2602 = vmatpush.msrb.mxu3 %v4909_v16 }
0x1ab7   :  { %2603 = vmatpush.msrb.mxu3 %v4917_v22 }
0x1ab9   :  { %2604 = vmatpush.msrb.mxu3 %v4924_v21 }
0x1abb   :  { %2605 = vmatpush.msrb.mxu3 %v4934_v10 }
0x1abd   :  { %2606 = vmatpush.msrb.mxu3 %v4944_v19 }
0x1abf   :  { %2607 = vmatpush.msrb.mxu3 %v4952_v32 }
0x1ac1   :  { %2608 = vmatpush.msrb.mxu3 %v4960_v56 }
0x1ac3   :  { %2609 = vmatpush.msrb.mxu3 %v4968_v55 }
0x1ac5   :  { %2610 = vmatpush.msrb.mxu3 %v4976_v62 }
0x1ac7   :  { %2611 = vmatpush.msrb.mxu3 %v4984_v46 }
0x1aff   :  { %v2191_v0 = vpop.permute.xlu2 %2190 }
0x1b1c   :  { %v2189_v1 = vpop.permute.xlu1 %2188 }
0x1b1d   :  { %v2192_v2 = vsel %vm487_vm13, %v2189_v1, %v2191_v0 }
0x1b1e   :  { %v2194_v5 = vmul.f32 %v2192_v2, %v2173_v44 }
0x1b20   :  { %2196 = vrot.lane.b32.xlu0 %v2194_v5, %s3859_s28 }
0x1b92   :  { %v2197_v24 = vpop.permute.xlu0 %2196 }
0x1b93   :  { %v4901_v57 = vadd.f32 %v2197_v24, %v2184_v33  ;;  %v4903_v59 = vadd.f32 %v2197_v24, %v2185_v31  ;;  %v4992_v31 = vld [vmem:[#allocation7 + $0x18] sm:$0xff] }
0x1b94   :  { %2280 = vmatpush.msrb.mxu1 %v4992_v31  ;;  %2452 = vmatpush.msrb.mxu0 %v4992_v31 }
0x1b95   :  { %3722 = vtanh.f32 %v4901_v57  ;;  %2612 = vmatpush.msrb.mxu3 %v4992_v31 }
0x1b96   :  { %3724 = vtanh.f32 %v4903_v59  ;;  %2281 = vmatpush.msrb.mxu1 %v5000_v37  ;;  %2453 = vmatpush.msrb.mxu0 %v5000_v37 }
0x1b97   :  { %2613 = vmatpush.msrb.mxu3 %v5000_v37 }
0x1b98   :  { %2462 = vmatpush.msra.mxu1 %v4911_v42  ;;  %2622 = vmatpush.msra.mxu0 %v4911_v42 }
0x1b9a   :  { %2463 = vmatpush.msra.mxu1 %v4919_v29  ;;  %2623 = vmatpush.msra.mxu0 %v4919_v29 }
0x1b9b   :  { %v3723_v11 = vpop.eup %3722 }
0x1b9c   :  { %v3725_v20 = vpop.eup %3724  ;;  %2205 = vrot.lane.b32.xlu1 %v3723_v11, %s3857_s20  ;;  %2464 = vmatpush.msra.mxu1 %v4926_v36  ;;  %v2353_v11 = vrot.slane %v4903_v59, 6 }
0x1b9d   :  { %2207 = vrot.lane.b32.xlu2 %v3725_v20, %s3857_s20  ;;  %2624 = vmatpush.msra.mxu0 %v4926_v36 }
0x1b9e   :  { %2465 = vmatpush.msra.mxu1 %v4936_v15 }
0x1b9f   :  { %2625 = vmatpush.msra.mxu0 %v4936_v15 }
0x1ba0   :  { %2466 = vmatpush.msra.mxu1 %v4861_v38 }
0x1ba1   :  { %2626 = vmatpush.msra.mxu0 %v4861_v38 }
0x1ba2   :  { %2467 = vmatpush.msra.mxu1 %v4863_v48 }
0x1ba3   :  { %2627 = vmatpush.msra.mxu0 %v4863_v48 }
0x1ba4   :  { %2468 = vmatpush.msra.mxu1 %v4866_v49 }
0x1ba5   :  { %2628 = vmatpush.msra.mxu0 %v4866_v49 }
0x1ba6   :  { %2469 = vmatpush.msra.mxu1 %v4869_v3 }
0x1ba7   :  { %2629 = vmatpush.msra.mxu0 %v4869_v3 }
0x1ba8   :  { %2470 = vmatpush.msra.mxu1 %v4872_v4 }
0x1ba9   :  { %2630 = vmatpush.msra.mxu0 %v4872_v4 }
0x1baa   :  { %2471 = vmatpush.msra.mxu1 %v4875_v7 }
0x1bab   :  { %2631 = vmatpush.msra.mxu0 %v4875_v7 }
0x1bac   :  { %2472 = vmatpush.msra.mxu1 %v4878_v9 }
0x1bad   :  { %2632 = vmatpush.msra.mxu0 %v4878_v9 }
0x1bae   :  { %2473 = vmatpush.msra.mxu1 %v4881_v27 }
0x1baf   :  { %2633 = vmatpush.msra.mxu0 %v4881_v27 }
0x1bf7   :  { %v2208_v47 = vpop.permute.xlu2 %2207 }
0x1c0e   :  { %v2206_v0 = vpop.permute.xlu1 %2205 }
0x1c0f   :  { %v2209_v61 = vsel %vm487_vm13, %v2206_v0, %v2208_v47 }
0x1c10   :  { %v5021_v1 = vmul.f32 %v2209_v61, %v2177_v63  ;;  %v2326_v63 = vld [vmem:[#allocation4 + $0x8] sm:$0xc0] }
0x1c12   :  { %v2261_v44 = vrot.slane %v5021_v1, 4 }
0x1c14   :  { %2262 = vrot.lane.b32.xlu0 %v2261_v44, %s3859_s28 }
0x1c86   :  { %v2263_v2 = vpop.permute.xlu0 %2262 }
0x1c87   :  { %3550 = vmatmul.msk.f32.vlgmr.msrb.gmra.mxu1 %vm557_vm15, %v2263_v2  ;;  %3551 = vmatmul.msk.f32.vlgmr.msra.gmra.mxu2 %vm557_vm15, %v2263_v2 }
0x1c88   :  { %3552 = vmatmul.msk.f32.vlgmr.msra.gmra.mxu3 %vm557_vm15, %v2263_v2  ;;  %2642 = vmatpush.msrb.mxu1 %v4913_v18 }
0x1c89   :  { %2774 = vmatpush.msra.mxu2 %v4909_v16  ;;  %2794 = vmatpush.msra.mxu3 %v4911_v42 }
0x1c8a   :  { %2643 = vmatpush.msrb.mxu1 %v4921_v30 }
0x1c8b   :  { %2775 = vmatpush.msra.mxu2 %v4917_v22  ;;  %2795 = vmatpush.msra.mxu3 %v4919_v29 }
0x1c8c   :  { %2644 = vmatpush.msrb.mxu1 %v4931_v40 }
0x1c8d   :  { %2776 = vmatpush.msra.mxu2 %v4924_v21  ;;  %2796 = vmatpush.msra.mxu3 %v4926_v36 }
0x1c8e   :  { %2645 = vmatpush.msrb.mxu1 %v4941_v17 }
0x1c8f   :  { %2777 = vmatpush.msra.mxu2 %v4934_v10  ;;  %2797 = vmatpush.msra.mxu3 %v4936_v15 }
0x1c90   :  { %2646 = vmatpush.msrb.mxu1 %v4949_v26 }
0x1c91   :  { %2778 = vmatpush.msra.mxu2 %v4944_v19  ;;  %2798 = vmatpush.msra.mxu3 %v4861_v38 }
0x1c92   :  { %2647 = vmatpush.msrb.mxu1 %v4957_v45 }
0x1c93   :  { %2779 = vmatpush.msra.mxu2 %v4952_v32  ;;  %2799 = vmatpush.msra.mxu3 %v4863_v48 }
0x1c94   :  { %2648 = vmatpush.msrb.mxu1 %v4965_v53 }
0x1c95   :  { %2780 = vmatpush.msra.mxu2 %v4960_v56  ;;  %2800 = vmatpush.msra.mxu3 %v4866_v49 }
0x1c96   :  { %2649 = vmatpush.msrb.mxu1 %v4973_v58 }
0x1c97   :  { %2781 = vmatpush.msra.mxu2 %v4968_v55  ;;  %2801 = vmatpush.msra.mxu3 %v4869_v3  ;;  %v2327_v3 = vld [vmem:[#allocation4 + $0x38] sm:$0xc0] }
0x1c98   :  { %2650 = vmatpush.msrb.mxu1 %v4981_v43 }
0x1c99   :  { %2782 = vmatpush.msra.mxu2 %v4976_v62  ;;  %2802 = vmatpush.msra.mxu3 %v4872_v4 }
0x1c9a   :  { %2651 = vmatpush.msrb.mxu1 %v4989_v51 }
0x1c9b   :  { %2783 = vmatpush.msra.mxu2 %v4984_v46  ;;  %2803 = vmatpush.msra.mxu3 %v4875_v7 }
0x1c9c   :  { %2652 = vmatpush.msrb.mxu1 %v4997_v35 }
0x1c9d   :  { %2784 = vmatpush.msra.mxu2 %v4992_v31  ;;  %2804 = vmatpush.msra.mxu3 %v4878_v9 }
0x1c9e   :  { %2653 = vmatpush.msrb.mxu1 %v5005_v60 }
0x1c9f   :  { %2785 = vmatpush.msra.mxu2 %v5000_v37  ;;  %2805 = vmatpush.msra.mxu3 %v4881_v27 }
0x1d04   :  { %v2283_v39 = vpop.f32.mrf.mxu1 }
0x1d05   :  { %v2332_v47 = vrot.slane %v2283_v39, 2 }
0x1d07   :  { %v2338_v0 = vadd.f32 %v2332_v47, %v2326_v63 }
0x1d0a   :  { %v2303_v38 = vpop.f32.mrf.mxu2 }
0x1d0b   :  { %v2333_v48 = vrot.slane %v2303_v38, 2  ;;  %v2323_v49 = vpop.f32.mrf.mxu3 }
0x1d0c   :  { %v2334_v4 = vrot.slane %v2323_v49, 2 }
0x1d0d   :  { %v2339_v5 = vadd.f32 %v2333_v48, %v2327_v3 }
0x1d0e   :  { %v2340_v7 = vadd.f32 %v2334_v4, %v2328_v23  ;;  %v2352_v4 = vrot.slane %v4901_v57, 6 }
0x1d0f   :  { %3726 = vtanh.f32 %v2339_v5 }
0x1d10   :  { %3728 = vtanh.f32 %v2340_v7 }
0x1d11   :  { %3730 = vtanh.f32 %v2338_v0 }
0x1d15   :  { %v3727_v33 = vpop.eup %3726 }
0x1d16   :  { %v3729_v24 = vpop.eup %3728  ;;  %2360 = vrot.lane.b32.xlu1 %v3727_v33, %s3857_s20  ;;  %v2346_v9 = vmul.f32 0.5, %v3727_v33 }
0x1d17   :  { %2362 = vrot.lane.b32.xlu2 %v3729_v24, %s3857_s20  ;;  %v3731_v61 = vpop.eup %3730 }
0x1d18   :  { %v2347_v27 = vadd.f32 0.5, %v2346_v9  ;;  %v2344_v44 = vmul.f32 0.5, %v3731_v61 }
0x1d1a   :  { %v2357_v20 = vmul.f32 %v2353_v11, %v2347_v27  ;;  %v2345_v48 = vadd.f32 0.5, %v2344_v44  ;;  %v2348_v11 = vmul.f32 0.5, %v3729_v24 }
0x1d1c   :  { %v2356_v59 = vmul.f32 %v2352_v4, %v2345_v48  ;;  %v2349_v39 = vadd.f32 0.5, %v2348_v11 }
0x1d71   :  { %v2363_v2 = vpop.permute.xlu2 %2362 }
0x1d88   :  { %v2361_v38 = vpop.permute.xlu1 %2360 }
0x1d89   :  { %v2364_v49 = vsel %vm487_vm13, %v2361_v38, %v2363_v2 }
0x1d8a   :  { %v2366_v3 = vmul.f32 %v2364_v49, %v2345_v48 }
0x1d8c   :  { %2368 = vrot.lane.b32.xlu0 %v2366_v3, %s3859_s28 }
0x1dfe   :  { %v2369_v5 = vpop.permute.xlu0 %2368 }
0x1dff   :  { %v5112_v23 = vadd.f32 %v2369_v5, %v2356_v59  ;;  %v2372_v7 = vadd.f32 %v2369_v5, %v2357_v20 }
0x1e01   :  { %3732 = vtanh.f32 %v5112_v23  ;;  %v2515_v49 = vrot.slane %v5112_v23, 6 }
0x1e02   :  { %3734 = vtanh.f32 %v2372_v7 }
0x1e07   :  { %v3733_v33 = vpop.eup %3732 }
0x1e08   :  { %v3735_v9 = vpop.eup %3734  ;;  %2377 = vrot.lane.b32.xlu1 %v3733_v33, %s3857_s20 }
0x1e09   :  { %2379 = vrot.lane.b32.xlu2 %v3735_v9, %s3857_s20 }
0x1e63   :  { %v2380_v27 = vpop.permute.xlu2 %2379 }
0x1e7a   :  { %v2378_v47 = vpop.permute.xlu1 %2377 }
0x1e7b   :  { %v2381_v57 = vsel %vm487_vm13, %v2378_v47, %v2380_v27 }
0x1e7c   :  { %v5118_v63 = vmul.f32 %v2381_v57, %v2349_v39 }
0x1e7e   :  { %v2433_v0 = vrot.slane %v5118_v63, 6 }
0x1e80   :  { %2434 = vrot.lane.b32.xlu0 %v2433_v0, %s3859_s28 }
0x1ef2   :  { %v2435_v20 = vpop.permute.xlu0 %2434 }
0x1ef3   :  { %3553 = vmatmul.msk.f32.vlgmr.msrb.gmra.mxu0 %vm557_vm15, %v2435_v20  ;;  %3554 = vmatmul.msk.f32.vlgmr.msra.gmra.mxu1 %vm557_vm15, %v2435_v20 }
0x1ef4   :  { %3555 = vmatmul.msk.f32.vlgmr.msrb.gmra.mxu2 %vm557_vm15, %v2435_v20  ;;  %2814 = vmatpush.msrb.mxu0 %v4913_v18  ;;  %v2660_v20 = vld [vmem:[#allocation4 + $0x40] sm:$0xc] }
0x1ef5   :  { %2946 = vmatpush.msra.mxu1 %v4909_v16  ;;  %2966 = vmatpush.msrb.mxu2 %v4911_v42  ;;  %v2499_v42 = vld [vmem:[#allocation4 + $0x10] sm:$0x3] }
0x1ef6   :  { %2815 = vmatpush.msrb.mxu0 %v4921_v30 }
0x1ef7   :  { %2947 = vmatpush.msra.mxu1 %v4917_v22  ;;  %2967 = vmatpush.msrb.mxu2 %v4919_v29 }
0x1ef8   :  { %2816 = vmatpush.msrb.mxu0 %v4931_v40 }
0x1ef9   :  { %2948 = vmatpush.msra.mxu1 %v4924_v21  ;;  %2968 = vmatpush.msrb.mxu2 %v4926_v36  ;;  %v2500_v21 = vld [vmem:[#allocation4 + $0x40] sm:$0x3] }
0x1efa   :  { %2817 = vmatpush.msrb.mxu0 %v4941_v17 }
0x1efb   :  { %2949 = vmatpush.msra.mxu1 %v4934_v10  ;;  %2969 = vmatpush.msrb.mxu2 %v4936_v15 }
0x1efc   :  { %2818 = vmatpush.msrb.mxu0 %v4949_v26 }
0x1efd   :  { %2950 = vmatpush.msra.mxu1 %v4944_v19  ;;  %v2516_v19 = vrot.slane %v2372_v7, 6 }
0x1efe   :  { %2819 = vmatpush.msrb.mxu0 %v4957_v45 }
0x1eff   :  { %2951 = vmatpush.msra.mxu1 %v4952_v32 }
0x1f00   :  { %2820 = vmatpush.msrb.mxu0 %v4965_v53 }
0x1f01   :  { %2952 = vmatpush.msra.mxu1 %v4960_v56 }
0x1f02   :  { %2821 = vmatpush.msrb.mxu0 %v4973_v58 }
0x1f03   :  { %2953 = vmatpush.msra.mxu1 %v4968_v55 }
0x1f04   :  { %2822 = vmatpush.msrb.mxu0 %v4981_v43 }
0x1f05   :  { %2954 = vmatpush.msra.mxu1 %v4976_v62 }
0x1f06   :  { %2823 = vmatpush.msrb.mxu0 %v4989_v51 }
0x1f07   :  { %2955 = vmatpush.msra.mxu1 %v4984_v46  ;;  %v2498_v46 = vld [vmem:[#allocation4 + $0x48] sm:$0x3] }
0x1f08   :  { %2824 = vmatpush.msrb.mxu0 %v4997_v35 }
0x1f09   :  { %2956 = vmatpush.msra.mxu1 %v4992_v31 }
0x1f0a   :  { %2825 = vmatpush.msrb.mxu0 %v5005_v60 }
0x1f0b   :  { %2957 = vmatpush.msra.mxu1 %v5000_v37 }
0x1f70   :  { %v2475_v16 = vpop.f32.mrf.mxu1  ;;  %v2455_v62 = vpop.f32.mrf.mxu0 }
0x1f71   :  { %v2502_v22 = vadd.f32 %v2499_v42, %v2475_v16  ;;  %v2501_v31 = vadd.f32 %v2498_v46, %v2455_v62 }
0x1f73   :  { %3736 = vtanh.f32 %v2502_v22  ;;  %v2658_v22 = vld [vmem:[#allocation4 + $0x48] sm:$0xc] }
0x1f77   :  { %v2495_v29 = vpop.f32.mrf.mxu2 }
0x1f78   :  { %v2503_v36 = vadd.f32 %v2500_v21, %v2495_v29 }
0x1f79   :  { %v3737_v10 = vpop.eup %3736 }
0x1f7a   :  { %3738 = vtanh.f32 %v2503_v36  ;;  %2523 = vrot.lane.b32.xlu1 %v3737_v10, %s3857_s20  ;;  %v2509_v15 = vmul.f32 0.5, %v3737_v10 }
0x1f7b   :  { %3740 = vtanh.f32 %v2501_v31 }
0x1f7c   :  { %v2510_v32 = vadd.f32 0.5, %v2509_v15 }
0x1f7e   :  { %v2520_v56 = vmul.f32 %v2516_v19, %v2510_v32 }
0x1f80   :  { %v3739_v55 = vpop.eup %3738 }
0x1f81   :  { %2525 = vrot.lane.b32.xlu2 %v3739_v55, %s3857_s20  ;;  %v3741_v37 = vpop.eup %3740  ;;  %v2511_v9 = vmul.f32 0.5, %v3739_v55 }
0x1f82   :  { %v2507_v24 = vmul.f32 0.5, %v3741_v37 }
0x1f83   :  { %v2512_v27 = vadd.f32 0.5, %v2511_v9 }
0x1f84   :  { %v2508_v61 = vadd.f32 0.5, %v2507_v24 }
0x1f86   :  { %v2519_v3 = vmul.f32 %v2515_v49, %v2508_v61 }
0x1fdb   :  { %v2526_v44 = vpop.permute.xlu2 %2525 }
0x1fec   :  { %v2524_v2 = vpop.permute.xlu1 %2523 }
0x1fed   :  { %v2527_v38 = vsel %vm487_vm13, %v2524_v2, %v2526_v44 }
0x1fee   :  { %v2529_v48 = vmul.f32 %v2527_v38, %v2508_v61 }
0x1ff0   :  { %2531 = vrot.lane.b32.xlu0 %v2529_v48, %s3859_s28 }
0x2062   :  { %v2532_v4 = vpop.permute.xlu0 %2531 }
0x2063   :  { %v5158_v59 = vadd.f32 %v2532_v4, %v2519_v3  ;;  %v2535_v5 = vadd.f32 %v2532_v4, %v2520_v56 }
0x2065   :  { %3742 = vtanh.f32 %v5158_v59  ;;  %v2684_v55 = vrot.slane %v5158_v59, 6 }
0x2066   :  { %3744 = vtanh.f32 %v2535_v5 }
0x206b   :  { %v3743_v7 = vpop.eup %3742 }
0x206c   :  { %v3745_v33 = vpop.eup %3744  ;;  %2540 = vrot.lane.b32.xlu1 %v3743_v7, %s3857_s20 }
0x206d   :  { %2542 = vrot.lane.b32.xlu2 %v3745_v33, %s3857_s20  ;;  %v2832_v33 = vld [vmem:[#allocation4 + $0x40] sm:$0x30] }
0x20c7   :  { %v2543_v11 = vpop.permute.xlu2 %2542 }
0x20de   :  { %v2541_v39 = vpop.permute.xlu1 %2540 }
0x20df   :  { %v2544_v23 = vsel %vm487_vm13, %v2541_v39, %v2543_v11  ;;  %v2831_v39 = vld [vmem:[#allocation4 + $0x10] sm:$0x30] }
0x20e0   :  { %v5164_v47 = vmul.f32 %v2544_v23, %v2512_v27 }
0x20e2   :  { %2556 = vrot.lane.b32.xlu0 %v5164_v47, %s3859_s28 }
0x2154   :  { %v5168_v57 = vpop.permute.xlu0 %2556 }
0x2155   :  { %3556 = vmatmul.msk.f32.vlgmr.msrb.gmra.mxu3 %vm557_vm15, %v5168_v57  ;;  %3557 = vmatmul.msk.f32.vlgmr.msra.gmra.mxu0 %vm557_vm15, %v5168_v57 }
0x2156   :  { %3558 = vmatmul.msk.f32.vlgmr.msrb.gmra.mxu1 %vm557_vm15, %v5168_v57  ;;  %2986 = vmatpush.msrb.mxu3 %v4913_v18 }
0x2158   :  { %2987 = vmatpush.msrb.mxu3 %v4921_v30 }
0x215a   :  { %2988 = vmatpush.msrb.mxu3 %v4931_v40 }
0x215c   :  { %2989 = vmatpush.msrb.mxu3 %v4941_v17  ;;  %v2659_v17 = vld [vmem:[#allocation4 + $0x10] sm:$0xc] }
0x215e   :  { %2990 = vmatpush.msrb.mxu3 %v4949_v26 }
0x2160   :  { %2991 = vmatpush.msrb.mxu3 %v4957_v45 }
0x2162   :  { %2992 = vmatpush.msrb.mxu3 %v4965_v53 }
0x2164   :  { %2993 = vmatpush.msrb.mxu3 %v4973_v58 }
0x2166   :  { %2994 = vmatpush.msrb.mxu3 %v4981_v43 }
0x2168   :  { %2995 = vmatpush.msrb.mxu3 %v4989_v51  ;;  %v2685_v51 = vrot.slane %v2535_v5, 6 }
0x216a   :  { %2996 = vmatpush.msrb.mxu3 %v4997_v35 }
0x216c   :  { %2997 = vmatpush.msrb.mxu3 %v5005_v60 }
0x21d2   :  { %v2635_v18 = vpop.f32.mrf.mxu0 }
0x21d3   :  { %v2665_v30 = vrot.slane %v2635_v18, 6  ;;  %v2655_v40 = vpop.f32.mrf.mxu1 }
0x21d4   :  { %v2666_v0 = vrot.slane %v2655_v40, 6 }
0x21d5   :  { %v2671_v26 = vadd.f32 %v2665_v30, %v2659_v17 }
0x21d6   :  { %v2672_v45 = vadd.f32 %v2666_v0, %v2660_v20 }
0x21d7   :  { %3746 = vtanh.f32 %v2671_v26 }
0x21d8   :  { %3748 = vtanh.f32 %v2672_v45  ;;  %v2615_v16 = vpop.f32.mrf.mxu3 }
0x21d9   :  { %v2664_v42 = vrot.slane %v2615_v16, 6 }
0x21db   :  { %v2670_v29 = vadd.f32 %v2664_v42, %v2658_v22 }
0x21dd   :  { %v3747_v53 = vpop.eup %3746  ;;  %3750 = vtanh.f32 %v2670_v29 }
0x21de   :  { %v3749_v58 = vpop.eup %3748  ;;  %2692 = vrot.lane.b32.xlu1 %v3747_v53, %s3857_s20  ;;  %v2678_v43 = vmul.f32 0.5, %v3747_v53  ;;  %v2830_v53 = vld [vmem:[#allocation4 + $0x48] sm:$0x30] }
0x21df   :  { %2694 = vrot.lane.b32.xlu2 %v3749_v58, %s3857_s20  ;;  %v2680_v44 = vmul.f32 0.5, %v3749_v58 }
0x21e0   :  { %v2679_v35 = vadd.f32 0.5, %v2678_v43 }
0x21e1   :  { %v2681_v38 = vadd.f32 0.5, %v2680_v44 }
0x21e2   :  { %v2689_v60 = vmul.f32 %v2685_v51, %v2679_v35 }
0x21e3   :  { %v3751_v21 = vpop.eup %3750 }
0x21e4   :  { %v2676_v36 = vmul.f32 0.5, %v3751_v21 }
0x21e6   :  { %v2677_v19 = vadd.f32 0.5, %v2676_v36 }
0x21e8   :  { %v2688_v62 = vmul.f32 %v2684_v55, %v2677_v19  ;;  %v5214_v55 = vld [vmem:[#allocation7 + $0x98] sm:$0xff] }
0x2239   :  { %v2695_v10 = vpop.permute.xlu2 %2694 }
0x2250   :  { %v2693_v15 = vpop.permute.xlu1 %2692 }
0x2251   :  { %v2696_v32 = vsel %vm487_vm13, %v2693_v15, %v2695_v10 }
0x2252   :  { %v2698_v56 = vmul.f32 %v2696_v32, %v2677_v19 }
0x2254   :  { %2700 = vrot.lane.b32.xlu0 %v2698_v56, %s3859_s28  ;;  %v5212_v56 = vld [vmem:[#allocation7 + $0xb0] sm:$0xff] }
0x2255   :  { %2970 = vmatpush.msrb.mxu2 %v5212_v56 }
0x2257   :  { %2971 = vmatpush.msrb.mxu2 %v5214_v55 }
0x22c6   :  { %v2701_v46 = vpop.permute.xlu0 %2700 }
0x22c7   :  { %v2703_v31 = vadd.f32 %v2701_v46, %v2688_v62  ;;  %v2704_v37 = vadd.f32 %v2701_v46, %v2689_v60  ;;  %v5217_v62 = vld [vmem:[#allocation7 + $0x80] sm:$0xff]  ;;  %v5220_v46 = vld [vmem:[#allocation7 + $0x68] sm:$0xff] }
0x22c8   :  { %2972 = vmatpush.msrb.mxu2 %v5217_v62 }
0x22c9   :  { %3752 = vtanh.f32 %v2703_v31  ;;  %v2857_v17 = vrot.slane %v2704_v37, 6  ;;  %v2856_v29 = vrot.slane %v2703_v31, 6  ;;  %v5223_v31 = vld [vmem:[#allocation7 + $0x50] sm:$0xff] }
0x22ca   :  { %3754 = vtanh.f32 %v2704_v37  ;;  %2973 = vmatpush.msrb.mxu2 %v5220_v46  ;;  %v5226_v37 = vld [vmem:[#allocation7 + $0x38] sm:$0xff] }
0x22cc   :  { %2974 = vmatpush.msrb.mxu2 %v5223_v31 }
0x22ce   :  { %2975 = vmatpush.msrb.mxu2 %v5226_v37 }
0x22cf   :  { %v3753_v24 = vpop.eup %3752 }
0x22d0   :  { %v3755_v61 = vpop.eup %3754  ;;  %2709 = vrot.lane.b32.xlu1 %v3753_v24, %s3857_s20  ;;  %v5229_v24 = vld [vmem:[#allocation7 + $0x20] sm:$0xff] }
0x22d1   :  { %2711 = vrot.lane.b32.xlu2 %v3755_v61, %s3857_s20  ;;  %v5232_v61 = vld [vmem:[#allocation7 + $0x8] sm:$0xff]  ;;  %2976 = vmatpush.msrb.mxu2 %v5229_v24 }
0x22d3   :  { %2977 = vmatpush.msrb.mxu2 %v5232_v61 }
0x232b   :  { %v2712_v2 = vpop.permute.xlu2 %2711 }
0x2342   :  { %v2710_v48 = vpop.permute.xlu1 %2709 }
0x2343   :  { %v2713_v49 = vsel %vm487_vm13, %v2710_v48, %v2712_v2 }
0x2344   :  { %v5196_v3 = vmul.f32 %v2713_v49, %v2681_v38 }
0x2346   :  { %v2765_v4 = vrot.slane %v5196_v3, 2 }
0x2348   :  { %2766 = vrot.lane.b32.xlu0 %v2765_v4, %s3859_s28 }
0x23ba   :  { %v2767_v59 = vpop.permute.xlu0 %2766 }
0x23bb   :  { %3559 = vmatmul.msk.f32.vlgmr.msra.gmra.mxu2 %vm557_vm15, %v2767_v59  ;;  %3560 = vmatmul.msk.f32.vlgmr.msra.gmra.mxu3 %vm557_vm15, %v2767_v59 }
0x23bc   :  { %3561 = vmatmul.msk.f32.vlgmr.msrb.gmra.mxu0 %vm557_vm15, %v2767_v59 }
0x2439   :  { %v2827_v5 = vpop.f32.mrf.mxu0 }
0x243a   :  { %v2838_v7 = vrot.slane %v2827_v5, 4 }
0x243c   :  { %v2844_v9 = vadd.f32 %v2838_v7, %v2832_v33 }
0x243e   :  { %3756 = vtanh.f32 %v2844_v9  ;;  %v2807_v11 = vpop.f32.mrf.mxu3  ;;  %v2787_v20 = vpop.f32.mrf.mxu2 }
0x243f   :  { %v2837_v27 = vrot.slane %v2807_v11, 4  ;;  %v2836_v45 = vrot.slane %v2787_v20, 4  ;;  %v3003_v11 = vld [vmem:[#allocation4 + $0x10] sm:$0xc0] }
0x2441   :  { %v2843_v23 = vadd.f32 %v2837_v27, %v2831_v39  ;;  %v2842_v58 = vadd.f32 %v2836_v45, %v2830_v53 }
0x2443   :  { %3758 = vtanh.f32 %v2843_v23  ;;  %v3004_v23 = vld [vmem:[#allocation4 + $0x40] sm:$0xc0] }
0x2444   :  { %v3757_v18 = vpop.eup %3756  ;;  %3760 = vtanh.f32 %v2842_v58  ;;  %v3002_v58 = vld [vmem:[#allocation4 + $0x48] sm:$0xc0] }
0x2445   :  { %2866 = vrot.lane.b32.xlu2 %v3757_v18, %s3857_s20  ;;  %v2852_v44 = vmul.f32 0.5, %v3757_v18 }
0x2447   :  { %v2853_v38 = vadd.f32 0.5, %v2852_v44 }
0x2449   :  { %v3759_v30 = vpop.eup %3758 }
0x244a   :  { %2864 = vrot.lane.b32.xlu1 %v3759_v30, %s3857_s20  ;;  %v2850_v40 = vmul.f32 0.5, %v3759_v30  ;;  %v3761_v43 = vpop.eup %3760 }
0x244b   :  { %v2848_v51 = vmul.f32 0.5, %v3761_v43 }
0x244c   :  { %v2851_v0 = vadd.f32 0.5, %v2850_v40 }
0x244d   :  { %v2849_v16 = vadd.f32 0.5, %v2848_v51 }
0x244e   :  { %v2861_v26 = vmul.f32 %v2857_v17, %v2851_v0 }
0x244f   :  { %v2860_v21 = vmul.f32 %v2856_v29, %v2849_v16 }
0x249f   :  { %v2867_v35 = vpop.permute.xlu2 %2866 }
0x24bc   :  { %v2865_v60 = vpop.permute.xlu1 %2864 }
0x24bd   :  { %v2868_v42 = vsel %vm487_vm13, %v2865_v60, %v2867_v35 }
0x24be   :  { %v2870_v22 = vmul.f32 %v2868_v42, %v2849_v16 }
0x24c0   :  { %2872 = vrot.lane.b32.xlu0 %v2870_v22, %s3859_s28 }
0x2532   :  { %v2873_v36 = vpop.permute.xlu0 %2872 }
0x2533   :  { %v5207_v10 = vadd.f32 %v2873_v36, %v2860_v21  ;;  %v2876_v15 = vadd.f32 %v2873_v36, %v2861_v26 }
0x2535   :  { %3762 = vtanh.f32 %v5207_v10  ;;  %v3029_v0 = vrot.slane %v2876_v15, 6  ;;  %v3028_v21 = vrot.slane %v5207_v10, 6  ;;  %v3108_v10 = vld [vmem:[#allocation7 + $0x118] sm:$0xff] }
0x2536   :  { %3764 = vtanh.f32 %v2876_v15  ;;  %3158 = vmatpush.msra.mxu2 %v3108_v10 }
0x253b   :  { %v3763_v19 = vpop.eup %3762 }
0x253c   :  { %v3765_v32 = vpop.eup %3764  ;;  %2881 = vrot.lane.b32.xlu1 %v3763_v19, %s3857_s20 }
0x253d   :  { %2883 = vrot.lane.b32.xlu2 %v3765_v32, %s3857_s20 }
0x2597   :  { %v2884_v2 = vpop.permute.xlu2 %2883 }
0x25ae   :  { %v2882_v48 = vpop.permute.xlu1 %2881 }
0x25af   :  { %v2885_v49 = vsel %vm487_vm13, %v2882_v48, %v2884_v2  ;;  %v3106_v48 = vld [vmem:[#allocation7 + $0x108] sm:$0xff] }
0x25b0   :  { %v5237_v4 = vmul.f32 %v2885_v49, %v2853_v38  ;;  %v3107_v49 = vld [vmem:[#allocation7 + $0x110] sm:$0xff]  ;;  %3118 = vmatpush.msra.mxu0 %v3106_v48 }
0x25b1   :  { %3138 = vmatpush.msrb.mxu1 %v3107_v49 }
0x25b2   :  { %v2937_v59 = vrot.slane %v5237_v4, 4 }
0x25b4   :  { %2938 = vrot.lane.b32.xlu0 %v2937_v59, %s3859_s28  ;;  %v3103_v59 = vld [vmem:[#allocation7 + $0xf0] sm:$0xff] }
0x25b5   :  { %3119 = vmatpush.msra.mxu0 %v3103_v59 }
0x2626   :  { %v2939_v5 = vpop.permute.xlu0 %2938 }
0x2627   :  { %3562 = vmatmul.msk.f32.vlgmr.msra.gmra.mxu1 %vm557_vm15, %v2939_v5  ;;  %3563 = vmatmul.msk.f32.vlgmr.msrb.gmra.mxu2 %vm557_vm15, %v2939_v5 }
0x2628   :  { %3564 = vmatmul.msk.f32.vlgmr.msrb.gmra.mxu3 %vm557_vm15, %v2939_v5  ;;  %v3104_v5 = vld [vmem:[#allocation7 + $0xf8] sm:$0xff] }
0x2629   :  { %3139 = vmatpush.msrb.mxu1 %v3104_v5 }
0x26a4   :  { %v2959_v45 = vpop.f32.mrf.mxu1 }
0x26a5   :  { %v3008_v53 = vrot.slane %v2959_v45, 2  ;;  %v3096_v45 = vld [vmem:[#allocation7 + $0xb8] sm:$0xff] }
0x26a7   :  { %v3014_v43 = vadd.f32 %v3008_v53, %v3002_v58  ;;  %v3091_v53 = vld [vmem:[#allocation7 + $0x90] sm:$0xff]  ;;  %v3093_v58 = vld [vmem:[#allocation7 + $0xa0] sm:$0xff] }
0x26aa   :  { %v2979_v7 = vpop.f32.mrf.mxu2 }
0x26ab   :  { %v3009_v33 = vrot.slane %v2979_v7, 2  ;;  %v2999_v9 = vpop.f32.mrf.mxu3  ;;  %v3105_v7 = vld [vmem:[#allocation7 + $0x100] sm:$0xff] }
0x26ac   :  { %v3010_v27 = vrot.slane %v2999_v9, 2  ;;  %3159 = vmatpush.msra.mxu2 %v3105_v7 }
0x26ad   :  { %v3015_v39 = vadd.f32 %v3009_v33, %v3003_v11 }
0x26ae   :  { %v3016_v18 = vadd.f32 %v3010_v27, %v3004_v23  ;;  %v3100_v27 = vld [vmem:[#allocation7 + $0xd8] sm:$0xff] }
0x26af   :  { %3766 = vtanh.f32 %v3015_v39  ;;  %v3101_v39 = vld [vmem:[#allocation7 + $0xe0] sm:$0xff]  ;;  %3120 = vmatpush.msra.mxu0 %v3100_v27 }
0x26b0   :  { %3768 = vtanh.f32 %v3016_v18  ;;  %v3102_v18 = vld [vmem:[#allocation7 + $0xe8] sm:$0xff]  ;;  %3140 = vmatpush.msrb.mxu1 %v3101_v39 }
0x26b1   :  { %3770 = vtanh.f32 %v3014_v43  ;;  %3160 = vmatpush.msra.mxu2 %v3102_v18  ;;  %v3088_v43 = vld [vmem:[#allocation7 + $0x78] sm:$0xff] }
0x26b5   :  { %v3767_v30 = vpop.eup %3766 }
0x26b6   :  { %v3769_v40 = vpop.eup %3768  ;;  %3036 = vrot.lane.b32.xlu1 %v3767_v30, %s3857_s20  ;;  %v3022_v17 = vmul.f32 0.5, %v3767_v30 }
0x26b7   :  { %3038 = vrot.lane.b32.xlu2 %v3769_v40, %s3857_s20  ;;  %v3771_v51 = vpop.eup %3770  ;;  %v3024_v38 = vmul.f32 0.5, %v3769_v40  ;;  %v3097_v40 = vld [vmem:[#allocation7 + $0xc0] sm:$0xff] }
0x26b8   :  { %v3023_v26 = vadd.f32 0.5, %v3022_v17  ;;  %v3020_v35 = vmul.f32 0.5, %v3771_v51  ;;  %v3098_v17 = vld [vmem:[#allocation7 + $0xc8] sm:$0xff]  ;;  %3121 = vmatpush.msra.mxu0 %v3097_v40 }
0x26b9   :  { %v3025_v9 = vadd.f32 0.5, %v3024_v38  ;;  %3141 = vmatpush.msrb.mxu1 %v3098_v17  ;;  %v3090_v51 = vld [vmem:[#allocation7 + $0x88] sm:$0xff] }
0x26ba   :  { %v3033_v20 = vmul.f32 %v3029_v0, %v3023_v26  ;;  %v3021_v42 = vadd.f32 0.5, %v3020_v35  ;;  %v3099_v0 = vld [vmem:[#allocation7 + $0xd0] sm:$0xff]  ;;  %v3085_v35 = vld [vmem:[#allocation7 + $0x60] sm:$0xff] }
0x26bb   :  { %3161 = vmatpush.msra.mxu2 %v3099_v0  ;;  %3142 = vmatpush.msrb.mxu1 %v5212_v56  ;;  %v3079_v56 = vld [vmem:[#allocation7 + $0x30] sm:$0xff] }
0x26bc   :  { %v3032_v36 = vmul.f32 %v3028_v21, %v3021_v42 }
0x26bd   :  { %3162 = vmatpush.msra.mxu2 %v3096_v45  ;;  %3143 = vmatpush.msrb.mxu1 %v5214_v55  ;;  %v3081_v55 = vld [vmem:[#allocation7 + $0x40] sm:$0xff] }
0x26bf   :  { %3163 = vmatpush.msra.mxu2 %v3093_v58  ;;  %3144 = vmatpush.msrb.mxu1 %v5217_v62  ;;  %v3078_v62 = vld [vmem:[#allocation7 + $0x28] sm:$0xff] }
0x26c1   :  { %3164 = vmatpush.msra.mxu2 %v3090_v51  ;;  %3145 = vmatpush.msrb.mxu1 %v5220_v46  ;;  %v3075_v46 = vld [vmem:[#allocation7 + $0x10] sm:$0xff] }
0x26c3   :  { %3146 = vmatpush.msrb.mxu1 %v5223_v31 }
0x26c5   :  { %3147 = vmatpush.msrb.mxu1 %v5226_v37 }
0x26c7   :  { %3148 = vmatpush.msrb.mxu1 %v5229_v24 }
0x26c9   :  { %3149 = vmatpush.msrb.mxu1 %v5232_v61  ;;  %v3174_v61 = vld [vmem:[%s5544_s6] sm:$0x7]  ;;  %s3871_s6 = smov 28  }
0x26ca   :  { %v3177_v21 = vperm.slane %v3174_v61, 1 }
0x2711   :  { %v3039_v60 = vpop.permute.xlu2 %3038 }
0x2728   :  { %v3037_v16 = vpop.permute.xlu1 %3036 }
0x2729   :  { %v3040_v22 = vsel %vm487_vm13, %v3037_v16, %v3039_v60  ;;  %v3087_v60 = vld [vmem:[#allocation7 + $0x70] sm:$0xff]  ;;  %v3082_v16 = vld [vmem:[#allocation7 + $0x48] sm:$0xff] }
0x272a   :  { %v3042_v29 = vmul.f32 %v3040_v22, %v3021_v42  ;;  %v3084_v42 = vld [vmem:[#allocation7 + $0x58] sm:$0xff]  ;;  %3165 = vmatpush.msra.mxu2 %v3087_v60  ;;  %v3256_v60 = vld [vmem:[%s5546_s8 + $0x58] sm:$0xff] }
0x272b   :  { %v3076_v22 = vld [vmem:[#allocation7 + $0x18] sm:$0xff]  ;;  %3277 = vmatpush.msra.mxu3 %v3256_v60  ;;  %v3348_v60 = vld [vmem:[%s5548_s10 + $0x20] sm:$0xff] }
0x272c   :  { %3044 = vrot.lane.b32.xlu0 %v3042_v29, %s3859_s28  ;;  %3166 = vmatpush.msra.mxu2 %v3084_v42  ;;  %v3073_v29 = vld [vmem:[#allocation7] sm:$0xff] }
0x272e   :  { %3167 = vmatpush.msra.mxu2 %v3081_v55  ;;  %v3252_v55 = vld [vmem:[%s5546_s8 + $0x38] sm:$0xff] }
0x2730   :  { %3168 = vmatpush.msra.mxu2 %v3078_v62  ;;  %v3250_v62 = vld [vmem:[%s5546_s8 + $0x28] sm:$0xff] }
0x2732   :  { %3169 = vmatpush.msra.mxu2 %v3075_v46  ;;  %v3247_v46 = vld [vmem:[%s5546_s8 + $0x10] sm:$0xff] }
0x279e   :  { %v3045_v15 = vpop.permute.xlu0 %3044 }
0x279f   :  { %v5249_v19 = vadd.f32 %v3045_v15, %v3032_v36  ;;  %v5251_v32 = vadd.f32 %v3045_v15, %v3033_v20  ;;  %v3094_v20 = vld [vmem:[#allocation7 + $0xa8] sm:$0xff] }
0x27a0   :  { %3122 = vmatpush.msra.mxu0 %v3094_v20 }
0x27a1   :  { %3772 = vtanh.f32 %v5249_v19  ;;  %v3197_v10 = vrot.slane %v5251_v32, 6 }
0x27a2   :  { %3774 = vtanh.f32 %v5251_v32  ;;  %3123 = vmatpush.msra.mxu0 %v3091_v53 }
0x27a4   :  { %3124 = vmatpush.msra.mxu0 %v3088_v43 }
0x27a6   :  { %3125 = vmatpush.msra.mxu0 %v3085_v35 }
0x27a7   :  { %v3773_v44 = vpop.eup %3772 }
0x27a8   :  { %v3775_v2 = vpop.eup %3774  ;;  %3053 = vrot.lane.b32.xlu1 %v3773_v44, %s3857_s20  ;;  %3126 = vmatpush.msra.mxu0 %v3082_v16  ;;  %v3178_v44 = vperm.slane %v3174_v61, 2  ;;  %v3255_v16 = vld [vmem:[%s5546_s8 + $0x50] sm:$0xff] }
0x27a9   :  { %3055 = vrot.lane.b32.xlu2 %v3775_v2, %s3857_s20  ;;  %3278 = vmatpush.msra.mxu3 %v3255_v16  ;;  %v3347_v16 = vld [vmem:[%s5548_s10 + $0x18] sm:$0xff] }
0x27aa   :  { %3127 = vmatpush.msra.mxu0 %v3079_v56  ;;  %v3253_v56 = vld [vmem:[%s5546_s8 + $0x40] sm:$0xff] }
0x27ac   :  { %3128 = vmatpush.msra.mxu0 %v3076_v22  ;;  %v3251_v22 = vld [vmem:[%s5546_s8 + $0x30] sm:$0xff] }
0x27ae   :  { %3129 = vmatpush.msra.mxu0 %v3073_v29  ;;  %v3248_v29 = vld [vmem:[%s5546_s8 + $0x18] sm:$0xff] }
0x2803   :  { %v3056_v33 = vpop.permute.xlu2 %3055 }
0x281a   :  { %v3054_v11 = vpop.permute.xlu1 %3053 }
0x281b   :  { %v3057_v23 = vsel %vm487_vm13, %v3054_v11, %v3056_v33 }
0x281c   :  { %v5258_v30 = vmul.f32 %v3057_v23, %v3025_v9 }
0x281e   :  { %v3109_v26 = vrot.slane %v5258_v30, 6 }
0x2820   :  { %3110 = vrot.lane.b32.xlu0 %v3109_v26, %s3859_s28 }
0x2828   :  { %679 = vrot.lane.b32.xlu0 %v4415_v13, %s3858_s21 }
0x2830   :  { %684 = vrot.lane.b32.xlu0 %v4415_v13, %s3857_s20 }
0x2838   :  { %1199 = vrot.lane.b32.xlu0 %v4530_v28, %s3857_s20 }
0x2892   :  { %v3111_v31 = vpop.permute.xlu0 %3110 }
0x2893   :  { %3565 = vmatmul.msk.f32.vlgmr.msra.gmra.mxu0 %vm557_vm15, %v3111_v31  ;;  %3566 = vmatmul.msk.f32.vlgmr.msrb.gmra.mxu1 %vm557_vm15, %v3111_v31 }
0x2894   :  { %3567 = vmatmul.msk.f32.vlgmr.msra.gmra.mxu2 %vm557_vm15, %v3111_v31  ;;  %v3246_v31 = vld [vmem:[%s5546_s8 + $0x8] sm:$0xff] }
0x289a   :  { %v680_v37 = vpop.permute.xlu0 %679 }
0x289b   :  { %683 = vst.msk [vmem:[#allocation5 + $0x2] sm:$0xc] %vm682_vm0, %v680_v37  ;;  %v3245_v37 = vld [vmem:[%s5546_s8] sm:$0xff] }
0x28a2   :  { %v685_v24 = vpop.permute.xlu0 %684 }
0x28a3   :  { %688 = vst.msk [vmem:[#allocation5] sm:$0xc] %vm687_vm1, %v685_v24  ;;  %v3196_v24 = vrot.slane %v5249_v19, 6 }
0x28aa   :  { %v1200_v33 = vpop.permute.xlu0 %1199 }
0x2910   :  { %v3151_v36 = vpop.f32.mrf.mxu1 }
0x2911   :  { %v3183_v15 = vadd.f32 %v3177_v21, %v3151_v36 }
0x2913   :  { %3776 = vtanh.f32 %v3183_v15 }
0x2917   :  { %v3171_v2 = vpop.f32.mrf.mxu2 }
0x2918   :  { %v3184_v38 = vadd.f32 %v3178_v44, %v3171_v2 }
0x2919   :  { %v3777_v48 = vpop.eup %3776 }
0x291a   :  { %3778 = vtanh.f32 %v3184_v38  ;;  %3204 = vrot.lane.b32.xlu1 %v3777_v48, %s3857_s20  ;;  %v3190_v49 = vmul.f32 0.5, %v3777_v48 }
0x291c   :  { %v3191_v59 = vadd.f32 0.5, %v3190_v49 }
0x291e   :  { %v5286_v5 = vmul.f32 %v3197_v10, %v3191_v59 }
0x2920   :  { %v5288_v7 = vpop.eup %3778 }
0x2921   :  { %3206 = vrot.lane.b32.xlu2 %v5288_v7, %s3857_s20 }
0x2922   :  { %854 = vrot.lane.b32.xlu1 %v4462_v6, %s3858_s21 }
0x2929   :  { %1029 = vrot.lane.b32.xlu2 %v4489_v54, %s3858_s21 }
0x292a   :  { %859 = vrot.lane.b32.xlu1 %v4462_v6, %s3857_s20 }
0x2931   :  { %1034 = vrot.lane.b32.xlu2 %v4489_v54, %s3857_s20 }
0x2932   :  { %864 = vrot.lane.b32.xlu1 %v4462_v6, %s3859_s28  ;;  %v3176_v6 = vperm.slane %v3174_v61, 0 }
0x2939   :  { %1039 = vrot.lane.b32.xlu2 %v4489_v54, %s3859_s28  ;;  %v3131_v54 = vpop.f32.mrf.mxu0 }
0x293a   :  { %1195 = vrot.lane.b32.xlu1 %v4530_v28, %s3858_s21  ;;  %v3182_v32 = vadd.f32 %v3176_v6, %v3131_v54 }
0x293c   :  { %3780 = vtanh.f32 %v3182_v32 }
0x2941   :  { %1365 = vrot.lane.b32.xlu2 %v4670_v34, %s3858_s21 }
0x2942   :  { %1709 = vrot.lane.b32.xlu1 %v4814_v41, %s3858_s21  ;;  %v3781_v9 = vpop.eup %3780 }
0x2943   :  { %v3188_v11 = vmul.f32 0.5, %v3781_v9 }
0x2945   :  { %v5328_v39 = vadd.f32 0.5, %v3188_v11 }
0x2947   :  { %v3200_v61 = vmul.f32 %v3196_v24, %v5328_v39 }
0x2949   :  { %1369 = vrot.lane.b32.xlu2 %v4670_v34, %s3857_s20 }
0x294a   :  { %1713 = vrot.lane.b32.xlu1 %v4814_v41, %s3857_s20 }
0x2951   :  { %1876 = vrot.lane.b32.xlu2 %v4840_v50, %s3857_s20 }
0x2952   :  { %1717 = vrot.lane.b32.xlu1 %v4814_v41, %s3859_s28 }
0x2959   :  { %2049 = vrot.lane.b32.xlu2 %v4886_v12, %s3859_s28 }
0x295a   :  { %2041 = vrot.lane.b32.xlu1 %v4886_v12, %s3858_s21 }
0x2961   :  { %2213 = vrot.lane.b32.xlu2 %v5021_v1, %s3858_s21 }
0x297b   :  { %v3207_v28 = vpop.permute.xlu2 %3206 }
0x2983   :  { %v1030_v41 = vpop.permute.xlu2 %1029 }
0x2984   :  { %1033 = vst.msk [vmem:[#allocation5 + $0x2] sm:$0xc0] %vm1032_vm4, %v1030_v41 }
0x2985   :  { %1203 = vst.msk [vmem:[#allocation5 + $0x8] sm:$0x3] %vm1202_vm7, %v1200_v33 }
0x298b   :  { %v1035_v27 = vpop.permute.xlu2 %1034 }
0x298c   :  { %v3205_v23 = vpop.permute.xlu1 %3204 }
0x298d   :  { %v3208_v18 = vsel %vm487_vm13, %v3205_v23, %v3207_v28  ;;  %v3192_v28 = vmul.f32 0.5, %v5288_v7 }
0x298e   :  { %v3210_v40 = vmul.f32 %v3208_v18, %v5328_v39  ;;  %v3614_v39 = vld [vmem:[%s5547_s9] ss:$0 sm:$0xff]  ;;  %s3877_s9 = smov 60  }
0x2990   :  { %3212 = vrot.lane.b32.xlu0 %v3210_v40, %s3859_s28 }
0x2993   :  { %v1040_v17 = vpop.permute.xlu2 %1039 }
0x2994   :  { %v855_v0 = vpop.permute.xlu1 %854 }
0x2995   :  { %858 = vst.msk [vmem:[#allocation5 + $0x2] sm:$0x30] %vm857_vm8, %v855_v0 }
0x2996   :  { %1038 = vst.msk [vmem:[#allocation5] sm:$0xc0] %vm1037_vm9, %v1035_v27 }
0x2997   :  { %1207 = vst.msk [vmem:[#allocation5 + $0x6] sm:$0x3] %vm460_vm2, %v4534_v8 }
0x2998   :  { %1373 = vrot.lane.b32.xlu0 %v4670_v34, %s3859_s28 }
0x299b   :  { %v1366_v26 = vpop.permute.xlu2 %1365 }
0x299c   :  { %1368 = vst.msk [vmem:[#allocation5 + $0xa] sm:$0xc] %vm682_vm0, %v1366_v26  ;;  %v860_v20 = vpop.permute.xlu1 %859 }
0x299d   :  { %863 = vst.msk [vmem:[#allocation5] sm:$0x30] %vm862_vm10, %v860_v20 }
0x299e   :  { %1043 = vst.msk [vmem:[#allocation5 - $0x2] sm:$0xc0] %vm1042_vm11, %v1040_v17 }
0x29a0   :  { %1537 = vrot.lane.b32.xlu0 %v4770_v25, %s3858_s21 }
0x29a3   :  { %v1370_v45 = vpop.permute.xlu2 %1369 }
0x29a4   :  { %v865_v53 = vpop.permute.xlu1 %864 }
0x29a5   :  { %868 = vst.msk [vmem:[#allocation5 - $0x2] sm:$0x30] %vm867_vm12, %v865_v53 }
0x29a8   :  { %1541 = vrot.lane.b32.xlu0 %v4770_v25, %s3857_s20 }
0x29ab   :  { %v1877_v8 = vpop.permute.xlu2 %1876 }
0x29ac   :  { %v1196_v34 = vpop.permute.xlu1 %1195 }
0x29ad   :  { %1198 = vst.msk [vmem:[#allocation5 + $0xa] sm:$0x3] %vm260_vm6, %v1196_v34 }
0x29ae   :  { %1372 = vst.msk [vmem:[#allocation5 + $0x8] sm:$0xc] %vm687_vm1, %v1370_v45 }
0x29b0   :  { %1545 = vrot.lane.b32.xlu0 %v4770_v25, %s3859_s28 }
0x29b3   :  { %v2050_v58 = vpop.permute.xlu2 %2049 }
0x29b4   :  { %v1710_v43 = vpop.permute.xlu1 %1709 }
0x29b5   :  { %1712 = vst.msk [vmem:[#allocation5 + $0xa] sm:$0xc0] %vm1032_vm4, %v1710_v43 }
0x29b6   :  { %1879 = vst.msk [vmem:[#allocation5 + $0x10] sm:$0x3] %vm1202_vm7, %v1877_v8 }
0x29b7   :  { %2052 = vst.msk [vmem:[#allocation5 + $0xe] sm:$0xc] %vm692_vm14, %v2050_v58 }
0x29b8   :  { %1872 = vrot.lane.b32.xlu0 %v4840_v50, %s3858_s21  ;;  %v3254_v50 = vld [vmem:[%s5546_s8 + $0x48] sm:$0xff] }
0x29b9   :  { %3279 = vmatpush.msra.mxu3 %v3254_v50  ;;  %v3346_v50 = vld [vmem:[%s5548_s10 + $0x10] sm:$0xff] }
0x29bb   :  { %v2214_v51 = vpop.permute.xlu2 %2213  ;;  %3280 = vmatpush.msra.mxu3 %v3253_v56 }
0x29bc   :  { %2216 = vst.msk [vmem:[#allocation5 + $0x12] sm:$0x30] %vm857_vm8, %v2214_v51  ;;  %v1714_v35 = vpop.permute.xlu1 %1713  ;;  %v3351_v51 = vld [vmem:[%s5548_s10 + $0x38] sm:$0xff] }
0x29bd   :  { %3281 = vmatpush.msra.mxu3 %v3252_v55  ;;  %3376 = vmatpush.msrb.mxu0 %v3351_v51  ;;  %v3344_v55 = vld [vmem:[%s5548_s10] sm:$0xff] }
0x29bf   :  { %3282 = vmatpush.msra.mxu3 %v3251_v22 }
0x29c0   :  { %2385 = vrot.lane.b32.xlu0 %v5118_v63, %s3858_s21 }
0x29c1   :  { %3283 = vmatpush.msra.mxu3 %v3250_v62 }
0x29c4   :  { %v1718_v25 = vpop.permute.xlu1 %1717 }
0x29c8   :  { %2389 = vrot.lane.b32.xlu0 %v5118_v63, %s3857_s20 }
0x29cc   :  { %v2042_v42 = vpop.permute.xlu1 %2041 }
0x29cd   :  { %2044 = vst.msk [vmem:[#allocation5 + $0x12] sm:$0xc] %vm682_vm0, %v2042_v42  ;;  %v3345_v42 = vld [vmem:[%s5548_s10 + $0x8] sm:$0xff] }
0x29d0   :  { %2393 = vrot.lane.b32.xlu0 %v5118_v63, %s3859_s28  ;;  %v3249_v63 = vld [vmem:[%s5546_s8 + $0x20] sm:$0xff]  ;;  %s3875_s8 = smov 44  }
0x29d1   :  { %3284 = vmatpush.msra.mxu3 %v3249_v63 }
0x29d3   :  { %3285 = vmatpush.msra.mxu3 %v3248_v29 }
0x29d5   :  { %3286 = vmatpush.msra.mxu3 %v3247_v46 }
0x29d7   :  { %3287 = vmatpush.msra.mxu3 %v3246_v31 }
0x29d8   :  { %2717 = vrot.lane.b32.xlu0 %v5196_v3, %s3858_s21 }
0x29d9   :  { %3288 = vmatpush.msra.mxu3 %v3245_v37 }
0x29e0   :  { %2893 = vrot.lane.b32.xlu0 %v5237_v4, %s3857_s20 }
0x29e8   :  { %2897 = vrot.lane.b32.xlu0 %v5237_v4, %s3859_s28 }
0x2a02   :  { %v3213_v21 = vpop.permute.xlu0 %3212 }
0x2a03   :  { %v3215_v36 = vadd.f32 %v3213_v21, %v3200_v61  ;;  %v3216_v15 = vadd.f32 %v3213_v21, %v5286_v5 }
0x2a05   :  { %3782 = vtanh.f32 %v3215_v36  ;;  %v3615_v36 = vld [vmem:[%s5549_s11] ss:$0 sm:$0xff]  ;;  %s3869_s11 = smov 20  }
0x2a06   :  { %3784 = vtanh.f32 %v3216_v15 }
0x2a0a   :  { %v1374_v44 = vpop.permute.xlu0 %1373 }
0x2a0b   :  { %v3783_v2 = vpop.eup %3782  ;;  %1376 = vst.msk [vmem:[#allocation5 + $0x6] sm:$0xc] %vm692_vm14, %v1374_v44 }
0x2a0c   :  { %v3785_v38 = vpop.eup %3784  ;;  %3221 = vrot.lane.b32.xlu1 %v3783_v2, %s3857_s20 }
0x2a0d   :  { %3223 = vrot.lane.b32.xlu2 %v3785_v38, %s3857_s20 }
0x2a12   :  { %v1538_v48 = vpop.permute.xlu0 %1537  ;;  %v3241_v49 = vld [vmem:[#allocation5 + $0x2] sm:$0xff] }
0x2a13   :  { %1540 = vst.msk [vmem:[#allocation5 + $0xa] sm:$0x30] %vm857_vm8, %v1538_v48  ;;  %3568 = vmatmul.msk.f32.vlgmr.msra.gmra.mxu3 %vm557_vm15, %v3241_v49 }
0x2a14   :  { %1716 = vst.msk [vmem:[#allocation5 + $0x8] sm:$0xc0] %vm1037_vm9, %v1714_v35  ;;  %2045 = vrot.lane.b32.xlu1 %v4886_v12, %s3857_s20  ;;  %v3350_v35 = vld [vmem:[%s5548_s10 + $0x30] sm:$0xff] }
0x2a15   :  { %1883 = vst.msk [vmem:[#allocation5 + $0xe] sm:$0x3] %vm460_vm2, %v4844_v52  ;;  %2217 = vrot.lane.b32.xlu2 %v5021_v1, %s3857_s20  ;;  %3377 = vmatpush.msrb.mxu0 %v3350_v35 }
0x2a1a   :  { %v1542_v19 = vpop.permute.xlu0 %1541 }
0x2a1b   :  { %1544 = vst.msk [vmem:[#allocation5 + $0x8] sm:$0x30] %vm862_vm10, %v1542_v19 }
0x2a1c   :  { %1720 = vst.msk [vmem:[#allocation5 + $0x6] sm:$0xc0] %vm1042_vm11, %v1718_v25  ;;  %2552 = vrot.lane.b32.xlu1 %v5164_v47, %s3857_s20  ;;  %v3349_v25 = vld [vmem:[%s5548_s10 + $0x28] sm:$0xff] }
0x2a1d   :  { %2221 = vrot.lane.b32.xlu2 %v5021_v1, %s3859_s28  ;;  %3378 = vmatpush.msrb.mxu0 %v3349_v25 }
0x2a1f   :  { %3379 = vmatpush.msrb.mxu0 %v3348_v60 }
0x2a21   :  { %3380 = vmatpush.msrb.mxu0 %v3347_v16 }
0x2a22   :  { %v1546_v10 = vpop.permute.xlu0 %1545 }
0x2a23   :  { %1548 = vst.msk [vmem:[#allocation5 + $0x6] sm:$0x30] %vm867_vm12, %v1546_v10  ;;  %3381 = vmatpush.msrb.mxu0 %v3346_v50 }
0x2a24   :  { %2725 = vrot.lane.b32.xlu1 %v5196_v3, %s3859_s28 }
0x2a25   :  { %2548 = vrot.lane.b32.xlu2 %v5164_v47, %s3858_s21  ;;  %3382 = vmatpush.msrb.mxu0 %v3345_v42 }
0x2a27   :  { %3383 = vmatpush.msrb.mxu0 %v3344_v55 }
0x2a2a   :  { %v1873_v52 = vpop.permute.xlu0 %1872  ;;  %v3242_v12 = vld [vmem:[#allocation5 + $0xa] sm:$0xff] }
0x2a2b   :  { %1875 = vst.msk [vmem:[#allocation5 + $0x12] sm:$0x3] %vm260_vm6, %v1873_v52  ;;  %3569 = vmatmul.msk.f32.gmra.mxu3 %vm557_vm15, %v3242_v12 }
0x2a2c   :  { %2889 = vrot.lane.b32.xlu1 %v5237_v4, %s3858_s21 }
0x2a2d   :  { %2721 = vrot.lane.b32.xlu2 %v5196_v3, %s3857_s20 }
0x2a32   :  { %v2386_v1 = vpop.permute.xlu0 %2385 }
0x2a33   :  { %2388 = vst.msk [vmem:[#allocation5 + $0x12] sm:$0xc0] %vm1032_vm4, %v2386_v1 }
0x2a34   :  { %3061 = vrot.lane.b32.xlu1 %v5258_v30, %s3858_s21 }
0x2a35   :  { %3065 = vrot.lane.b32.xlu2 %v5258_v30, %s3857_s20 }
0x2a3a   :  { %v2390_v47 = vpop.permute.xlu0 %2389 }
0x2a3b   :  { %2392 = vst.msk [vmem:[#allocation5 + $0x10] sm:$0xc0] %vm1037_vm9, %v2390_v47 }
0x2a3c   :  { %2559 = vst.msk [vmem:[#allocation5 + $0x16] sm:$0x3] %vm460_vm2, %v5168_v57  ;;  %3069 = vrot.lane.b32.xlu1 %v5258_v30, %s3859_s28  ;;  %v3193_v57 = vadd.f32 0.5, %v3192_v28 }
0x2a42   :  { %v2394_v4 = vpop.permute.xlu0 %2393 }
0x2a4a   :  { %v2718_v3 = vpop.permute.xlu0 %2717 }
0x2a4b   :  { %2720 = vst.msk [vmem:[#allocation5 + $0x1a] sm:$0xc] %vm682_vm0, %v2718_v3  ;;  %vm3338_vm0 = vcmask 517504  }
0x2a52   :  { %v2894_v59 = vpop.permute.xlu0 %2893 }
0x2a53   :  { %2896 = vst.msk [vmem:[#allocation5 + $0x18] sm:$0x30] %vm862_vm10, %v2894_v59 }
0x2a5a   :  { %v2898_v7 = vpop.permute.xlu0 %2897 }
0x2a67   :  { %v3224_v5 = vpop.permute.xlu2 %3223 }
0x2a6f   :  { %v2218_v6 = vpop.permute.xlu2 %2217 }
0x2a70   :  { %2220 = vst.msk [vmem:[#allocation5 + $0x10] sm:$0x30] %vm862_vm10, %v2218_v6  ;;  %vm3448_vm10 = vcmask 322850  }
0x2a71   :  { %2396 = vst.msk [vmem:[#allocation5 + $0xe] sm:$0xc0] %vm1042_vm11, %v2394_v4 }
0x2a77   :  { %v2222_v54 = vpop.permute.xlu2 %2221 }
0x2a7e   :  { %v3222_v32 = vpop.permute.xlu1 %3221 }
0x2a7f   :  { %v2549_v41 = vpop.permute.xlu2 %2548  ;;  %v3225_v30 = vsel %vm487_vm13, %v3222_v32, %v3224_v5 }
0x2a80   :  { %2551 = vst.msk [vmem:[#allocation5 + $0x1a] sm:$0x3] %vm260_vm6, %v2549_v41  ;;  %v5455_v33 = vmul.f32 %v3225_v30, %v3193_v57  ;;  %vm3326_vm6 = vcmask 392448  }
0x2a82   :  { %3237 = vrot.lane.b32.xlu0 %v5455_v33, %s3859_s28  ;;  %3233 = vrot.lane.b32.xlu2 %v5455_v33, %s3857_s20  ;;  %s3878_s20 = smov 56  }
0x2a86   :  { %v2046_v9 = vpop.permute.xlu1 %2045 }
0x2a87   :  { %v2722_v11 = vpop.permute.xlu2 %2721  ;;  %2048 = vst.msk [vmem:[#allocation5 + $0x10] sm:$0xc] %vm687_vm1, %v2046_v9 }
0x2a88   :  { %2724 = vst.msk [vmem:[#allocation5 + $0x18] sm:$0xc] %vm687_vm1, %v2722_v11  ;;  %vm3331_vm1 = vcmask 523648  }
0x2a89   :  { %2900 = vst.msk [vmem:[#allocation5 + $0x16] sm:$0x30] %vm867_vm12, %v2898_v7 }
0x2a8a   :  { %2224 = vst.msk [vmem:[#allocation5 + $0xe] sm:$0x30] %vm867_vm12, %v2222_v54  ;;  %vm3458_vm12 = vcmask 392550  }
0x2a8e   :  { %v2553_v27 = vpop.permute.xlu1 %2552 }
0x2a8f   :  { %2555 = vst.msk [vmem:[#allocation5 + $0x18] sm:$0x3] %vm1202_vm7, %v2553_v27  ;;  %v3066_v20 = vpop.permute.xlu2 %3065 }
0x2a96   :  { %v2726_v23 = vpop.permute.xlu1 %2725  ;;  %v3290_v18 = vpop.f32.mrf.mxu3 }
0x2a97   :  { %2728 = vst.msk [vmem:[#allocation5 + $0x16] sm:$0xc] %vm692_vm14, %v2726_v23  ;;  %v3291_v40 = vadd.f32 %v3614_v39, %v3290_v18  ;;  %vm3464_vm14 = vcmask 419200  }
0x2a99   :  { %v3302_v17 = vmax.f32 %v3291_v40, 0.0 }
0x2a9b   :  { %3306 = vst.msk [vmem:[#allocation6 + $0x2] sm:$0xff] %vm217_vm5, %v3302_v17  ;;  %3314 = vrot.lane.b32.xlu1 %v3302_v17, %s3858_s21 }
0x2a9e   :  { %v2890_v0 = vpop.permute.xlu1 %2889  ;;  %v3243_v26 = vld [vmem:[#allocation5 + $0x12] sm:$0xff] }
0x2a9f   :  { %2892 = vst.msk [vmem:[#allocation5 + $0x1a] sm:$0x30] %vm857_vm8, %v2890_v0  ;;  %3570 = vmatmul.msk.f32.gmra.mxu3 %vm557_vm15, %v3243_v26  ;;  %vm3437_vm8 = vcmask 261350  }
0x2aa0   :  { %3068 = vst.msk [vmem:[#allocation5 + $0x18] sm:$0xc0] %vm1037_vm9, %v3066_v20  ;;  %vm3443_vm9 = vcmask 288000  }
0x2aa6   :  { %v3062_v45 = vpop.permute.xlu1 %3061 }
0x2aa7   :  { %3064 = vst.msk [vmem:[#allocation5 + $0x1a] sm:$0xc0] %vm1032_vm4, %v3062_v45  ;;  %vm3427_vm4 = vcmask 191650  }
0x2aae   :  { %v3070_v53 = vpop.permute.xlu1 %3069  ;;  %v3293_v8 = vpop.f32.mrf.mxu3 }
0x2aaf   :  { %3072 = vst.msk [vmem:[#allocation5 + $0x16] sm:$0xc0] %vm1042_vm11, %v3070_v53  ;;  %v3294_v34 = vadd.f32 %v3614_v39, %v3293_v8  ;;  %vm3453_vm11 = vcmask 357700  }
0x2ab1   :  { %v3303_v58 = vmax.f32 %v3294_v34, 0.0 }
0x2ab3   :  { %3307 = vst.msk [vmem:[#allocation6 + $0xa] sm:$0xff] %vm217_vm5, %v3303_v58  ;;  %3316 = vrot.lane.b32.xlu2 %v3303_v58, %s3858_s21 }
0x2adc   :  { %v3234_v43 = vpop.permute.xlu2 %3233 }
0x2add   :  { %3236 = vst.msk [vmem:[#allocation5 + $0x20] sm:$0x3] %vm1202_vm7, %v3234_v43  ;;  %vm3432_vm7 = vcmask 226500  }
0x2af4   :  { %v3238_v56 = vpop.permute.xlu0 %3237 }
0x2af5   :  { %3240 = vst.msk [vmem:[#allocation5 + $0x1e] sm:$0x3] %vm460_vm2, %v3238_v56  ;;  %vm3416_vm2 = vcmask 130150  }
0x2afc   :  { %v3244_v22 = vld [vmem:[#allocation5 + $0x1a] sm:$0xff] }
0x2afd   :  { %3571 = vmatmul.msk.f32.gmra.mxu3 %vm557_vm15, %v3244_v22  ;;  %vm3406_vm15 = vcmask 60450  }
0x2b0d   :  { %v3315_v62 = vpop.permute.xlu1 %3314  ;;  %v3317_v63 = vpop.permute.xlu2 %3316 }
0x2b0e   :  { %3327 = vst.msk [vmem:[#allocation6] sm:$0xff] %vm3326_vm6, %v3315_v62 }
0x2b0f   :  { %3339 = vst.msk [vmem:[#allocation6 + $0x2] sm:$0x3] %vm3338_vm0, %v3856_v14  ;;  %vm3474_vm0 = vcmask 488900  }
0x2b10   :  { %3328 = vst.msk [vmem:[#allocation6 + $0x8] sm:$0xff] %vm3326_vm6, %v3317_v63 }
0x2b11   :  { %3332 = vst.msk [vmem:[#allocation6 + $0x4] sm:$0xff] %vm3331_vm1, %v3315_v62 }
0x2b18   :  { %v3340_v29 = vld [vmem:[#allocation6 + $0x2] sm:$0xff] }
0x2b19   :  { %3572 = vmatmul.msk.f32.vlgmr.msrb.gmra.mxu0 %vm487_vm13, %v3340_v29 }
0x2b22   :  { %v3296_v46 = vpop.f32.mrf.mxu3 }
0x2b23   :  { %v3297_v31 = vadd.f32 %v3614_v39, %v3296_v46 }
0x2b25   :  { %v3304_v37 = vmax.f32 %v3297_v31, 0.0 }
0x2b27   :  { %3308 = vst.msk [vmem:[#allocation6 + $0x12] sm:$0xff] %vm217_vm5, %v3304_v37  ;;  %3318 = vrot.lane.b32.xlu0 %v3304_v37, %s3858_s21 }
0x2b80   :  { %v3299_v24 = vpop.f32.mrf.mxu3 }
0x2b81   :  { %v3300_v61 = vadd.f32 %v3614_v39, %v3299_v24 }
0x2b83   :  { %v3305_v21 = vmax.f32 %v3300_v61, 0.0 }
0x2b85   :  { %3309 = vst.msk [vmem:[#allocation6 + $0x1a] sm:$0xff] %vm217_vm5, %v3305_v21  ;;  %3320 = vrot.lane.b32.xlu1 %v3305_v21, %s3858_s21  ;;  %vm3336_vm5 = vcmask 386304  }
0x2b96   :  { %v3385_v15 = vpop.f32.mrf.mxu0 }
0x2b97   :  { %v3386_v44 = vadd.f32 %v3615_v36, %v3385_v15 }
0x2b99   :  { %3786 = vtanh.f32 %v3386_v44  ;;  %v3319_v2 = vpop.permute.xlu0 %3318 }
0x2b9a   :  { %3329 = vst.msk [vmem:[#allocation6 + $0x10] sm:$0xff] %vm3326_vm6, %v3319_v2 }
0x2b9b   :  { %3333 = vst.msk [vmem:[#allocation6 + $0xc] sm:$0xff] %vm3331_vm1, %v3317_v63 }
0x2b9f   :  { %v3787_v38 = vpop.eup %3786 }
0x2ba0   :  { %3401 = vst.msk [vmem:[#allocation10] sm:$0x3] %vm153_vm3, %v3787_v38  ;;  %3403 = vrot.lane.b32.xlu2 %v3787_v38, %s3849_s14  ;;  %3408 = vrot.lane.b32.xlu0 %v3787_v38, %s3867_s22  ;;  %vm3411_vm3 = vcmask 95300   ;;  %s3870_s14 = smov 16  }
0x2ba1   :  { %3413 = vrot.lane.b32.xlu1 %v3787_v38, %s3868_s23 }
0x2ba2   :  { %v3341_v48 = vld [vmem:[#allocation6 + $0xa] sm:$0xff] }
0x2ba3   :  { %3573 = vmatmul.msk.f32.gmra.mxu0 %vm487_vm13, %v3341_v48 }
0x2bf7   :  { %v3321_v49 = vpop.permute.xlu1 %3320 }
0x2bf8   :  { %3330 = vst.msk [vmem:[#allocation6 + $0x18] sm:$0xff] %vm3326_vm6, %v3321_v49  ;;  %vm3469_vm6 = vcmask 454050  }
0x2bf9   :  { %3334 = vst.msk [vmem:[#allocation6 + $0x14] sm:$0xff] %vm3331_vm1, %v3319_v2 }
0x2bfa   :  { %3335 = vst.msk [vmem:[#allocation6 + $0x1c] sm:$0xff] %vm3331_vm1, %v3321_v49  ;;  %v3404_v19 = vpop.permute.xlu2 %3403  ;;  %vm3479_vm1 = vcmask 523750  }
0x2bfb   :  { %3337 = vst.msk [vmem:[#allocation6 + $0x20] sm:$0x3] %vm3336_vm5, %v3856_v14 }
0x2bfc   :  { %3407 = vst.msk [vmem:[#allocation10 - $0x2] sm:$0xc] %vm3406_vm15, %v3404_v19 }
0x2c00   :  { %v3342_v10 = vld [vmem:[#allocation6 + $0x12] sm:$0xff] }
0x2c01   :  { %3574 = vmatmul.msk.f32.gmra.mxu0 %vm487_vm13, %v3342_v10 }
0x2c02   :  { %v3343_v52 = vld [vmem:[#allocation6 + $0x1a] sm:$0xff] }
0x2c09   :  { %3575 = vmatmul.msk.f32.gmra.mxu0 %vm487_vm13, %v3343_v52  ;;  %vm3422_vm13 = vcmask 156800  }
0x2c12   :  { %v3409_v12 = vpop.permute.xlu0 %3408 }
0x2c13   :  { %v3414_v1 = vpop.permute.xlu1 %3413  ;;  %3412 = vst.msk [vmem:[#allocation10 - $0x4] sm:$0x30] %vm3411_vm3, %v3409_v12 }
0x2c14   :  { %3417 = vst.msk [vmem:[#allocation10 - $0x6] sm:$0xc0] %vm3416_vm2, %v3414_v1 }
0x2c20   :  { %v3388_v47 = vpop.f32.mrf.mxu0 }
0x2c21   :  { %v3389_v4 = vadd.f32 %v3615_v36, %v3388_v47 }
0x2c23   :  { %3788 = vtanh.f32 %v3389_v4 }
0x2c29   :  { %v3789_v3 = vpop.eup %3788 }
0x2c2a   :  { %3429 = vrot.lane.b32.xlu1 %v3789_v3, %s3848_s27  ;;  %3424 = vrot.lane.b32.xlu0 %v3789_v3, %s3869_s11  ;;  %s3873_s27 = smov 40  }
0x2c2b   :  { %3419 = vrot.lane.b32.xlu2 %v3789_v3, %s3870_s14 }
0x2c33   :  { %3434 = vrot.lane.b32.xlu2 %v3789_v3, %s3871_s6 }
0x2c7e   :  { %v3391_v14 = vpop.f32.mrf.mxu0 }
0x2c7f   :  { %v3392_v59 = vadd.f32 %v3615_v36, %v3391_v14 }
0x2c81   :  { %3790 = vtanh.f32 %v3392_v59 }
0x2c85   :  { %v3420_v5 = vpop.permute.xlu2 %3419 }
0x2c86   :  { %3423 = vst.msk [vmem:[#allocation10] sm:$0x3] %vm3422_vm13, %v3420_v5  ;;  %v3394_v6 = vpop.f32.mrf.mxu0 }
0x2c87   :  { %v3791_v54 = vpop.eup %3790  ;;  %v3395_v28 = vadd.f32 %v3615_v36, %v3394_v6 }
0x2c88   :  { %3445 = vrot.lane.b32.xlu1 %v3791_v54, %s3872_s24  ;;  %3440 = vrot.lane.b32.xlu0 %v3791_v54, %s3858_s21 }
0x2c89   :  { %3792 = vtanh.f32 %v3395_v28  ;;  %3450 = vrot.lane.b32.xlu2 %v3791_v54, %s3873_s27 }
0x2c8d   :  { %v3435_v30 = vpop.permute.xlu2 %3434 }
0x2c8f   :  { %v3793_v57 = vpop.eup %3792 }
0x2c90   :  { %3461 = vrot.lane.b32.xlu1 %v3793_v57, %s3874_s25  ;;  %3455 = vrot.lane.b32.xlu0 %v3791_v54, %s3875_s8 }
0x2c91   :  { %3466 = vrot.lane.b32.xlu2 %v3793_v57, %s3876_s26 }
0x2c98   :  { %3476 = vrot.lane.b32.xlu1 %v3793_v57, %s3877_s9  ;;  %3471 = vrot.lane.b32.xlu0 %v3793_v57, %s3878_s20 }
0x2c99   :  { %689 = vrot.lane.b32.xlu2 %v4415_v13, %s3859_s28 }
0x2c9c   :  { %v3430_v32 = vpop.permute.xlu1 %3429  ;;  %v3425_v41 = vpop.permute.xlu0 %3424 }
0x2c9d   :  { %3428 = vst.msk [vmem:[#allocation10 - $0x2] sm:$0xc] %vm3427_vm4, %v3425_v41 }
0x2c9e   :  { %3433 = vst.msk [vmem:[#allocation10 - $0x4] sm:$0x30] %vm3432_vm7, %v3430_v32 }
0x2c9f   :  { %3438 = vst.msk [vmem:[#allocation10 - $0x6] sm:$0xc0] %vm3437_vm8, %v3435_v30 }
0x2ca0   :  { %3229 = vrot.lane.b32.xlu0 %v5455_v33, %s3858_s21  ;;  %s3879_s21 = smov [#allocation10]  }
0x2ca1   :  { %s3486_s28 = sshll.u32 %s3879_s21, 4  ;;  %s3487_s28 = int_to_ptr.vmem [resolvable:$true] %s3486_s28 }
0x2ce3   :  { %v3451_v9 = vpop.permute.xlu2 %3450 }
0x2ceb   :  { %v3467_v11 = vpop.permute.xlu2 %3466 }
0x2cf3   :  { %v690_v7 = vpop.permute.xlu2 %689 }
0x2cfa   :  { %v3446_v27 = vpop.permute.xlu1 %3445  ;;  %v3441_v39 = vpop.permute.xlu0 %3440 }
0x2cfb   :  { %3444 = vst.msk [vmem:[#allocation10] sm:$0x3] %vm3443_vm9, %v3441_v39 }
0x2cfc   :  { %3449 = vst.msk [vmem:[#allocation10 - $0x2] sm:$0xc] %vm3448_vm10, %v3446_v27 }
0x2cfd   :  { %3454 = vst.msk [vmem:[#allocation10 - $0x4] sm:$0x30] %vm3453_vm11, %v3451_v9 }
0x2d02   :  { %v3462_v13 = vpop.permute.xlu1 %3461  ;;  %v3456_v23 = vpop.permute.xlu0 %3455 }
0x2d03   :  { %3459 = vst.msk [vmem:[#allocation10 - $0x6] sm:$0xc0] %vm3458_vm12, %v3456_v23 }
0x2d04   :  { %3465 = vst.msk [vmem:[#allocation10] sm:$0x3] %vm3464_vm14, %v3462_v13 }
0x2d05   :  { %3470 = vst.msk [vmem:[#allocation10 - $0x2] sm:$0xc] %vm3469_vm6, %v3467_v11 }
0x2d0a   :  { %v3477_v33 = vpop.permute.xlu1 %3476  ;;  %v3472_v18 = vpop.permute.xlu0 %3471 }
0x2d0b   :  { %3475 = vst.msk [vmem:[#allocation10 - $0x4] sm:$0x30] %vm3474_vm0, %v3472_v18 }
0x2d0c   :  { %3480 = vst.msk [vmem:[#allocation10 - $0x6] sm:$0xc0] %vm3479_vm1, %v3477_v33 }
0x2d0d   :  { %3491 = dma.vmem_to_hbm [thread:$0]  %s3487_s28, 32, %s3489_s30, [#allocation9]  }
0x2d12   :  { %v3230_v40 = vpop.permute.xlu0 %3229 }
0x2d13   :  { %3844 = dma.done.wait [#allocation9], 32  }
0x2d14   :  { %3845 = vsyncadd [#allocation9], 4294967264 }
0x2d15   :  { %3496 = vsyncpa [#allocation8], 1 }
0x2d16   :  { %3497 = vsyncpa [#allocation9], 1 }

</bundles_post_ra>
